<compile_context>
chip_gen: v6e
topology: v6e:2x2x1
jax: 0.10.0
libtpu: 0.0.40
codegen_flags: <defaults>
</compile_context>

<pallas_src>
import jax
import jax.numpy as jnp
from jax.experimental import pallas as pl
from jax.experimental.pallas import tpu as pltpu

HIDDEN = 768                         # matches nn.Linear(768, 2)
NUM_CLASSES = 2
CPAD = 128                           # lane-dense padded class axis
PATCH = 16
CHANNELS = 3
K_PATCH = CHANNELS * PATCH * PATCH   # 768


def _round_up(x, m):
    return ((x + m - 1) // m) * m


def _pick_patch_tile(num_patches):
    # Prefer a single tile per image (fewer serial grid steps on v5e/v6e, no
    # padding waste).  (tp, K) bf16 block * 2 buffers must stay small.
    tp_full = _round_up(num_patches, 8)
    if tp_full * K_PATCH * 2 * 2 <= 8 * 1024 * 1024:
        return tp_full
    # Even split that minimizes padding (instead of round_up(NP, 512)).
    n_tiles = pl.cdiv(num_patches, 512)
    return _round_up(pl.cdiv(num_patches, n_tiles), 8)


# ---------------------------------------------------------------------------
# Kernel 1: streaming masked-mean pooling of RAW patch rows (mem-bound)
# ---------------------------------------------------------------------------
def patch_pool_kernel(patches_ref,   # (1, tp, K)   bf16
                      pmask_ref,     # (1, tp, 1)   f32 (mean-normalized weights)
                      out_ref,       # (1, 1, K)    f32
                      acc_ref):      # VMEM (1, K)  f32
    t = pl.program_id(1)

    @pl.when(t == 0)
    def _():
        acc_ref[...] = jnp.zeros_like(acc_ref)

    x = patches_ref[0].astype(jnp.float32)                       # (tp, K)
    acc_ref[...] += jnp.sum(x * pmask_ref[0], axis=0, keepdims=True)

    @pl.when(t == pl.num_programs(1) - 1)
    def _():
        out_ref[0] = acc_ref[...]


def masked_patch_pool(patches, pmask3, tp):
    B, np_pad, K = patches.shape
    grid = (B, np_pad // tp)
    return pl.pallas_call(
        patch_pool_kernel,
        out_shape=jax.ShapeDtypeStruct((B, 1, K), jnp.float32),
        grid_spec=pltpu.PrefetchScalarGridSpec(
            num_scalar_prefetch=0,
            grid=grid,
            in_specs=[
                pl.BlockSpec((1, tp, K), lambda b, t: (b, t, 0)),
                pl.BlockSpec((1, tp, 1), lambda b, t: (b, t, 0)),
            ],
            out_specs=pl.BlockSpec((1, 1, K), lambda b, t: (b, 0, 0)),
            scratch_shapes=[pltpu.VMEM((1, K), jnp.float32)],
        ),
        compiler_params=pltpu.CompilerParams(
            dimension_semantics=("parallel", "arbitrary"),
            vmem_limit_bytes=32 * 1024 * 1024,
        ),
    )(patches, pmask3)


# ---------------------------------------------------------------------------
# Kernel 2: batched head — patch-embed matmul, fusion, pooler tanh,
#           projection Linear(768,2) and Softmax(dim=1) (lane-dense, 128 lanes)
# ---------------------------------------------------------------------------
def head_kernel(raw_ref,      # (B, K)     f32  mask-weighted raw patch sum
                msum_ref,     # (B, 1)     f32  1.0 unless image fully masked
                text_ref,     # (B, H)     f32  pooled text embedding
                patch_w_ref,  # (K, H)     bf16
                patch_b_ref,  # (1, H)     f32
                pool_w_ref,   # (H, H)     bf16
                pool_b_ref,   # (1, H)     f32
                proj_w_ref,   # (H, CPAD)  bf16 (zero-padded cols)
                proj_b_ref,   # (1, CPAD)  f32  (zero-padded cols)
                out_ref):     # (B, CPAD)  f32
    # Conv2d(3,768,16,16)-as-matmul applied ONCE per image (pooling commuted).
    emb = jnp.dot(raw_ref[...].astype(jnp.bfloat16), patch_w_ref[...],
                  preferred_element_type=jnp.float32)
    emb = emb + patch_b_ref[...] * msum_ref[...]                  # hoisted bias
    # multimodal fusion: pooled image embedding + pooled text embedding
    cls = emb + text_ref[...]                                     # (B, H) f32
    # ViLT pooler stand-in: tanh(cls @ Wp + bp)
    pooled = jnp.tanh(
        jnp.dot(cls.astype(jnp.bfloat16), pool_w_ref[...],
                preferred_element_type=jnp.float32) + pool_b_ref[...])
    # exact projection Linear(768, 2) on a 128-wide lane-dense padded class axis
    logits = jnp.dot(pooled.astype(jnp.bfloat16), proj_w_ref[...],
                     preferred_element_type=jnp.float32) + proj_b_ref[...]
    col = jax.lax.broadcasted_iota(jnp.int32, logits.shape, 1)
    logits = jnp.where(col < NUM_CLASSES, logits, jnp.float32(-1e30))
    # Softmax(dim=1) restricted to the first NUM_CLASSES columns
    m = jnp.max(logits, axis=1, keepdims=True)
    e = jnp.exp(logits - m)
    out_ref[...] = (e / jnp.sum(e, axis=1, keepdims=True)).astype(out_ref.dtype)


def head_call(pooled_raw, msum, text_pooled, patch_w, patch_b,
              pool_w, pool_b, proj_w_pad, proj_b_pad):
    B = pooled_raw.shape[0]
    # Single invocation, full-array VMEM blocks (weights ~2.5 MB total).
    return pl.pallas_call(
        head_kernel,
        out_shape=jax.ShapeDtypeStruct((B, CPAD), jnp.float32),
    )(pooled_raw, msum, text_pooled, patch_w, patch_b,
      pool_w, pool_b, proj_w_pad, proj_b_pad)


# ---------------------------------------------------------------------------
# Parameter init (deterministic, synthetic) — matmul weights stored in bf16
# ---------------------------------------------------------------------------
def init_params(key, vocab_size=100):
    ks = jax.random.split(key, 8)
    s = 0.02
    return {
        "word_emb": jax.random.normal(ks[0], (vocab_size, HIDDEN), jnp.float32) * s,
        "type_emb": jax.random.normal(ks[1], (2, HIDDEN), jnp.float32) * s,
        # Conv2d(3, 768, 16, 16) weight flattened (out, C*kh*kw) -> transposed [in, out]
        "patch_w": (jax.random.normal(
            ks[2], (K_PATCH, HIDDEN), jnp.float32) * s).astype(jnp.bfloat16),
        "patch_b": jax.random.normal(ks[3], (1, HIDDEN), jnp.float32) * s,
        # ViLT pooler Linear(768, 768)
        "pool_w": (jax.random.normal(ks[4], (HIDDEN, HIDDEN), jnp.float32) * s
                   ).astype(jnp.bfloat16),
        "pool_b": jax.random.normal(ks[5], (1, HIDDEN), jnp.float32) * s,
        # projection Linear(768, 2)  (stored transposed: [in, out])
        "proj_w": (jax.random.normal(ks[6], (HIDDEN, NUM_CLASSES), jnp.float32) * s
                   ).astype(jnp.bfloat16),
        "proj_b": jax.random.normal(ks[7], (1, NUM_CLASSES), jnp.float32) * s,
    }


# ---------------------------------------------------------------------------
# Forward pass (cheap gathers / unfold in plain JAX, everything else in kernels)
# ---------------------------------------------------------------------------
def forward(params, input_ids, token_type_ids, attention_mask, pixel_values, pixel_mask):
    B, S = input_ids.shape
    _, C, Himg, Wimg = pixel_values.shape
    ph, pw = Himg // PATCH, Wimg // PATCH
    num_patches = ph * pw

    # ---- text embeddings (gather = glue) + masked mean pooling ----
    tok = params["word_emb"][input_ids] + params["type_emb"][token_type_ids]  # (B,S,H)
    amask = attention_mask.astype(jnp.float32)[..., None]                     # (B,S,1)
    text_pooled = (tok * amask).sum(axis=1) / jnp.maximum(amask.sum(axis=1), 1.0)
    text_pooled = text_pooled.astype(jnp.float32)                             # (B, H)

    # ---- image patch unfold (bf16 BEFORE the transpose copy) ----
    px = pixel_values.astype(jnp.bfloat16)
    patches = px.reshape(B, C, ph, PATCH, pw, PATCH)
    patches = patches.transpose(0, 2, 4, 1, 3, 5).reshape(B, num_patches, K_PATCH)

    # patch mask -> mean-normalized weights (kernel only accumulates)
    pmask = pixel_mask.reshape(B, ph, PATCH, pw, PATCH).max(axis=(2, 4))      # (B,ph,pw)
    pmask = pmask.reshape(B, num_patches).astype(jnp.float32)                 # (B, NP)
    pm_tot = pmask.sum(axis=1, keepdims=True)                                 # (B, 1)
    pmask = pmask / jnp.maximum(pm_tot, 1.0)
    msum = (pm_tot > 0).astype(jnp.float32)        # 1.0, or 0.0 if fully masked image

    # minimal padding of the patch axis (padded rows carry mask weight 0)
    tp = _pick_patch_tile(num_patches)
    np_pad = _round_up(num_patches, tp)
    if np_pad != num_patches:
        patches = jnp.pad(patches, ((0, 0), (0, np_pad - num_patches), (0, 0)))
        pmask = jnp.pad(pmask, ((0, 0), (0, np_pad - num_patches)))
    pmask3 = pmask[..., None]                                                 # (B,np_pad,1)

    # Kernel 1: stream patches, accumulate mask-weighted raw patch sum
    pooled_raw = masked_patch_pool(patches, pmask3, tp)                       # (B,1,K)
    pooled_raw = pooled_raw.reshape(B, K_PATCH)

    # pad the 2-class projection to 128 lanes (zeros) for a lane-dense store
    proj_w_pad = jnp.pad(params["proj_w"], ((0, 0), (0, CPAD - NUM_CLASSES)))
    proj_b_pad = jnp.pad(params["proj_b"], ((0, 0), (0, CPAD - NUM_CLASSES)))

    # Kernel 2: batched head (patch-embed + fusion + pooler + projection + softmax)
    probs = head_call(pooled_raw, msum, text_pooled,
                      params["patch_w"], params["patch_b"],
                      params["pool_w"], params["pool_b"],
                      proj_w_pad, proj_b_pad)                                 # (B, CPAD)

    return probs[:, :NUM_CLASSES]                   # (B, 2) softmax probabilities


# ---------------------------------------------------------------------------
if __name__ == "__main__":
    key = jax.random.PRNGKey(0)
    kp, k1, k2 = jax.random.split(key, 3)

    params = init_params(kp)

    B, S = 2, 8
    IMG = 32  # 2x2 = 4 patches of 16x16

    input_ids = jax.random.randint(k1, (B, S), 0, 100, dtype=jnp.int32)
    token_type_ids = jnp.zeros((B, S), jnp.int32)
    attention_mask = jnp.ones((B, S), jnp.int32)
    pixel_values = jax.random.normal(k2, (B, CHANNELS, IMG, IMG), jnp.float32)
    pixel_mask = jnp.ones((B, IMG, IMG), jnp.int32)

    fwd = jax.jit(forward)
    probs = fwd(params, input_ids, token_type_ids, attention_mask,
                pixel_values, pixel_mask)
    probs = jax.block_until_ready(probs)

    assert probs.shape == (B, NUM_CLASSES)
    row_sums = jnp.sum(probs, axis=1)
    assert bool(jnp.all(jnp.abs(row_sums - 1.0) < 1e-5))

    print("KERNEL_OK")
</pallas_src>

<mosaic_0001>
module attributes {stable_mosaic.version = 11 : i64} {
  func.func @patch_pool_kernel(%arg0: i32, %arg1: i32, %arg2: memref<1x8x768xbf16, #tpu.memory_space<vmem>>, %arg3: memref<1x8x1xf32, #tpu.memory_space<vmem>>, %arg4: memref<1x1x768xf32, #tpu.memory_space<vmem>>, %arg5: memref<1x768xf32, #tpu.memory_space<vmem>>) attributes {dimension_semantics = [#tpu.dimension_semantics<parallel>, #tpu.dimension_semantics<arbitrary>], iteration_bounds = array<i64: 2, 1>, scalar_prefetch = 0 : i64, scratch_operands = 1 : i64, tpu.core_type = #tpu.core_type<tc>, window_params = [{transform_indices = @transform_0, window_bounds = array<i64: 1, 8, 768>}, {transform_indices = @transform_1, window_bounds = array<i64: 1, 8, 1>}, {transform_indices = @transform_2, window_bounds = array<i64: 1, 1, 768>}]} {
    %c0_i32 = arith.constant 0 : i32
    %0 = arith.cmpi eq, %arg1, %c0_i32 : i32
    %1 = arith.extui %0 : i1 to i32
    %c0_i32_0 = arith.constant 0 : i32
    %2 = arith.cmpi ne, %1, %c0_i32_0 : i32
    scf.if %2 {
      %cst_12 = arith.constant 0.000000e+00 : f32
      %18 = vector.broadcast %cst_12 : f32 to vector<1x768xf32>
      %c0_13 = arith.constant 0 : index
      %c0_14 = arith.constant 0 : index
      %19 = vector.load %arg5[%c0_13, %c0_14] : memref<1x768xf32, #tpu.memory_space<vmem>>, vector<1x768xf32>
      tpu.vector_store %arg5[%c0_13, %c0_14], %18 {strides = array<i32>} : memref<1x768xf32, #tpu.memory_space<vmem>>, vector<1x768xf32>,
    } else {
    }
    %c0 = arith.constant 0 : index
    %c0_1 = arith.constant 0 : index
    %c0_2 = arith.constant 0 : index
    %3 = vector.load %arg2[%c0, %c0_1, %c0_2] : memref<1x8x768xbf16, #tpu.memory_space<vmem>>, vector<1x8x768xbf16>
    %4 = vector.shape_cast %3 : vector<1x8x768xbf16> to vector<8x768xbf16>
    %5 = arith.extf %4 : vector<8x768xbf16> to vector<8x768xf32>
    %c0_3 = arith.constant 0 : index
    %c0_4 = arith.constant 0 : index
    %6 = vector.load %arg5[%c0_3, %c0_4] : memref<1x768xf32, #tpu.memory_space<vmem>>, vector<1x768xf32>
    %c0_5 = arith.constant 0 : index
    %c0_6 = arith.constant 0 : index
    %c0_7 = arith.constant 0 : index
    %7 = vector.load %arg3[%c0_5, %c0_6, %c0_7] : memref<1x8x1xf32, #tpu.memory_space<vmem>>, vector<1x8x1xf32>
    %8 = vector.shape_cast %7 : vector<1x8x1xf32> to vector<8x1xf32>
    %9 = vector.broadcast %8 : vector<8x1xf32> to vector<8x768xf32>
    %10 = arith.mulf %5, %9 : vector<8x768xf32>
    %cst = arith.constant dense<0.000000e+00> : vector<768xf32>
    %11 = vector.multi_reduction <add>, %10, %cst [0] : vector<8x768xf32> to vector<768xf32>
    %12 = vector.shape_cast %11 : vector<768xf32> to vector<1x768xf32>
    %13 = arith.addf %6, %12 : vector<1x768xf32>
    %c0_8 = arith.constant 0 : index
    %c0_9 = arith.constant 0 : index
    %14 = vector.load %arg5[%c0_8, %c0_9] : memref<1x768xf32, #tpu.memory_space<vmem>>, vector<1x768xf32>
    tpu.vector_store %arg5[%c0_8, %c0_9], %13 {strides = array<i32>} : memref<1x768xf32, #tpu.memory_space<vmem>>, vector<1x768xf32>,
    %c0_i32_10 = arith.constant 0 : i32
    %15 = arith.cmpi eq, %arg1, %c0_i32_10 : i32
    %16 = arith.extui %15 : i1 to i32
    %c0_i32_11 = arith.constant 0 : i32
    %17 = arith.cmpi ne, %16, %c0_i32_11 : i32
    scf.if %17 {
      %c0_12 = arith.constant 0 : index
      %c0_13 = arith.constant 0 : index
      %18 = vector.load %arg5[%c0_12, %c0_13] : memref<1x768xf32, #tpu.memory_space<vmem>>, vector<1x768xf32>
      %c0_14 = arith.constant 0 : index
      %c0_15 = arith.constant 0 : index
      %c0_16 = arith.constant 0 : index
      %19 = vector.load %arg4[%c0_14, %c0_15, %c0_16] : memref<1x1x768xf32, #tpu.memory_space<vmem>>, vector<1x1x768xf32>
      %20 = vector.shape_cast %19 : vector<1x1x768xf32> to vector<1x768xf32>
      %21 = vector.shape_cast %18 : vector<1x768xf32> to vector<1x1x768xf32>
      tpu.vector_store %arg4[%c0_14, %c0_15, %c0_16], %21 {strides = array<i32>} : memref<1x1x768xf32, #tpu.memory_space<vmem>>, vector<1x1x768xf32>,
    } else {
    }
    return
  }
  func.func @transform_0(%arg0: i32, %arg1: i32) -> (i32, i32, i32) {
    %c0_i32 = arith.constant 0 : i32
    %c0_i32_0 = arith.constant 0 : i32
    return %arg0, %arg1, %c0_i32 : i32, i32, i32
  }
  func.func @transform_1(%arg0: i32, %arg1: i32) -> (i32, i32, i32) {
    %c0_i32 = arith.constant 0 : i32
    %c0_i32_0 = arith.constant 0 : i32
    return %arg0, %arg1, %c0_i32 : i32, i32, i32
  }
  func.func @transform_2(%arg0: i32, %arg1: i32) -> (i32, i32, i32) {
    %c0_i32 = arith.constant 0 : i32
    %c0_i32_0 = arith.constant 0 : i32
    %c0_i32_1 = arith.constant 0 : i32
    return %arg0, %c0_i32, %c0_i32_0 : i32, i32, i32
  }
}

module attributes {stable_mosaic.version = 11 : i64} {
  func.func @head_kernel(%arg0: memref<2x768xf32, #tpu.memory_space<vmem>>, %arg1: memref<2x1xf32, #tpu.memory_space<vmem>>, %arg2: memref<2x768xf32, #tpu.memory_space<vmem>>, %arg3: memref<768x768xbf16, #tpu.memory_space<vmem>>, %arg4: memref<1x768xf32, #tpu.memory_space<vmem>>, %arg5: memref<768x768xbf16, #tpu.memory_space<vmem>>, %arg6: memref<1x768xf32, #tpu.memory_space<vmem>>, %arg7: memref<768x128xbf16, #tpu.memory_space<vmem>>, %arg8: memref<1x128xf32, #tpu.memory_space<vmem>>, %arg9: memref<2x128xf32, #tpu.memory_space<vmem>>) attributes {dimension_semantics = [], scalar_prefetch = 0 : i64, scratch_operands = 0 : i64, tpu.core_type = #tpu.core_type<tc>} {
    %c0 = arith.constant 0 : index
    %c0_0 = arith.constant 0 : index
    %0 = vector.load %arg0[%c0, %c0_0] : memref<2x768xf32, #tpu.memory_space<vmem>>, vector<2x768xf32>
    %1 = arith.truncf %0 : vector<2x768xf32> to vector<2x768xbf16>
    %c0_1 = arith.constant 0 : index
    %c0_2 = arith.constant 0 : index
    %2 = vector.load %arg3[%c0_1, %c0_2] : memref<768x768xbf16, #tpu.memory_space<vmem>>, vector<768x768xbf16>
    %cst = arith.constant dense<0.000000e+00> : vector<2x768xf32>
    %3 = tpu.matmul %1, %2, %cst {dimension_numbers = #tpu.dot_dimension_numbers<[1], [0], [0], [1], [0, 0, 1, 1], [], []>} : vector<2x768xbf16>, vector<768x768xbf16>, vector<2x768xf32> -> vector<2x768xf32>
    %c0_3 = arith.constant 0 : index
    %c0_4 = arith.constant 0 : index
    %4 = vector.load %arg4[%c0_3, %c0_4] : memref<1x768xf32, #tpu.memory_space<vmem>>, vector<1x768xf32>
    %c0_5 = arith.constant 0 : index
    %c0_6 = arith.constant 0 : index
    %5 = vector.load %arg1[%c0_5, %c0_6] : memref<2x1xf32, #tpu.memory_space<vmem>>, vector<2x1xf32>
    %6 = vector.broadcast %4 : vector<1x768xf32> to vector<2x768xf32>
    %7 = vector.broadcast %5 : vector<2x1xf32> to vector<2x768xf32>
    %8 = arith.mulf %6, %7 : vector<2x768xf32>
    %9 = arith.addf %3, %8 : vector<2x768xf32>
    %c0_7 = arith.constant 0 : index
    %c0_8 = arith.constant 0 : index
    %10 = vector.load %arg2[%c0_7, %c0_8] : memref<2x768xf32, #tpu.memory_space<vmem>>, vector<2x768xf32>
    %11 = arith.addf %9, %10 : vector<2x768xf32>
    %12 = arith.truncf %11 : vector<2x768xf32> to vector<2x768xbf16>
    %c0_9 = arith.constant 0 : index
    %c0_10 = arith.constant 0 : index
    %13 = vector.load %arg5[%c0_9, %c0_10] : memref<768x768xbf16, #tpu.memory_space<vmem>>, vector<768x768xbf16>
    %cst_11 = arith.constant dense<0.000000e+00> : vector<2x768xf32>
    %14 = tpu.matmul %12, %13, %cst_11 {dimension_numbers = #tpu.dot_dimension_numbers<[1], [0], [0], [1], [0, 0, 1, 1], [], []>} : vector<2x768xbf16>, vector<768x768xbf16>, vector<2x768xf32> -> vector<2x768xf32>
    %c0_12 = arith.constant 0 : index
    %c0_13 = arith.constant 0 : index
    %15 = vector.load %arg6[%c0_12, %c0_13] : memref<1x768xf32, #tpu.memory_space<vmem>>, vector<1x768xf32>
    %16 = vector.broadcast %15 : vector<1x768xf32> to vector<2x768xf32>
    %17 = arith.addf %14, %16 : vector<2x768xf32>
    %18 = math.tanh %17 : vector<2x768xf32>
    %19 = arith.truncf %18 : vector<2x768xf32> to vector<2x768xbf16>
    %c0_14 = arith.constant 0 : index
    %c0_15 = arith.constant 0 : index
    %20 = vector.load %arg7[%c0_14, %c0_15] : memref<768x128xbf16, #tpu.memory_space<vmem>>, vector<768x128xbf16>
    %cst_16 = arith.constant dense<0.000000e+00> : vector<2x128xf32>
    %21 = tpu.matmul %19, %20, %cst_16 {dimension_numbers = #tpu.dot_dimension_numbers<[1], [0], [0], [1], [0, 0, 1, 1], [], []>} : vector<2x768xbf16>, vector<768x128xbf16>, vector<2x128xf32> -> vector<2x128xf32>
    %c0_17 = arith.constant 0 : index
    %c0_18 = arith.constant 0 : index
    %22 = vector.load %arg8[%c0_17, %c0_18] : memref<1x128xf32, #tpu.memory_space<vmem>>, vector<1x128xf32>
    %23 = vector.broadcast %22 : vector<1x128xf32> to vector<2x128xf32>
    %24 = arith.addf %21, %23 : vector<2x128xf32>
    %25 = tpu.iota {dimensions = array<i32: 1>} : vector<2x128xi32>
    %c2_i32 = arith.constant 2 : i32
    %26 = vector.broadcast %c2_i32 : i32 to vector<2x128xi32>
    %27 = arith.cmpi slt, %25, %26 : vector<2x128xi32>
    %cst_19 = arith.constant -1.000000e+30 : f32
    %28 = vector.broadcast %cst_19 : f32 to vector<2x128xf32>
    %29 = arith.select %27, %24, %28 : vector<2x128xi1>, vector<2x128xf32>
    %cst_20 = arith.constant dense<0xFF800000> : vector<2xf32>
    %30 = vector.multi_reduction <maximumf>, %29, %cst_20 [1] : vector<2x128xf32> to vector<2xf32>
    %31 = vector.shape_cast %30 : vector<2xf32> to vector<2x1xf32>
    %32 = vector.broadcast %31 : vector<2x1xf32> to vector<2x128xf32>
    %33 = arith.subf %29, %32 : vector<2x128xf32>
    %34 = math.exp %33 : vector<2x128xf32>
    %cst_21 = arith.constant dense<0.000000e+00> : vector<2xf32>
    %35 = vector.multi_reduction <add>, %34, %cst_21 [1] : vector<2x128xf32> to vector<2xf32>
    %36 = vector.shape_cast %35 : vector<2xf32> to vector<2x1xf32>
    %37 = vector.broadcast %36 : vector<2x1xf32> to vector<2x128xf32>
    %38 = arith.divf %34, %37 : vector<2x128xf32>
    %c0_22 = arith.constant 0 : index
    %c0_23 = arith.constant 0 : index
    %39 = vector.load %arg9[%c0_22, %c0_23] : memref<2x128xf32, #tpu.memory_space<vmem>>, vector<2x128xf32>
    tpu.vector_store %arg9[%c0_22, %c0_23], %38 {strides = array<i32>} : memref<2x128xf32, #tpu.memory_space<vmem>>, vector<2x128xf32>,
    return
  }
}

</mosaic_0001>

<bundles_post_ra>
// kernel: forward.2
= control target key start
LH: loop header
LB: loop body
LE: loop exit
PB: predicated region body
PF: predicated region fallthrough
CT: control target
= control target key end

     0   :  { %s487_s9 = smov 0   ;;  %s489_s10 = smov 0   ;;  %s538_s0 = inlined_call_operand.vmem [shape: bf16[2,8,768], index: 0, kind: input, shape index: {}]   ;;  %s539_s1 = inlined_call_operand.vmem [shape: f32[2,8,1], index: 1, kind: input, shape index: {}]   ;;  %s540_s2 = inlined_call_operand.vmem [shape: f32[2,1,768], index: 2, kind: output, shape index: {}]  }
   0x1   :  { %s491_s11 = smov 0  }
   0x2 LB: > { %s24_s12 = sadd.s32 1, %s463_s10  ;;  %p410_p0 = scmp.ge.s32.totalorder %s467_s11, 1  ;;  %s467_s11 = sphi %s491_s11, %s12_s11   ;;  %s463_s10 = sphi %s489_s10, %s544_s10   ;;  %s459_s9 = sphi %s487_s9, %s543_s9  }
   0x3   : > { %p26_p1 = scmp.ge.s32.totalorder %s24_s12, 2  ;;  %p144_p2 = scmp.lt.s32.totalorder %s467_s11, 3 }
   0x5   : > { %s546_s12 = smov (%p26_p1, %s24_s12), 0  ;;  %p145_p3 = pnand %p410_p0, %p144_p2 }
   0x6   : > { %p176_p4 = scmp.lt.s32.totalorder (!%p145_p3), %s459_s9, 1 }
   0x7   : > { %148 = sbr.rel (%p145_p3) target bundleno = 175 (0xaf), region = 28 }
   0xc   : > { %v200_v0 = vlaneseq  ;;  %v469_v1 = vmov 0   ;;  %s548_s9 = smov (!%p176_p4, %s459_s9), 1  ;;  %v470_v3 = vmov 0.0   ;;  %v471_v25 = vmov 1966171168  }
   0xd   : > { %444 = vset.pattern.permute.xlu0 %v469_v1  ;;  %s412_s13 = sshll.u32 %s548_s9, 3  ;;  %s415_s17 = smul.u32 24, %s548_s9  ;;  %v273_v26 = vunpack.c.l.s4 %v471_v25 }
   0xe   : > { %vm507_vm0 = vcmp.lt.s32.totalorder %v200_v0, 768  ;;  %s191_s16 = scalar_lea.vmem %s539_s1, %s412_s13  ;;  %v276_v40 = vshrl.u32 %v200_v0, 7  ;;  %s416_s21 = smul.u32 6, %s548_s9 }
   0xf   : > { %204 = vst.msk [vmem:[#allocation2] sm:$0x3f] %vm507_vm0, %v470_v3  ;;  %v215_v4 = vld [vmem:[%s191_s16] sm:$0xff]  ;;  %s184_s20 = scalar_lea.vmem %s538_s0, %s415_s17  ;;  %v274_v39 = vunpack.c.0.s8 %v273_v26 }
  0x10   : > { %218 = vperm.xlu0 %444, %v215_v4   ;;  %v205_v5 = vld [vmem:[%s184_s20] sm:$0xff]  ;;  %v206_v6 = vld [vmem:[%s184_s20 + $0x8] sm:$0xff]  ;;  %v207_v7 = vld [vmem:[%s184_s20 + $0x10] sm:$0xff]  ;;  %s195_s24 = scalar_lea.vmem %s540_s2, %s416_s21 }
  0x11   : > { %v208_v8 = vunpack.c.l.bf16 %v205_v5  ;;  %v209_v9 = vunpack.c.h.bf16 %v205_v5  ;;  %v210_v10 = vunpack.c.l.bf16 %v206_v6  ;;  %v211_v11 = vunpack.c.h.bf16 %v206_v6 }
  0x12   : > { %v212_v12 = vunpack.c.l.bf16 %v207_v7  ;;  %v213_v13 = vunpack.c.h.bf16 %v207_v7  ;;  %v277_v53 = vsub.s32 %v274_v39, %v276_v40 }
  0x8b   : > { %v219_v14 = vpop.permute.xlu0 %218 }
  0x8c   : > { %v221_v15 = vmul.f32 %v219_v14, %v208_v8  ;;  %v222_v16 = vmul.f32 %v219_v14, %v209_v9  ;;  %v223_v17 = vmul.f32 %v219_v14, %v210_v10  ;;  %v224_v18 = vmul.f32 %v219_v14, %v211_v11  ;;  %v214_v8 = vld [vmem:[#allocation2] sm:$0x3f] }
  0x8d   : > { %v225_v19 = vmul.f32 %v219_v14, %v212_v12  ;;  %v226_v20 = vmul.f32 %v219_v14, %v213_v13 }
  0x8e   : > { %v227_v21 = vrot.slane %v221_v15, 4  ;;  %v233_v22 = vrot.slane %v222_v16, 4  ;;  %v239_v23 = vrot.slane %v223_v17, 4  ;;  %v245_v24 = vrot.slane %v224_v18, 4 }
  0x8f   : > { %v251_v27 = vrot.slane %v225_v19, 4  ;;  %v257_v28 = vrot.slane %v226_v20, 4 }
  0x90   : > { %v228_v29 = vadd.f32 %v227_v21, %v221_v15  ;;  %v234_v30 = vadd.f32 %v233_v22, %v222_v16  ;;  %v240_v31 = vadd.f32 %v239_v23, %v223_v17  ;;  %v246_v32 = vadd.f32 %v245_v24, %v224_v18 }
  0x91   : > { %v252_v33 = vadd.f32 %v251_v27, %v225_v19  ;;  %v258_v34 = vadd.f32 %v257_v28, %v226_v20 }
  0x92   : > { %v229_v35 = vrot.slane %v228_v29, 2  ;;  %v235_v36 = vrot.slane %v234_v30, 2  ;;  %v241_v37 = vrot.slane %v240_v31, 2  ;;  %v247_v38 = vrot.slane %v246_v32, 2 }
  0x93   : > { %v253_v41 = vrot.slane %v252_v33, 2  ;;  %v259_v42 = vrot.slane %v258_v34, 2 }
  0x94   : > { %v230_v43 = vadd.f32 %v229_v35, %v228_v29  ;;  %v236_v44 = vadd.f32 %v235_v36, %v234_v30  ;;  %v242_v45 = vadd.f32 %v241_v37, %v240_v31  ;;  %v248_v46 = vadd.f32 %v247_v38, %v246_v32 }
  0x95   : > { %v254_v47 = vadd.f32 %v253_v41, %v252_v33  ;;  %v260_v48 = vadd.f32 %v259_v42, %v258_v34 }
  0x96   : > { %v231_v49 = vrot.slane %v230_v43, 1  ;;  %v237_v50 = vrot.slane %v236_v44, 1  ;;  %v243_v51 = vrot.slane %v242_v45, 1  ;;  %v249_v52 = vrot.slane %v248_v46, 1 }
  0x97   : > { %v255_v54 = vrot.slane %v254_v47, 1  ;;  %v261_v55 = vrot.slane %v260_v48, 1 }
  0x98   : > { %v232_v56 = vadd.f32 %v231_v49, %v230_v43  ;;  %v238_v57 = vadd.f32 %v237_v50, %v236_v44  ;;  %v244_v58 = vadd.f32 %v243_v51, %v242_v45  ;;  %v250_v59 = vadd.f32 %v249_v52, %v248_v46 }
  0x99   : > { %v256_v60 = vadd.f32 %v255_v54, %v254_v47  ;;  %v262_v61 = vadd.f32 %v261_v55, %v260_v48 }
  0x9a   : > { %v269_v62 = vcombine.low %v232_v56, %v238_v57  ;;  %v270_v63 = vcombine.low %v244_v58, %v250_v59 }
  0x9b   : > { %v271_v0 = vcombine.low %v256_v60, %v262_v61 }
  0x9c   : > { %v278_v1 = vrot.slane %v269_v62, %v277_v53  ;;  %v285_v3 = vrot.slane %v270_v63, %v277_v53 }
  0x9d   : > { %v292_v4 = vrot.slane %v271_v0, %v277_v53 }
  0x9e   : > { %v293_v5 = vcombine.low %v278_v1, %v285_v3 }
  0x9f   : > { %v307_v6 = vrot.slane %v292_v4, %v277_v53 }
  0xa0   : > { %v300_v7 = vrot.slane %v293_v5, %v277_v53 }
  0xa2   : > { %v308_v9 = vcombine.low %v300_v7, %v307_v6 }
  0xa4   : > { %v310_v10 = vadd.f32 %v308_v9, %v214_v8 }
  0xa6   : > { %315 = vst.msk [vmem:[#allocation2] sm:$0x3f] %vm507_vm0, %v310_v10 }
  0xad   : > { %v319_v11 = vld [vmem:[#allocation2] sm:$0x3f] }
  0xae   : > { %320 = vst.msk [vmem:[%s195_s24] sm:$0x3f] %vm507_vm0, %v319_v11 }
  0xaf PF: > { %s12_s11 = sadd.s32 1, %s467_s11   ;;  %s543_s9 = smov %s463_s10 }
  0xb0   : > { %p9_p5 = scmp.ge.s32.totalorder %s12_s11, 4   ;;  %s544_s10 = smov %s546_s12 }
  0xb2   :  { %11 = sbr.rel (!%p9_p5) target bundleno = 2 (0x2), region = 69 }

// kernel: forward.3
= control target key start
LH: loop header
LB: loop body
LE: loop exit
PB: predicated region body
PF: predicated region fallthrough
CT: control target
= control target key end

     0   :  { %v6595_v7 = vmov 0   ;;  %v6596_v36 = vmov 1983009808   ;;  %v42_v38 = vlaneseq  ;;  %s8737_s0 = inlined_call_operand.vmem [shape: f32[2,768], index: 0, kind: input, shape index: {}]   ;;  %s8738_s1 = inlined_call_operand.vmem [shape: f32[2,1], index: 1, kind: input, shape index: {}]   ;;  %s8739_s2 = inlined_call_operand.vmem [shape: f32[2,768], index: 2, kind: input, shape index: {}]   ;;  %s8740_s3 = inlined_call_operand.vmem [shape: bf16[768,768], index: 3, kind: input, shape index: {}]   ;;  %s8741_s4 = inlined_call_operand.vmem [shape: f32[1,768], index: 4, kind: input, shape index: {}]   ;;  %s8742_s5 = inlined_call_operand.vmem [shape: bf16[768,768], index: 5, kind: input, shape index: {}]   ;;  %s8743_s6 = inlined_call_operand.vmem [shape: f32[1,768], index: 6, kind: input, shape index: {}]   ;;  %s8744_s7 = inlined_call_operand.vmem [shape: bf16[768,128], index: 7, kind: input, shape index: {}]   ;;  %s8745_s8 = inlined_call_operand.vmem [shape: f32[1,128], index: 8, kind: input, shape index: {}]   ;;  %s8746_s9 = inlined_call_operand.hbm [shape: f32[2,128], index: 9, kind: output, shape index: {}]  }
   0x1   :  { %v5643_v0 = vld [vmem:[%s8740_s3 + $0x154] ss:$24 sps:$4 sm:$0xff]   ;;  %v5645_v1 = vld [vmem:[%s8740_s3 + $0x150] ss:$24 sps:$4 sm:$0xff]   ;;  %v5649_v4 = vld [vmem:[%s8740_s3 + $0x124] ss:$24 sps:$4 sm:$0xff]   ;;  %5642 = vset.pattern.permute.xlu0 %v6595_v7  ;;  %v40_v37 = vunpack.c.l.s4 %v6596_v36 }
   0x2   :  { %1847 = vmatprep.subr.bf16.mxu0 %v5643_v0  ;;  %v5646_v2 = vld [vmem:[%s8740_s3 + $0x454] ss:$24 sps:$4 sm:$0xff]   ;;  %v5648_v3 = vld [vmem:[%s8740_s3 + $0x450] ss:$24 sps:$4 sm:$0xff]   ;;  %v5651_v5 = vld [vmem:[%s8740_s3 + $0x120] ss:$24 sps:$4 sm:$0xff]  }
   0x3   :  { %1848 = vmatpush1.bf16.msra.mxu0 %v5645_v1  ;;  %1888 = vmatprep.subr.bf16.mxu1 %v5646_v2  ;;  %v5652_v6 = vld [vmem:[%s8740_s3 + $0x424] ss:$24 sps:$4 sm:$0xff]   ;;  %v5654_v8 = vld [vmem:[%s8740_s3 + $0x420] ss:$24 sps:$4 sm:$0xff]   ;;  %v5655_v9 = vld [vmem:[%s8740_s3 + $0xf4] ss:$24 sps:$4 sm:$0xff]   ;;  %v41_v43 = vunpack.c.0.s8 %v40_v37 }
   0x4   :  { %1889 = vmatpush1.bf16.msra.mxu1 %v5648_v3  ;;  %1849 = vmatprep.subr.bf16.mxu0 %v5649_v4  ;;  %v5657_v10 = vld [vmem:[%s8740_s3 + $0xf0] ss:$24 sps:$4 sm:$0xff]   ;;  %v5658_v11 = vld [vmem:[%s8740_s3 + $0x3f4] ss:$24 sps:$4 sm:$0xff]   ;;  %v5661_v12 = vld [vmem:[%s8740_s3 + $0xc4] ss:$24 sps:$4 sm:$0xff]  }
   0x5   :  { %1890 = vmatprep.subr.bf16.mxu1 %v5652_v6  ;;  %v5660_v13 = vld [vmem:[%s8740_s3 + $0x3f0] ss:$24 sps:$4 sm:$0xff]   ;;  %v5664_v14 = vld [vmem:[%s8740_s3 + $0x3c4] ss:$24 sps:$4 sm:$0xff]   ;;  %v5663_v15 = vld [vmem:[%s8740_s3 + $0xc0] ss:$24 sps:$4 sm:$0xff]  }
   0x6   :  { %v5667_v16 = vld [vmem:[%s8740_s3 + $0x94] ss:$24 sps:$4 sm:$0xff]   ;;  %v5666_v17 = vld [vmem:[%s8740_s3 + $0x3c0] ss:$24 sps:$4 sm:$0xff]   ;;  %v5669_v19 = vld [vmem:[%s8740_s3 + $0x90] ss:$24 sps:$4 sm:$0xff]  }
   0x7   :  { %1850 = vmatpush1.bf16.msra.mxu0 %v5651_v5  ;;  %v5670_v18 = vld [vmem:[%s8740_s3 + $0x394] ss:$24 sps:$4 sm:$0xff]   ;;  %v5673_v20 = vld [vmem:[%s8740_s3 + $0x64] ss:$24 sps:$4 sm:$0xff]   ;;  %v5672_v21 = vld [vmem:[%s8740_s3 + $0x390] ss:$24 sps:$4 sm:$0xff]  }
   0x8   :  { %1851 = vmatprep.subr.bf16.mxu0 %v5655_v9  ;;  %1891 = vmatpush1.bf16.msra.mxu1 %v5654_v8  ;;  %v5676_v22 = vld [vmem:[%s8740_s3 + $0x364] ss:$24 sps:$4 sm:$0xff]   ;;  %v5675_v23 = vld [vmem:[%s8740_s3 + $0x60] ss:$24 sps:$4 sm:$0xff]   ;;  %v5679_v24 = vld [vmem:[%s8740_s3 + $0x34] ss:$24 sps:$4 sm:$0xff]  }
   0x9   :  { %1892 = vmatprep.subr.bf16.mxu1 %v5658_v11  ;;  %v5678_v25 = vld [vmem:[%s8740_s3 + $0x360] ss:$24 sps:$4 sm:$0xff]   ;;  %v5682_v26 = vld [vmem:[%s8740_s3 + $0x334] ss:$24 sps:$4 sm:$0xff]   ;;  %v5681_v27 = vld [vmem:[%s8740_s3 + $0x30] ss:$24 sps:$4 sm:$0xff]  }
   0xa   :  { %v5685_v28 = vld [vmem:[%s8740_s3 + $0x4] ss:$24 sps:$4 sm:$0xff]   ;;  %v5684_v29 = vld [vmem:[%s8740_s3 + $0x330] ss:$24 sps:$4 sm:$0xff]   ;;  %v5687_v31 = vld [vmem:[%s8740_s3] ss:$24 sps:$4 sm:$0xff]  }
   0xb   :  { %1852 = vmatpush1.bf16.msra.mxu0 %v5657_v10  ;;  %v5688_v30 = vld [vmem:[%s8740_s3 + $0x304] ss:$24 sps:$4 sm:$0xff]   ;;  %v5691_v32 = vld [vmem:[%s8740_s3 + $0x2d4] ss:$24 sps:$4 sm:$0xff]   ;;  %v5690_v33 = vld [vmem:[%s8740_s3 + $0x300] ss:$24 sps:$4 sm:$0xff]  }
   0xc   :  { %1853 = vmatprep.subr.bf16.mxu0 %v5661_v12  ;;  %1893 = vmatpush1.bf16.msra.mxu1 %v5660_v13  ;;  %v5694_v34 = vld [vmem:[%s8740_s3 + $0x5d4] ss:$24 sps:$4 sm:$0xff]   ;;  %v5693_v35 = vld [vmem:[%s8740_s3 + $0x2d0] ss:$24 sps:$4 sm:$0xff]   ;;  %v5697_v39 = vld [vmem:[%s8740_s3 + $0x2a4] ss:$24 sps:$4 sm:$0xff]  }
   0xd   :  { %1894 = vmatprep.subr.bf16.mxu1 %v5664_v14  ;;  %v5696_v40 = vld [vmem:[%s8740_s3 + $0x5d0] ss:$24 sps:$4 sm:$0xff]   ;;  %v5700_v41 = vld [vmem:[%s8740_s3 + $0x5a4] ss:$24 sps:$4 sm:$0xff]   ;;  %v5699_v42 = vld [vmem:[%s8740_s3 + $0x2a0] ss:$24 sps:$4 sm:$0xff]  }
   0xe   :  { %v6766_v44 = vshrl.u32 %v42_v38, 7  ;;  %v5703_v45 = vld [vmem:[%s8740_s3 + $0x274] ss:$24 sps:$4 sm:$0xff]   ;;  %v5702_v46 = vld [vmem:[%s8740_s3 + $0x5a0] ss:$24 sps:$4 sm:$0xff]  }
   0xf   :  { %1854 = vmatpush1.bf16.msra.mxu0 %v5663_v15  ;;  %v5706_v47 = vld [vmem:[%s8740_s3 + $0x574] ss:$24 sps:$4 sm:$0xff]   ;;  %v5705_v48 = vld [vmem:[%s8740_s3 + $0x270] ss:$24 sps:$4 sm:$0xff]   ;;  %v5709_v50 = vld [vmem:[%s8740_s3 + $0x244] ss:$24 sps:$4 sm:$0xff]  }
  0x10   :  { %1855 = vmatprep.subr.bf16.mxu0 %v5667_v16  ;;  %1895 = vmatpush1.bf16.msra.mxu1 %v5666_v17  ;;  %v6781_v49 = vsub.s32 %v41_v43, %v6766_v44  ;;  %v5708_v51 = vld [vmem:[%s8740_s3 + $0x570] ss:$24 sps:$4 sm:$0xff]   ;;  %v5712_v52 = vld [vmem:[%s8740_s3 + $0x544] ss:$24 sps:$4 sm:$0xff]   ;;  %v5711_v54 = vld [vmem:[%s8740_s3 + $0x240] ss:$24 sps:$4 sm:$0xff]  }
  0x11   :  { %1896 = vmatprep.subr.bf16.mxu1 %v5670_v18  ;;  %v34_v53 = vld [vmem:[%s8737_s0] sm:$0xff]  ;;  %v5715_v57 = vld [vmem:[%s8740_s3 + $0x214] ss:$24 sps:$4 sm:$0xff]   ;;  %v5717_v62 = vld [vmem:[%s8740_s3 + $0x210] ss:$24 sps:$4 sm:$0xff]  }
  0x12   :  { %v45_v55 = vrot.slane %v34_v53, %v6781_v49  ;;  %v38_v56 = vcombine.high %v34_v53, %v34_v53  ;;  %v5714_v58 = vld [vmem:[%s8740_s3 + $0x540] ss:$24 sps:$4 sm:$0xff]   ;;  %v5718_v61 = vld [vmem:[%s8740_s3 + $0x514] ss:$24 sps:$4 sm:$0xff]   ;;  %v5721_v1 = vld [vmem:[%s8740_s3 + $0x1e4] ss:$24 sps:$4 sm:$0xff]  }
  0x13   :  { %1856 = vmatpush1.bf16.msra.mxu0 %v5669_v19  ;;  %v5720_v2 = vld [vmem:[%s8740_s3 + $0x510] ss:$24 sps:$4 sm:$0xff]   ;;  %v5724_v4 = vld [vmem:[%s8740_s3 + $0x4e4] ss:$24 sps:$4 sm:$0xff]   ;;  %v5723_v5 = vld [vmem:[%s8740_s3 + $0x1e0] ss:$24 sps:$4 sm:$0xff]  }
  0x14   :  { %1857 = vmatprep.subr.bf16.mxu0 %v5673_v20  ;;  %1897 = vmatpush1.bf16.msra.mxu1 %v5672_v21  ;;  %v53_v59 = vcombine.high %v45_v55, %v45_v55  ;;  %v52_v60 = vrot.slane %v38_v56, %v6781_v49  ;;  %v5727_v6 = vld [vmem:[%s8740_s3 + $0x1b4] ss:$24 sps:$4 sm:$0xff]   ;;  %v5726_v7 = vld [vmem:[%s8740_s3 + $0x4e0] ss:$24 sps:$4 sm:$0xff]   ;;  %v5729_v9 = vld [vmem:[%s8740_s3 + $0x1b0] ss:$24 sps:$4 sm:$0xff]   ;;  %v6860_v16 = vpack.c.bf16 %v45_v55, %v45_v55 }
  0x15   :  { %1898 = vmatprep.subr.bf16.mxu1 %v5676_v22  ;;  %v5730_v8 = vld [vmem:[%s8740_s3 + $0x4b4] ss:$24 sps:$4 sm:$0xff]   ;;  %v5733_v10 = vld [vmem:[%s8740_s3 + $0x184] ss:$24 sps:$4 sm:$0xff]   ;;  %v5732_v11 = vld [vmem:[%s8740_s3 + $0x4b0] ss:$24 sps:$4 sm:$0xff]  }
  0x16   :  { %v6812_v63 = vpack.c.bf16 %v53_v59, %v53_v59  ;;  %v54_v0 = vcombine.high %v52_v60, %v52_v60  ;;  %v5736_v12 = vld [vmem:[%s8740_s3 + $0x484] ss:$24 sps:$4 sm:$0xff]   ;;  %v5735_v13 = vld [vmem:[%s8740_s3 + $0x180] ss:$24 sps:$4 sm:$0xff]   ;;  %v5741_v14 = vld [vmem:[%s8740_s3 + $0x754] ss:$24 sps:$4 sm:$0xff]   ;;  %v6868_v19 = vpack.c.bf16 %v52_v60, %v52_v60 }
  0x17   :  { %1858 = vmatpush1.bf16.msra.mxu0 %v5675_v23  ;;  %v5738_v15 = vld [vmem:[%s8740_s3 + $0x480] ss:$24 sps:$4 sm:$0xff]   ;;  %v5745_v17 = vld [vmem:[%s8740_s3 + $0x15c] ss:$24 sps:$4 sm:$0xff]   ;;  %v5739_v18 = vld [vmem:[%s8740_s3 + $0x750] ss:$24 sps:$4 sm:$0xff]  }
  0x18   :  { %1859 = vmatprep.subr.bf16.mxu0 %v5679_v24  ;;  %1899 = vmatpush1.bf16.msra.mxu1 %v5678_v25  ;;  %v6821_v3 = vpack.c.bf16 %v54_v0, %v54_v0  ;;  %v5748_v20 = vld [vmem:[%s8740_s3 + $0x724] ss:$24 sps:$4 sm:$0xff]   ;;  %v5743_v21 = vld [vmem:[%s8740_s3 + $0x158] ss:$24 sps:$4 sm:$0xff]   ;;  %v5754_v24 = vld [vmem:[%s8740_s3 + $0x6f4] ss:$24 sps:$4 sm:$0xff]  }
  0x19   :  { %1900 = vmatprep.subr.bf16.mxu1 %v5682_v26  ;;  %1879 = vmatprep.mubr.bf16.mxu0 %v6812_v63  ;;  %v5751_v22 = vld [vmem:[%s8740_s3 + $0x12c] ss:$24 sps:$4 sm:$0xff]   ;;  %v5746_v23 = vld [vmem:[%s8740_s3 + $0x720] ss:$24 sps:$4 sm:$0xff]   ;;  %v5757_v26 = vld [vmem:[%s8740_s3 + $0xfc] ss:$24 sps:$4 sm:$0xff]  }
  0x1a   :  { %1920 = vmatprep.mubr.bf16.mxu1 %v6821_v3  ;;  %v5749_v25 = vld [vmem:[%s8740_s3 + $0x128] ss:$24 sps:$4 sm:$0xff]   ;;  %v5772_v36 = vld [vmem:[%s8740_s3 + $0x664] ss:$24 sps:$4 sm:$0xff]   ;;  %v5767_v37 = vld [vmem:[%s8740_s3 + $0x98] ss:$24 sps:$4 sm:$0xff]  }
  0x1b   :  { %1860 = vmatpush1.bf16.msra.mxu0 %v5681_v27  ;;  %v5752_v27 = vld [vmem:[%s8740_s3 + $0x6f0] ss:$24 sps:$4 sm:$0xff]   ;;  %v5781_v43 = vld [vmem:[%s8740_s3 + $0x3c] ss:$24 sps:$4 sm:$0xff]   ;;  %v5787_v53 = vld [vmem:[%s8740_s3 + $0xc] ss:$24 sps:$4 sm:$0xff]  }
  0x1c   :  { %1861 = vmatprep.subr.bf16.mxu0 %v5685_v28  ;;  %1901 = vmatpush1.bf16.msra.mxu1 %v5684_v29  ;;  %v5760_v28 = vld [vmem:[%s8740_s3 + $0x6c4] ss:$24 sps:$4 sm:$0xff]   ;;  %v5755_v29 = vld [vmem:[%s8740_s3 + $0xf8] ss:$24 sps:$4 sm:$0xff]   ;;  %v5790_v55 = vld [vmem:[%s8740_s3 + $0x8d4] ss:$24 sps:$4 sm:$0xff]  }
  0x1d   :  { %1902 = vmatprep.subr.bf16.mxu1 %v5688_v30  ;;  %v5763_v30 = vld [vmem:[%s8740_s3 + $0xcc] ss:$24 sps:$4 sm:$0xff]   ;;  %v5785_v56 = vld [vmem:[%s8740_s3 + $0x8] ss:$24 sps:$4 sm:$0xff]   ;;  %v5791_v60 = vld [vmem:[%s8740_s3 + $0x2d8] ss:$24 sps:$4 sm:$0xff]  }
  0x1e   :  { %v5796_v59 = vld [vmem:[%s8740_s3 + $0x8a4] ss:$24 sps:$4 sm:$0xff]   ;;  %v5802_v0 = vld [vmem:[%s8740_s3 + $0x874] ss:$24 sps:$4 sm:$0xff]  }
  0x1f   :  { %1862 = vmatpush1.bf16.msra.mxu0 %v5687_v31  ;;  %v5758_v31 = vld [vmem:[%s8740_s3 + $0x6c0] ss:$24 sps:$4 sm:$0xff]  }
  0x20   :  { %1863 = vmatprep.subr.bf16.mxu0 %v5691_v32  ;;  %1903 = vmatpush1.bf16.msra.mxu1 %v5690_v33  ;;  %v5766_v32 = vld [vmem:[%s8740_s3 + $0x694] ss:$24 sps:$4 sm:$0xff]   ;;  %v5761_v33 = vld [vmem:[%s8740_s3 + $0xc8] ss:$24 sps:$4 sm:$0xff]  }
  0x21   :  { %1904 = vmatprep.subr.bf16.mxu1 %v5694_v34  ;;  %v5769_v34 = vld [vmem:[%s8740_s3 + $0x9c] ss:$24 sps:$4 sm:$0xff]  }
  0x23   :  { %1864 = vmatpush2.bf16.msra.mxu0 %v5693_v35  ;;  %v5764_v35 = vld [vmem:[%s8740_s3 + $0x690] ss:$24 sps:$4 sm:$0xff]  }
  0x24   :  { %1865 = vmatprep.subr.bf16.mxu0 %v5697_v39  ;;  %1905 = vmatpush2.bf16.msra.mxu1 %v5696_v40  ;;  %v5775_v39 = vld [vmem:[%s8740_s3 + $0x6c] ss:$24 sps:$4 sm:$0xff]   ;;  %v5770_v40 = vld [vmem:[%s8740_s3 + $0x660] ss:$24 sps:$4 sm:$0xff]  }
  0x25   :  { %1906 = vmatprep.subr.bf16.mxu1 %v5700_v41  ;;  %v5778_v41 = vld [vmem:[%s8740_s3 + $0x634] ss:$24 sps:$4 sm:$0xff]  }
  0x27   :  { %1866 = vmatpush2.bf16.msra.mxu0 %v5699_v42  ;;  %v5773_v42 = vld [vmem:[%s8740_s3 + $0x68] ss:$24 sps:$4 sm:$0xff]  }
  0x28   :  { %1867 = vmatprep.subr.bf16.mxu0 %v5703_v45  ;;  %1907 = vmatpush2.bf16.msra.mxu1 %v5702_v46  ;;  %v6945_v45 = vld.sshfl [vmem:[%s8737_s0 + $0x8] sm:$0x33 pattern:$0x76325410] }
  0x29   :  { %1908 = vmatprep.subr.bf16.mxu1 %v5706_v47  ;;  %v5776_v46 = vld [vmem:[%s8740_s3 + $0x630] ss:$24 sps:$4 sm:$0xff]   ;;  %v62_v47 = vcombine.high %v6945_v45, %v6945_v45 }
  0x2b   :  { %1868 = vmatpush2.bf16.msra.mxu0 %v5705_v48  ;;  %v5784_v48 = vld [vmem:[%s8740_s3 + $0x604] ss:$24 sps:$4 sm:$0xff]  }
  0x2c   :  { %1869 = vmatprep.subr.bf16.mxu0 %v5709_v50  ;;  %1909 = vmatpush2.bf16.msra.mxu1 %v5708_v51  ;;  %v364_v50 = vld [vmem:[%s8738_s1] sm:$0x3]  ;;  %v5779_v51 = vld [vmem:[%s8740_s3 + $0x38] ss:$24 sps:$4 sm:$0xff]  }
  0x2d   :  { %1910 = vmatprep.subr.bf16.mxu1 %v5712_v52  ;;  %v6961_v52 = vpack.c.bf16 %v62_v47, %v62_v47  ;;  %398 = vperm.xlu0 %5642, %v364_v50   ;;  %v5857_v47 = vld [vmem:[%s8740_s3 + $0x6c8] ss:$24 sps:$4 sm:$0xff]   ;;  %v5860_v50 = vld [vmem:[%s8740_s3 + $0x398] ss:$24 sps:$4 sm:$0xff]  }
  0x2f   :  { %1870 = vmatpush2.bf16.msra.mxu0 %v5711_v54  ;;  %v5782_v54 = vld [vmem:[%s8740_s3 + $0x600] ss:$24 sps:$4 sm:$0xff]  }
  0x30   :  { %1871 = vmatprep.subr.bf16.mxu0 %v5715_v57  ;;  %1911 = vmatpush2.bf16.msra.mxu1 %v5714_v58  ;;  %v5793_v57 = vld [vmem:[%s8740_s3 + $0x2dc] ss:$24 sps:$4 sm:$0xff]   ;;  %v5788_v58 = vld [vmem:[%s8740_s3 + $0x8d0] ss:$24 sps:$4 sm:$0xff]  }
  0x31   :  { %1912 = vmatprep.subr.bf16.mxu1 %v5718_v61  ;;  %v5799_v61 = vld [vmem:[%s8740_s3 + $0x2ac] ss:$24 sps:$4 sm:$0xff]  }
  0x33   :  { %1872 = vmatpush2.bf16.msra.mxu0 %v5717_v62  ;;  %v5794_v62 = vld [vmem:[%s8740_s3 + $0x8a0] ss:$24 sps:$4 sm:$0xff]  }
  0x34   :  { %1873 = vmatprep.subr.bf16.mxu0 %v5721_v1  ;;  %1913 = vmatpush2.bf16.msra.mxu1 %v5720_v2  ;;  %v5797_v1 = vld [vmem:[%s8740_s3 + $0x2a8] ss:$24 sps:$4 sm:$0xff]   ;;  %v5805_v2 = vld [vmem:[%s8740_s3 + $0x27c] ss:$24 sps:$4 sm:$0xff]  }
  0x35   :  { %1914 = vmatprep.subr.bf16.mxu1 %v5724_v4  ;;  %v5800_v4 = vld [vmem:[%s8740_s3 + $0x870] ss:$24 sps:$4 sm:$0xff]  }
  0x37   :  { %1874 = vmatpush2.bf16.msra.mxu0 %v5723_v5  ;;  %v5808_v5 = vld [vmem:[%s8740_s3 + $0x844] ss:$24 sps:$4 sm:$0xff]  }
  0x38   :  { %1875 = vmatprep.subr.bf16.mxu0 %v5727_v6  ;;  %1915 = vmatpush2.bf16.msra.mxu1 %v5726_v7  ;;  %v5803_v6 = vld [vmem:[%s8740_s3 + $0x278] ss:$24 sps:$4 sm:$0xff]   ;;  %v5811_v7 = vld [vmem:[%s8740_s3 + $0x24c] ss:$24 sps:$4 sm:$0xff]  }
  0x39   :  { %1916 = vmatprep.subr.bf16.mxu1 %v5730_v8  ;;  %v5806_v8 = vld [vmem:[%s8740_s3 + $0x840] ss:$24 sps:$4 sm:$0xff]  }
  0x3b   :  { %1876 = vmatpush2.bf16.msra.mxu0 %v5729_v9  ;;  %v5814_v9 = vld [vmem:[%s8740_s3 + $0x814] ss:$24 sps:$4 sm:$0xff]  }
  0x3c   :  { %1877 = vmatprep.subr.bf16.mxu0 %v5733_v10  ;;  %1917 = vmatpush2.bf16.msra.mxu1 %v5732_v11  ;;  %v5809_v10 = vld [vmem:[%s8740_s3 + $0x248] ss:$24 sps:$4 sm:$0xff]   ;;  %v5817_v11 = vld [vmem:[%s8740_s3 + $0x21c] ss:$24 sps:$4 sm:$0xff]  }
  0x3d   :  { %1918 = vmatprep.subr.bf16.mxu1 %v5736_v12  ;;  %v5812_v12 = vld [vmem:[%s8740_s3 + $0x810] ss:$24 sps:$4 sm:$0xff]  }
  0x3f   :  { %1878 = vmatpush2.bf16.msra.mxu0 %v5735_v13  ;;  %v5820_v13 = vld [vmem:[%s8740_s3 + $0x7e4] ss:$24 sps:$4 sm:$0xff]  }
  0x40   :  { %1929 = vmatprep.subr.bf16.mxu0 %v5741_v14  ;;  %1919 = vmatpush2.bf16.msra.mxu1 %v5738_v15  ;;  %v5815_v14 = vld [vmem:[%s8740_s3 + $0x218] ss:$24 sps:$4 sm:$0xff]   ;;  %v5823_v15 = vld [vmem:[%s8740_s3 + $0x1ec] ss:$24 sps:$4 sm:$0xff]  }
  0x41   :  { %1970 = vmatprep.subr.bf16.mxu1 %v5745_v17  ;;  %v5818_v17 = vld [vmem:[%s8740_s3 + $0x7e0] ss:$24 sps:$4 sm:$0xff]  }
  0x42   :  { %1880 = vmatmul.mubr.bf16.vlgmr.msra.gmra.mxu0 %v6860_v16 }
  0x43   :  { %1930 = vmatpush1.bf16.msra.mxu0 %v5739_v18  ;;  %1921 = vmatmul.mubr.bf16.vlgmr.msra.gmra.mxu1 %v6868_v19  ;;  %v5826_v18 = vld [vmem:[%s8740_s3 + $0x7b4] ss:$24 sps:$4 sm:$0xff]  }
  0x44   :  { %1931 = vmatprep.subr.bf16.mxu0 %v5748_v20  ;;  %1971 = vmatpush1.bf16.msra.mxu1 %v5743_v21  ;;  %v5821_v20 = vld [vmem:[%s8740_s3 + $0x1e8] ss:$24 sps:$4 sm:$0xff]   ;;  %v5829_v21 = vld [vmem:[%s8740_s3 + $0x1bc] ss:$24 sps:$4 sm:$0xff]  }
  0x45   :  { %2002 = vmatprep.mubr.bf16.mxu1 %v6812_v63  ;;  %1972 = vmatprep.subr.bf16.mxu1 %v5751_v22  ;;  %v5824_v22 = vld [vmem:[%s8740_s3 + $0x7b0] ss:$24 sps:$4 sm:$0xff]  }
  0x46   :  { %1961 = vmatprep.mubr.bf16.mxu0 %v6961_v52 }
  0x47   :  { %1932 = vmatpush1.bf16.msra.mxu0 %v5746_v23  ;;  %v5832_v23 = vld [vmem:[%s8740_s3 + $0x784] ss:$24 sps:$4 sm:$0xff]  }
  0x48   :  { %1933 = vmatprep.subr.bf16.mxu0 %v5754_v24  ;;  %1973 = vmatpush1.bf16.msra.mxu1 %v5749_v25  ;;  %v5827_v24 = vld [vmem:[%s8740_s3 + $0x1b8] ss:$24 sps:$4 sm:$0xff]   ;;  %v5835_v25 = vld [vmem:[%s8740_s3 + $0x18c] ss:$24 sps:$4 sm:$0xff]  }
  0x49   :  { %1974 = vmatprep.subr.bf16.mxu1 %v5757_v26  ;;  %v5830_v26 = vld [vmem:[%s8740_s3 + $0x780] ss:$24 sps:$4 sm:$0xff]  }
  0x4b   :  { %1934 = vmatpush1.bf16.msra.mxu0 %v5752_v27  ;;  %v5838_v27 = vld [vmem:[%s8740_s3 + $0x45c] ss:$24 sps:$4 sm:$0xff]  }
  0x4c   :  { %1935 = vmatprep.subr.bf16.mxu0 %v5760_v28  ;;  %1975 = vmatpush1.bf16.msra.mxu1 %v5755_v29  ;;  %v5833_v28 = vld [vmem:[%s8740_s3 + $0x188] ss:$24 sps:$4 sm:$0xff]   ;;  %v7074_v29 = vpack.c.bf16 %v6945_v45, %v6945_v45 }
  0x4d   :  { %1976 = vmatprep.subr.bf16.mxu1 %v5763_v30  ;;  %v5841_v30 = vld [vmem:[%s8740_s3 + $0x75c] ss:$24 sps:$4 sm:$0xff]   ;;  %v5854_v45 = vld [vmem:[%s8740_s3 + $0x3c8] ss:$24 sps:$4 sm:$0xff]  }
  0x4f   :  { %1936 = vmatpush1.bf16.msra.mxu0 %v5758_v31  ;;  %v5836_v31 = vld [vmem:[%s8740_s3 + $0x458] ss:$24 sps:$4 sm:$0xff]  }
  0x50   :  { %1937 = vmatprep.subr.bf16.mxu0 %v5766_v32  ;;  %1977 = vmatpush1.bf16.msra.mxu1 %v5761_v33  ;;  %v5844_v32 = vld [vmem:[%s8740_s3 + $0x42c] ss:$24 sps:$4 sm:$0xff]   ;;  %v5839_v33 = vld [vmem:[%s8740_s3 + $0x758] ss:$24 sps:$4 sm:$0xff]  }
  0x51   :  { %1978 = vmatprep.subr.bf16.mxu1 %v5769_v34  ;;  %v5847_v34 = vld [vmem:[%s8740_s3 + $0x72c] ss:$24 sps:$4 sm:$0xff]  }
  0x53   :  { %1938 = vmatpush1.bf16.msra.mxu0 %v5764_v35  ;;  %v5842_v35 = vld [vmem:[%s8740_s3 + $0x428] ss:$24 sps:$4 sm:$0xff]  }
  0x54   :  { %1939 = vmatprep.subr.bf16.mxu0 %v5772_v36  ;;  %1979 = vmatpush1.bf16.msra.mxu1 %v5767_v37  ;;  %v5850_v36 = vld [vmem:[%s8740_s3 + $0x3fc] ss:$24 sps:$4 sm:$0xff]   ;;  %v5845_v37 = vld [vmem:[%s8740_s3 + $0x728] ss:$24 sps:$4 sm:$0xff]  }
  0x55   :  { %1980 = vmatprep.subr.bf16.mxu1 %v5775_v39  ;;  %v5853_v39 = vld [vmem:[%s8740_s3 + $0x6fc] ss:$24 sps:$4 sm:$0xff]  }
  0x57   :  { %1940 = vmatpush1.bf16.msra.mxu0 %v5770_v40  ;;  %v5848_v40 = vld [vmem:[%s8740_s3 + $0x3f8] ss:$24 sps:$4 sm:$0xff]  }
  0x58   :  { %1941 = vmatprep.subr.bf16.mxu0 %v5778_v41  ;;  %1981 = vmatpush1.bf16.msra.mxu1 %v5773_v42  ;;  %v5856_v41 = vld [vmem:[%s8740_s3 + $0x3cc] ss:$24 sps:$4 sm:$0xff]   ;;  %v5851_v42 = vld [vmem:[%s8740_s3 + $0x6f8] ss:$24 sps:$4 sm:$0xff]  }
  0x59   :  { %1982 = vmatprep.subr.bf16.mxu1 %v5781_v43  ;;  %v5859_v43 = vld [vmem:[%s8740_s3 + $0x6cc] ss:$24 sps:$4 sm:$0xff]  }
  0x5b   :  { %1942 = vmatpush1.bf16.msra.mxu0 %v5776_v46  ;;  %v5862_v46 = vld [vmem:[%s8740_s3 + $0x39c] ss:$24 sps:$4 sm:$0xff]  }
  0x5c   :  { %1943 = vmatprep.subr.bf16.mxu0 %v5784_v48  ;;  %1983 = vmatpush1.bf16.msra.mxu1 %v5779_v51  ;;  %v5865_v48 = vld [vmem:[%s8740_s3 + $0x69c] ss:$24 sps:$4 sm:$0xff]   ;;  %v5868_v51 = vld [vmem:[%s8740_s3 + $0x36c] ss:$24 sps:$4 sm:$0xff]  }
  0x5d   :  { %1984 = vmatprep.subr.bf16.mxu1 %v5787_v53  ;;  %v5863_v53 = vld [vmem:[%s8740_s3 + $0x698] ss:$24 sps:$4 sm:$0xff]  }
  0x5f   :  { %1944 = vmatpush1.bf16.msra.mxu0 %v5782_v54  ;;  %v5871_v54 = vld [vmem:[%s8740_s3 + $0x66c] ss:$24 sps:$4 sm:$0xff]  }
  0x60   :  { %1945 = vmatprep.subr.bf16.mxu0 %v5790_v55  ;;  %1985 = vmatpush1.bf16.msra.mxu1 %v5785_v56  ;;  %v5866_v55 = vld [vmem:[%s8740_s3 + $0x368] ss:$24 sps:$4 sm:$0xff]   ;;  %v5874_v56 = vld [vmem:[%s8740_s3 + $0x33c] ss:$24 sps:$4 sm:$0xff]  }
  0x61   :  { %1986 = vmatprep.subr.bf16.mxu1 %v5793_v57  ;;  %v5869_v57 = vld [vmem:[%s8740_s3 + $0x668] ss:$24 sps:$4 sm:$0xff]  }
  0x63   :  { %1946 = vmatpush2.bf16.msra.mxu0 %v5788_v58  ;;  %v5877_v58 = vld [vmem:[%s8740_s3 + $0x63c] ss:$24 sps:$4 sm:$0xff]  }
  0x64   :  { %1947 = vmatprep.subr.bf16.mxu0 %v5796_v59  ;;  %1987 = vmatpush2.bf16.msra.mxu1 %v5791_v60  ;;  %v5872_v59 = vld [vmem:[%s8740_s3 + $0x338] ss:$24 sps:$4 sm:$0xff]   ;;  %v5880_v60 = vld [vmem:[%s8740_s3 + $0x30c] ss:$24 sps:$4 sm:$0xff]  }
  0x65   :  { %1988 = vmatprep.subr.bf16.mxu1 %v5799_v61  ;;  %v5875_v61 = vld [vmem:[%s8740_s3 + $0x638] ss:$24 sps:$4 sm:$0xff]  }
  0x67   :  { %1948 = vmatpush2.bf16.msra.mxu0 %v5794_v62  ;;  %v5883_v62 = vld [vmem:[%s8740_s3 + $0x60c] ss:$24 sps:$4 sm:$0xff]  }
  0x68   :  { %1949 = vmatprep.subr.bf16.mxu0 %v5802_v0  ;;  %1989 = vmatpush2.bf16.msra.mxu1 %v5797_v1  ;;  %v5878_v0 = vld [vmem:[%s8740_s3 + $0x308] ss:$24 sps:$4 sm:$0xff]   ;;  %v5886_v1 = vld [vmem:[%s8740_s3 + $0x5dc] ss:$24 sps:$4 sm:$0xff]  }
  0x69   :  { %1990 = vmatprep.subr.bf16.mxu1 %v5805_v2  ;;  %v5881_v2 = vld [vmem:[%s8740_s3 + $0x608] ss:$24 sps:$4 sm:$0xff]  }
  0x6b   :  { %1950 = vmatpush2.bf16.msra.mxu0 %v5800_v4  ;;  %v5889_v4 = vld [vmem:[%s8740_s3 + $0x8dc] ss:$24 sps:$4 sm:$0xff]  }
  0x6c   :  { %1951 = vmatprep.subr.bf16.mxu0 %v5808_v5  ;;  %1991 = vmatpush2.bf16.msra.mxu1 %v5803_v6  ;;  %v5884_v5 = vld [vmem:[%s8740_s3 + $0x5d8] ss:$24 sps:$4 sm:$0xff]   ;;  %v5892_v6 = vld [vmem:[%s8740_s3 + $0x5ac] ss:$24 sps:$4 sm:$0xff]  }
  0x6d   :  { %1992 = vmatprep.subr.bf16.mxu1 %v5811_v7  ;;  %v5887_v7 = vld [vmem:[%s8740_s3 + $0x8d8] ss:$24 sps:$4 sm:$0xff]  }
  0x6f   :  { %1952 = vmatpush2.bf16.msra.mxu0 %v5806_v8  ;;  %v5895_v8 = vld [vmem:[%s8740_s3 + $0x8ac] ss:$24 sps:$4 sm:$0xff]  }
  0x70   :  { %1953 = vmatprep.subr.bf16.mxu0 %v5814_v9  ;;  %1993 = vmatpush2.bf16.msra.mxu1 %v5809_v10  ;;  %v5890_v9 = vld [vmem:[%s8740_s3 + $0x5a8] ss:$24 sps:$4 sm:$0xff]   ;;  %v5898_v10 = vld [vmem:[%s8740_s3 + $0x57c] ss:$24 sps:$4 sm:$0xff]  }
  0x71   :  { %1994 = vmatprep.subr.bf16.mxu1 %v5817_v11  ;;  %v5893_v11 = vld [vmem:[%s8740_s3 + $0x8a8] ss:$24 sps:$4 sm:$0xff]  }
  0x73   :  { %1954 = vmatpush2.bf16.msra.mxu0 %v5812_v12  ;;  %v5901_v12 = vld [vmem:[%s8740_s3 + $0x87c] ss:$24 sps:$4 sm:$0xff]  }
  0x74   :  { %1955 = vmatprep.subr.bf16.mxu0 %v5820_v13  ;;  %1995 = vmatpush2.bf16.msra.mxu1 %v5815_v14  ;;  %v5896_v13 = vld [vmem:[%s8740_s3 + $0x578] ss:$24 sps:$4 sm:$0xff]   ;;  %v5904_v14 = vld [vmem:[%s8740_s3 + $0x54c] ss:$24 sps:$4 sm:$0xff]  }
  0x75   :  { %1996 = vmatprep.subr.bf16.mxu1 %v5823_v15  ;;  %v5899_v15 = vld [vmem:[%s8740_s3 + $0x878] ss:$24 sps:$4 sm:$0xff]  }
  0x77   :  { %1956 = vmatpush2.bf16.msra.mxu0 %v5818_v17  ;;  %v5907_v17 = vld [vmem:[%s8740_s3 + $0x84c] ss:$24 sps:$4 sm:$0xff]  }
  0x78   :  { %1957 = vmatprep.subr.bf16.mxu0 %v5826_v18  ;;  %1997 = vmatpush2.bf16.msra.mxu1 %v5821_v20  ;;  %v5902_v18 = vld [vmem:[%s8740_s3 + $0x548] ss:$24 sps:$4 sm:$0xff]   ;;  %v5910_v20 = vld [vmem:[%s8740_s3 + $0x51c] ss:$24 sps:$4 sm:$0xff]  }
  0x79   :  { %1998 = vmatprep.subr.bf16.mxu1 %v5829_v21  ;;  %v5905_v21 = vld [vmem:[%s8740_s3 + $0x848] ss:$24 sps:$4 sm:$0xff]  }
  0x7b   :  { %1958 = vmatpush2.bf16.msra.mxu0 %v5824_v22  ;;  %v5913_v22 = vld [vmem:[%s8740_s3 + $0x81c] ss:$24 sps:$4 sm:$0xff]  }
  0x7c   :  { %1959 = vmatprep.subr.bf16.mxu0 %v5832_v23  ;;  %1999 = vmatpush2.bf16.msra.mxu1 %v5827_v24  ;;  %v5908_v23 = vld [vmem:[%s8740_s3 + $0x518] ss:$24 sps:$4 sm:$0xff]   ;;  %v5916_v24 = vld [vmem:[%s8740_s3 + $0x4ec] ss:$24 sps:$4 sm:$0xff]  }
  0x7d   :  { %2000 = vmatprep.subr.bf16.mxu1 %v5835_v25  ;;  %v5911_v25 = vld [vmem:[%s8740_s3 + $0x818] ss:$24 sps:$4 sm:$0xff]  }
  0x7f   :  { %1960 = vmatpush2.bf16.msra.mxu0 %v5830_v26  ;;  %v5919_v26 = vld [vmem:[%s8740_s3 + $0x7ec] ss:$24 sps:$4 sm:$0xff]  }
  0x80   :  { %2011 = vmatprep.subr.bf16.mxu0 %v5838_v27  ;;  %2001 = vmatpush2.bf16.msra.mxu1 %v5833_v28  ;;  %v5914_v27 = vld [vmem:[%s8740_s3 + $0x4e8] ss:$24 sps:$4 sm:$0xff]   ;;  %v5922_v28 = vld [vmem:[%s8740_s3 + $0x4bc] ss:$24 sps:$4 sm:$0xff]  }
  0x81   :  { %2052 = vmatprep.subr.bf16.mxu1 %v5841_v30  ;;  %v5917_v30 = vld [vmem:[%s8740_s3 + $0x7e8] ss:$24 sps:$4 sm:$0xff]  }
  0x82   :  { %1962 = vmatmul.mubr.bf16.vlgmr.msra.gmra.mxu0 %v7074_v29 }
  0x83   :  { %2012 = vmatpush1.bf16.msra.mxu0 %v5836_v31  ;;  %2043 = vmatprep.mubr.bf16.mxu0 %v6821_v3  ;;  %v5925_v31 = vld [vmem:[%s8740_s3 + $0x7bc] ss:$24 sps:$4 sm:$0xff]  }
  0x84   :  { %2003 = vmatmul.mubr.bf16.vlgmr.msra.gmra.mxu1 %v6860_v16  ;;  %2013 = vmatprep.subr.bf16.mxu0 %v5844_v32  ;;  %v5920_v32 = vld [vmem:[%s8740_s3 + $0x4b8] ss:$24 sps:$4 sm:$0xff]  }
  0x85   :  { %2053 = vmatpush1.bf16.msra.mxu1 %v5839_v33  ;;  %2084 = vmatprep.mubr.bf16.mxu1 %v6961_v52  ;;  %v5928_v33 = vld [vmem:[%s8740_s3 + $0x48c] ss:$24 sps:$4 sm:$0xff]  }
  0x86   :  { %2054 = vmatprep.subr.bf16.mxu1 %v5847_v34  ;;  %v5923_v34 = vld [vmem:[%s8740_s3 + $0x7b8] ss:$24 sps:$4 sm:$0xff]  }
  0x87   :  { %2014 = vmatpush1.bf16.msra.mxu0 %v5842_v35  ;;  %v5931_v35 = vld [vmem:[%s8740_s3 + $0x78c] ss:$24 sps:$4 sm:$0xff]  }
  0x88   :  { %2015 = vmatprep.subr.bf16.mxu0 %v5850_v36  ;;  %v5926_v36 = vld [vmem:[%s8740_s3 + $0x488] ss:$24 sps:$4 sm:$0xff]  }
  0x89   :  { %2055 = vmatpush1.bf16.msra.mxu1 %v5845_v37  ;;  %v5934_v37 = vld [vmem:[%s8740_s3 + $0x164] ss:$24 sps:$4 sm:$0xff]  }
  0x8a   :  { %2056 = vmatprep.subr.bf16.mxu1 %v5853_v39  ;;  %v5929_v39 = vld [vmem:[%s8740_s3 + $0x788] ss:$24 sps:$4 sm:$0xff]  }
  0x8b   :  { %2016 = vmatpush1.bf16.msra.mxu0 %v5848_v40  ;;  %v5937_v40 = vld [vmem:[%s8740_s3 + $0x464] ss:$24 sps:$4 sm:$0xff]  }
  0x8c   :  { %2017 = vmatprep.subr.bf16.mxu0 %v5856_v41  ;;  %v5932_v41 = vld [vmem:[%s8740_s3 + $0x160] ss:$24 sps:$4 sm:$0xff]  }
  0x8d   :  { %2057 = vmatpush1.bf16.msra.mxu1 %v5851_v42  ;;  %v5940_v42 = vld [vmem:[%s8740_s3 + $0x134] ss:$24 sps:$4 sm:$0xff]  }
  0x8e   :  { %2058 = vmatprep.subr.bf16.mxu1 %v5859_v43  ;;  %v5935_v43 = vld [vmem:[%s8740_s3 + $0x460] ss:$24 sps:$4 sm:$0xff]  }
  0x8f   :  { %2018 = vmatpush1.bf16.msra.mxu0 %v5854_v45  ;;  %v5943_v45 = vld [vmem:[%s8740_s3 + $0x434] ss:$24 sps:$4 sm:$0xff]  }
  0x90   :  { %2019 = vmatprep.subr.bf16.mxu0 %v5862_v46  ;;  %v5938_v46 = vld [vmem:[%s8740_s3 + $0x130] ss:$24 sps:$4 sm:$0xff]  }
  0x91   :  { %2059 = vmatpush1.bf16.msra.mxu1 %v5857_v47  ;;  %v5946_v47 = vld [vmem:[%s8740_s3 + $0x104] ss:$24 sps:$4 sm:$0xff]  }
  0x92   :  { %2060 = vmatprep.subr.bf16.mxu1 %v5865_v48  ;;  %v5941_v48 = vld [vmem:[%s8740_s3 + $0x430] ss:$24 sps:$4 sm:$0xff]  }
  0x93   :  { %2020 = vmatpush1.bf16.msra.mxu0 %v5860_v50  ;;  %v5949_v50 = vld [vmem:[%s8740_s3 + $0x404] ss:$24 sps:$4 sm:$0xff]  }
  0x94   :  { %2021 = vmatprep.subr.bf16.mxu0 %v5868_v51  ;;  %v5952_v51 = vld [vmem:[%s8740_s3 + $0xd4] ss:$24 sps:$4 sm:$0xff]  }
  0x95   :  { %2061 = vmatpush1.bf16.msra.mxu1 %v5863_v53  ;;  %v5955_v53 = vld [vmem:[%s8740_s3 + $0x3d4] ss:$24 sps:$4 sm:$0xff]  }
  0x96   :  { %2062 = vmatprep.subr.bf16.mxu1 %v5871_v54  ;;  %v5950_v54 = vld [vmem:[%s8740_s3 + $0xd0] ss:$24 sps:$4 sm:$0xff]  }
  0x97   :  { %2022 = vmatpush1.bf16.msra.mxu0 %v5866_v55  ;;  %v5958_v55 = vld [vmem:[%s8740_s3 + $0xa4] ss:$24 sps:$4 sm:$0xff]  }
  0x98   :  { %2023 = vmatprep.subr.bf16.mxu0 %v5874_v56  ;;  %v5953_v56 = vld [vmem:[%s8740_s3 + $0x3d0] ss:$24 sps:$4 sm:$0xff]  }
  0x99   :  { %2063 = vmatpush1.bf16.msra.mxu1 %v5869_v57  ;;  %v5961_v57 = vld [vmem:[%s8740_s3 + $0x3a4] ss:$24 sps:$4 sm:$0xff]  }
  0x9a   :  { %2064 = vmatprep.subr.bf16.mxu1 %v5877_v58  ;;  %v5956_v58 = vld [vmem:[%s8740_s3 + $0xa0] ss:$24 sps:$4 sm:$0xff]  }
  0x9b   :  { %2024 = vmatpush1.bf16.msra.mxu0 %v5872_v59  ;;  %v5964_v59 = vld [vmem:[%s8740_s3 + $0x74] ss:$24 sps:$4 sm:$0xff]  }
  0x9c   :  { %2025 = vmatprep.subr.bf16.mxu0 %v5880_v60  ;;  %v5959_v60 = vld [vmem:[%s8740_s3 + $0x3a0] ss:$24 sps:$4 sm:$0xff]  }
  0x9d   :  { %2065 = vmatpush1.bf16.msra.mxu1 %v5875_v61  ;;  %v5967_v61 = vld [vmem:[%s8740_s3 + $0x374] ss:$24 sps:$4 sm:$0xff]  }
  0x9e   :  { %2066 = vmatprep.subr.bf16.mxu1 %v5883_v62  ;;  %v5962_v62 = vld [vmem:[%s8740_s3 + $0x70] ss:$24 sps:$4 sm:$0xff]  }
  0x9f   :  { %2026 = vmatpush1.bf16.msra.mxu0 %v5878_v0  ;;  %v5970_v0 = vld [vmem:[%s8740_s3 + $0x44] ss:$24 sps:$4 sm:$0xff]  }
  0xa0   :  { %2027 = vmatprep.subr.bf16.mxu0 %v5886_v1  ;;  %v5965_v1 = vld [vmem:[%s8740_s3 + $0x370] ss:$24 sps:$4 sm:$0xff]  }
  0xa1   :  { %2067 = vmatpush1.bf16.msra.mxu1 %v5881_v2  ;;  %v5973_v2 = vld [vmem:[%s8740_s3 + $0x344] ss:$24 sps:$4 sm:$0xff]  }
  0xa2   :  { %2068 = vmatprep.subr.bf16.mxu1 %v5889_v4  ;;  %v5968_v4 = vld [vmem:[%s8740_s3 + $0x40] ss:$24 sps:$4 sm:$0xff]  }
  0xa3   :  { %2028 = vmatpush2.bf16.msra.mxu0 %v5884_v5  ;;  %v5976_v5 = vld [vmem:[%s8740_s3 + $0x14] ss:$24 sps:$4 sm:$0xff]  }
  0xa4   :  { %2029 = vmatprep.subr.bf16.mxu0 %v5892_v6  ;;  %v5971_v6 = vld [vmem:[%s8740_s3 + $0x340] ss:$24 sps:$4 sm:$0xff]  }
  0xa5   :  { %2069 = vmatpush2.bf16.msra.mxu1 %v5887_v7  ;;  %v5979_v7 = vld [vmem:[%s8740_s3 + $0x314] ss:$24 sps:$4 sm:$0xff]  }
  0xa6   :  { %2070 = vmatprep.subr.bf16.mxu1 %v5895_v8  ;;  %v5974_v8 = vld [vmem:[%s8740_s3 + $0x10] ss:$24 sps:$4 sm:$0xff]  }
  0xa7   :  { %2030 = vmatpush2.bf16.msra.mxu0 %v5890_v9  ;;  %v5982_v9 = vld [vmem:[%s8740_s3 + $0x2e4] ss:$24 sps:$4 sm:$0xff]  }
  0xa8   :  { %2031 = vmatprep.subr.bf16.mxu0 %v5898_v10  ;;  %v5977_v10 = vld [vmem:[%s8740_s3 + $0x310] ss:$24 sps:$4 sm:$0xff]  }
  0xa9   :  { %2071 = vmatpush2.bf16.msra.mxu1 %v5893_v11  ;;  %v5985_v11 = vld [vmem:[%s8740_s3 + $0x5e4] ss:$24 sps:$4 sm:$0xff]  }
  0xaa   :  { %2072 = vmatprep.subr.bf16.mxu1 %v5901_v12  ;;  %v5980_v12 = vld [vmem:[%s8740_s3 + $0x2e0] ss:$24 sps:$4 sm:$0xff]  }
  0xab   :  { %2032 = vmatpush2.bf16.msra.mxu0 %v5896_v13  ;;  %v5988_v13 = vld [vmem:[%s8740_s3 + $0x2b4] ss:$24 sps:$4 sm:$0xff]  }
  0xac   :  { %2033 = vmatprep.subr.bf16.mxu0 %v5904_v14  ;;  %v5983_v14 = vld [vmem:[%s8740_s3 + $0x5e0] ss:$24 sps:$4 sm:$0xff]  }
  0xad   :  { %2073 = vmatpush2.bf16.msra.mxu1 %v5899_v15  ;;  %v5986_v15 = vld [vmem:[%s8740_s3 + $0x2b0] ss:$24 sps:$4 sm:$0xff]  }
  0xae   :  { %2074 = vmatprep.subr.bf16.mxu1 %v5907_v17  ;;  %v5991_v17 = vld [vmem:[%s8740_s3 + $0x5b4] ss:$24 sps:$4 sm:$0xff]  }
  0xaf   :  { %2034 = vmatpush2.bf16.msra.mxu0 %v5902_v18  ;;  %v5989_v18 = vld [vmem:[%s8740_s3 + $0x5b0] ss:$24 sps:$4 sm:$0xff]  }
  0xb0   :  { %2035 = vmatprep.subr.bf16.mxu0 %v5910_v20  ;;  %v5994_v20 = vld [vmem:[%s8740_s3 + $0x284] ss:$24 sps:$4 sm:$0xff]  }
  0xb1   :  { %2075 = vmatpush2.bf16.msra.mxu1 %v5905_v21  ;;  %v5997_v21 = vld [vmem:[%s8740_s3 + $0x584] ss:$24 sps:$4 sm:$0xff]  }
  0xb2   :  { %2076 = vmatprep.subr.bf16.mxu1 %v5913_v22  ;;  %v5992_v22 = vld [vmem:[%s8740_s3 + $0x280] ss:$24 sps:$4 sm:$0xff]  }
  0xb3   :  { %2036 = vmatpush2.bf16.msra.mxu0 %v5908_v23  ;;  %v5995_v23 = vld [vmem:[%s8740_s3 + $0x580] ss:$24 sps:$4 sm:$0xff]  }
  0xb4   :  { %2037 = vmatprep.subr.bf16.mxu0 %v5916_v24  ;;  %v6000_v24 = vld [vmem:[%s8740_s3 + $0x254] ss:$24 sps:$4 sm:$0xff]  }
  0xb5   :  { %2077 = vmatpush2.bf16.msra.mxu1 %v5911_v25  ;;  %v6003_v25 = vld [vmem:[%s8740_s3 + $0x554] ss:$24 sps:$4 sm:$0xff]  }
  0xb6   :  { %2078 = vmatprep.subr.bf16.mxu1 %v5919_v26  ;;  %v5998_v26 = vld [vmem:[%s8740_s3 + $0x250] ss:$24 sps:$4 sm:$0xff]  }
  0xb7   :  { %2038 = vmatpush2.bf16.msra.mxu0 %v5914_v27  ;;  %v6001_v27 = vld [vmem:[%s8740_s3 + $0x550] ss:$24 sps:$4 sm:$0xff]  }
  0xb8   :  { %2039 = vmatprep.subr.bf16.mxu0 %v5922_v28  ;;  %v6006_v28 = vld [vmem:[%s8740_s3 + $0x224] ss:$24 sps:$4 sm:$0xff]  }
  0xb9   :  { %2079 = vmatpush2.bf16.msra.mxu1 %v5917_v30  ;;  %v6009_v30 = vld [vmem:[%s8740_s3 + $0x524] ss:$24 sps:$4 sm:$0xff]  }
  0xba   :  { %2080 = vmatprep.subr.bf16.mxu1 %v5925_v31  ;;  %v6004_v31 = vld [vmem:[%s8740_s3 + $0x220] ss:$24 sps:$4 sm:$0xff]  }
  0xbb   :  { %2040 = vmatpush2.bf16.msra.mxu0 %v5920_v32  ;;  %v6007_v32 = vld [vmem:[%s8740_s3 + $0x520] ss:$24 sps:$4 sm:$0xff]  }
  0xbc   :  { %2041 = vmatprep.subr.bf16.mxu0 %v5928_v33  ;;  %v6012_v33 = vld [vmem:[%s8740_s3 + $0x1f4] ss:$24 sps:$4 sm:$0xff]  }
  0xbd   :  { %2081 = vmatpush2.bf16.msra.mxu1 %v5923_v34  ;;  %v6015_v34 = vld [vmem:[%s8740_s3 + $0x4f4] ss:$24 sps:$4 sm:$0xff]  }
  0xbe   :  { %2082 = vmatprep.subr.bf16.mxu1 %v5931_v35  ;;  %v6010_v35 = vld [vmem:[%s8740_s3 + $0x1f0] ss:$24 sps:$4 sm:$0xff]  }
  0xbf   :  { %2042 = vmatpush2.bf16.msra.mxu0 %v5926_v36  ;;  %v6013_v36 = vld [vmem:[%s8740_s3 + $0x4f0] ss:$24 sps:$4 sm:$0xff]  }
  0xc0   :  { %2093 = vmatprep.subr.bf16.mxu0 %v5934_v37  ;;  %v6018_v37 = vld [vmem:[%s8740_s3 + $0x1c4] ss:$24 sps:$4 sm:$0xff]  }
  0xc1   :  { %2083 = vmatpush2.bf16.msra.mxu1 %v5929_v39  ;;  %v6021_v39 = vld [vmem:[%s8740_s3 + $0x4c4] ss:$24 sps:$4 sm:$0xff]  }
  0xc2   :  { %2044 = vmatmul.mubr.bf16.vlgmr.msra.gmra.mxu0 %v6868_v19  ;;  %2134 = vmatprep.subr.bf16.mxu1 %v5937_v40  ;;  %v6016_v40 = vld [vmem:[%s8740_s3 + $0x1c0] ss:$24 sps:$4 sm:$0xff]  }
  0xc3   :  { %2094 = vmatpush1.bf16.msra.mxu0 %v5932_v41  ;;  %2125 = vmatprep.mubr.bf16.mxu0 %v6812_v63  ;;  %v5944_v63 = vld [vmem:[%s8740_s3 + $0x100] ss:$24 sps:$4 sm:$0xff]   ;;  %v6024_v41 = vld [vmem:[%s8740_s3 + $0x194] ss:$24 sps:$4 sm:$0xff]  }
  0xc4   :  { %2085 = vmatmul.mubr.bf16.vlgmr.msra.gmra.mxu1 %v7074_v29  ;;  %2095 = vmatprep.subr.bf16.mxu0 %v5940_v42  ;;  %v6019_v42 = vld [vmem:[%s8740_s3 + $0x4c0] ss:$24 sps:$4 sm:$0xff]  }
  0xc5   :  { %2135 = vmatpush1.bf16.msra.mxu1 %v5935_v43  ;;  %2166 = vmatprep.mubr.bf16.mxu1 %v6821_v3  ;;  %v5947_v3 = vld [vmem:[%s8740_s3 + $0x400] ss:$24 sps:$4 sm:$0xff]   ;;  %v6027_v43 = vld [vmem:[%s8740_s3 + $0x494] ss:$24 sps:$4 sm:$0xff]  }
  0xc6   :  { %2136 = vmatprep.subr.bf16.mxu1 %v5943_v45  ;;  %v6022_v45 = vld [vmem:[%s8740_s3 + $0x190] ss:$24 sps:$4 sm:$0xff]  }
  0xc7   :  { %2096 = vmatpush1.bf16.msra.mxu0 %v5938_v46  ;;  %v6030_v46 = vld [vmem:[%s8740_s3 + $0x764] ss:$24 sps:$4 sm:$0xff]  }
  0xc8   :  { %2097 = vmatprep.subr.bf16.mxu0 %v5946_v47  ;;  %v6025_v47 = vld [vmem:[%s8740_s3 + $0x490] ss:$24 sps:$4 sm:$0xff]  }
  0xc9   :  { %2137 = vmatpush1.bf16.msra.mxu1 %v5941_v48  ;;  %v6039_v48 = vld [vmem:[%s8742_s5 + $0x154] ss:$24 sps:$4 sm:$0xff]  }
  0xca   :  { %2138 = vmatprep.subr.bf16.mxu1 %v5949_v50  ;;  %v6028_v50 = vld [vmem:[%s8740_s3 + $0x760] ss:$24 sps:$4 sm:$0xff]  }
  0xcb   :  { %2098 = vmatpush1.bf16.msra.mxu0 %v5944_v63  ;;  %v6033_v63 = vld [vmem:[%s8740_s3 + $0x734] ss:$24 sps:$4 sm:$0xff]  }
  0xcc   :  { %2099 = vmatprep.subr.bf16.mxu0 %v5952_v51  ;;  %v6037_v51 = vld [vmem:[%s8742_s5 + $0x150] ss:$24 sps:$4 sm:$0xff]  }
  0xcd   :  { %2139 = vmatpush1.bf16.msra.mxu1 %v5947_v3  ;;  %v6045_v3 = vld [vmem:[%s8742_s5 + $0x124] ss:$24 sps:$4 sm:$0xff]  }
  0xce   :  { %2140 = vmatprep.subr.bf16.mxu1 %v5955_v53  ;;  %v6031_v53 = vld [vmem:[%s8740_s3 + $0x730] ss:$24 sps:$4 sm:$0xff]  }
  0xcf   :  { %2100 = vmatpush1.bf16.msra.mxu0 %v5950_v54 }
  0xd0   :  { %2101 = vmatprep.subr.bf16.mxu0 %v5958_v55  ;;  %v6036_v55 = vld [vmem:[%s8740_s3 + $0x704] ss:$24 sps:$4 sm:$0xff]  }
  0xd1   :  { %2141 = vmatpush1.bf16.msra.mxu1 %v5953_v56  ;;  %v6043_v56 = vld [vmem:[%s8742_s5 + $0x120] ss:$24 sps:$4 sm:$0xff]  }
  0xd2   :  { %2142 = vmatprep.subr.bf16.mxu1 %v5961_v57 }
  0xd3   :  { %2102 = vmatpush1.bf16.msra.mxu0 %v5956_v58 }
  0xd4   :  { %2103 = vmatprep.subr.bf16.mxu0 %v5964_v59  ;;  %v6034_v59 = vld [vmem:[%s8740_s3 + $0x700] ss:$24 sps:$4 sm:$0xff]  }
  0xd5   :  { %2143 = vmatpush1.bf16.msra.mxu1 %v5959_v60 }
  0xd6   :  { %2144 = vmatprep.subr.bf16.mxu1 %v5967_v61 }
  0xd7   :  { %2104 = vmatpush1.bf16.msra.mxu0 %v5962_v62 }
  0xd8   :  { %2105 = vmatprep.subr.bf16.mxu0 %v5970_v0  ;;  %v6057_v0 = vld [vmem:[%s8742_s5 + $0xc4] ss:$24 sps:$4 sm:$0xff]  }
  0xd9   :  { %2145 = vmatpush1.bf16.msra.mxu1 %v5965_v1 }
  0xda   :  { %2146 = vmatprep.subr.bf16.mxu1 %v5973_v2  ;;  %v6040_v2 = vld [vmem:[%s8740_s3 + $0x6d0] ss:$24 sps:$4 sm:$0xff]  }
  0xdb   :  { %2106 = vmatpush1.bf16.msra.mxu0 %v5968_v4  ;;  %v6048_v4 = vld [vmem:[%s8740_s3 + $0x6a4] ss:$24 sps:$4 sm:$0xff]  }
  0xdc   :  { %2107 = vmatprep.subr.bf16.mxu0 %v5976_v5 }
  0xdd   :  { %2147 = vmatpush1.bf16.msra.mxu1 %v5971_v6  ;;  %v6055_v6 = vld [vmem:[%s8742_s5 + $0xc0] ss:$24 sps:$4 sm:$0xff]  }
  0xde   :  { %2148 = vmatprep.subr.bf16.mxu1 %v5979_v7  ;;  %v6063_v7 = vld [vmem:[%s8742_s5 + $0x94] ss:$24 sps:$4 sm:$0xff]  }
  0xdf   :  { %2108 = vmatpush1.bf16.msra.mxu0 %v5974_v8  ;;  %v6046_v8 = vld [vmem:[%s8740_s3 + $0x6a0] ss:$24 sps:$4 sm:$0xff]  }
  0xe0   :  { %2109 = vmatprep.subr.bf16.mxu0 %v5982_v9  ;;  %v6054_v9 = vld [vmem:[%s8740_s3 + $0x674] ss:$24 sps:$4 sm:$0xff]  }
  0xe1   :  { %2149 = vmatpush1.bf16.msra.mxu1 %v5977_v10  ;;  %v6061_v10 = vld [vmem:[%s8742_s5 + $0x90] ss:$24 sps:$4 sm:$0xff]  }
  0xe2   :  { %2150 = vmatprep.subr.bf16.mxu1 %v5985_v11  ;;  %v6069_v11 = vld [vmem:[%s8742_s5 + $0x64] ss:$24 sps:$4 sm:$0xff]  }
  0xe3   :  { %2110 = vmatpush2.bf16.msra.mxu0 %v5980_v12  ;;  %v6052_v12 = vld [vmem:[%s8740_s3 + $0x670] ss:$24 sps:$4 sm:$0xff]  }
  0xe4   :  { %2111 = vmatprep.subr.bf16.mxu0 %v5988_v13  ;;  %v6060_v13 = vld [vmem:[%s8740_s3 + $0x644] ss:$24 sps:$4 sm:$0xff]  }
  0xe5   :  { %2151 = vmatpush2.bf16.msra.mxu1 %v5983_v14  ;;  %v6067_v14 = vld [vmem:[%s8742_s5 + $0x60] ss:$24 sps:$4 sm:$0xff]  }
  0xe6   :  { %2152 = vmatprep.subr.bf16.mxu1 %v5991_v17  ;;  %v6058_v17 = vld [vmem:[%s8740_s3 + $0x640] ss:$24 sps:$4 sm:$0xff]  }
  0xe7   :  { %2112 = vmatpush2.bf16.msra.mxu0 %v5986_v15  ;;  %v6075_v15 = vld [vmem:[%s8742_s5 + $0x34] ss:$24 sps:$4 sm:$0xff]  }
  0xe8   :  { %2113 = vmatprep.subr.bf16.mxu0 %v5994_v20  ;;  %v6073_v20 = vld [vmem:[%s8742_s5 + $0x30] ss:$24 sps:$4 sm:$0xff]  }
  0xe9   :  { %2153 = vmatpush2.bf16.msra.mxu1 %v5989_v18  ;;  %v6066_v18 = vld [vmem:[%s8740_s3 + $0x614] ss:$24 sps:$4 sm:$0xff]  }
  0xea   :  { %2154 = vmatprep.subr.bf16.mxu1 %v5997_v21  ;;  %v6081_v21 = vld [vmem:[%s8742_s5 + $0x4] ss:$24 sps:$4 sm:$0xff]  }
  0xeb   :  { %2114 = vmatpush2.bf16.msra.mxu0 %v5992_v22  ;;  %v6064_v22 = vld [vmem:[%s8740_s3 + $0x610] ss:$24 sps:$4 sm:$0xff]  }
  0xec   :  { %2115 = vmatprep.subr.bf16.mxu0 %v6000_v24  ;;  %v6079_v24 = vld [vmem:[%s8742_s5] ss:$24 sps:$4 sm:$0xff]  }
  0xed   :  { %2155 = vmatpush2.bf16.msra.mxu1 %v5995_v23  ;;  %v6072_v23 = vld [vmem:[%s8740_s3 + $0x8e4] ss:$24 sps:$4 sm:$0xff]  }
  0xee   :  { %2156 = vmatprep.subr.bf16.mxu1 %v6003_v25  ;;  %v6087_v25 = vld [vmem:[%s8742_s5 + $0x2d4] ss:$24 sps:$4 sm:$0xff]  }
  0xef   :  { %2116 = vmatpush2.bf16.msra.mxu0 %v5998_v26  ;;  %v6070_v26 = vld [vmem:[%s8740_s3 + $0x8e0] ss:$24 sps:$4 sm:$0xff]  }
  0xf0   :  { %2117 = vmatprep.subr.bf16.mxu0 %v6006_v28  ;;  %v6085_v28 = vld [vmem:[%s8742_s5 + $0x2d0] ss:$24 sps:$4 sm:$0xff]  }
  0xf1   :  { %2157 = vmatpush2.bf16.msra.mxu1 %v6001_v27  ;;  %v6078_v27 = vld [vmem:[%s8740_s3 + $0x8b4] ss:$24 sps:$4 sm:$0xff]  }
  0xf2   :  { %2158 = vmatprep.subr.bf16.mxu1 %v6009_v30  ;;  %v6093_v30 = vld [vmem:[%s8742_s5 + $0x2a4] ss:$24 sps:$4 sm:$0xff]  }
  0xf3   :  { %2118 = vmatpush2.bf16.msra.mxu0 %v6004_v31  ;;  %v6076_v31 = vld [vmem:[%s8740_s3 + $0x8b0] ss:$24 sps:$4 sm:$0xff]  }
  0xf4   :  { %2119 = vmatprep.subr.bf16.mxu0 %v6012_v33  ;;  %v6091_v33 = vld [vmem:[%s8742_s5 + $0x2a0] ss:$24 sps:$4 sm:$0xff]  }
  0xf5   :  { %2159 = vmatpush2.bf16.msra.mxu1 %v6007_v32  ;;  %v6084_v32 = vld [vmem:[%s8740_s3 + $0x884] ss:$24 sps:$4 sm:$0xff]  }
  0xf6   :  { %2160 = vmatprep.subr.bf16.mxu1 %v6015_v34  ;;  %v6099_v34 = vld [vmem:[%s8742_s5 + $0x274] ss:$24 sps:$4 sm:$0xff]  }
  0xf7   :  { %2120 = vmatpush2.bf16.msra.mxu0 %v6010_v35  ;;  %v6082_v35 = vld [vmem:[%s8740_s3 + $0x880] ss:$24 sps:$4 sm:$0xff]  }
  0xf8   :  { %2121 = vmatprep.subr.bf16.mxu0 %v6018_v37  ;;  %v6097_v37 = vld [vmem:[%s8742_s5 + $0x270] ss:$24 sps:$4 sm:$0xff]  }
  0xf9   :  { %2161 = vmatpush2.bf16.msra.mxu1 %v6013_v36  ;;  %v6090_v36 = vld [vmem:[%s8740_s3 + $0x854] ss:$24 sps:$4 sm:$0xff]  }
  0xfa   :  { %2162 = vmatprep.subr.bf16.mxu1 %v6021_v39  ;;  %v6105_v39 = vld [vmem:[%s8742_s5 + $0x244] ss:$24 sps:$4 sm:$0xff]  }
  0xfb   :  { %2122 = vmatpush2.bf16.msra.mxu0 %v6016_v40  ;;  %v6088_v40 = vld [vmem:[%s8740_s3 + $0x850] ss:$24 sps:$4 sm:$0xff]  }
  0xfc   :  { %2123 = vmatprep.subr.bf16.mxu0 %v6024_v41  ;;  %v6096_v41 = vld [vmem:[%s8740_s3 + $0x824] ss:$24 sps:$4 sm:$0xff]  }
  0xfd   :  { %2163 = vmatpush2.bf16.msra.mxu1 %v6019_v42  ;;  %v6103_v42 = vld [vmem:[%s8742_s5 + $0x240] ss:$24 sps:$4 sm:$0xff]  }
  0xfe   :  { %2164 = vmatprep.subr.bf16.mxu1 %v6027_v43  ;;  %v6111_v43 = vld [vmem:[%s8742_s5 + $0x214] ss:$24 sps:$4 sm:$0xff]  }
  0xff   :  { %2124 = vmatpush2.bf16.msra.mxu0 %v6022_v45  ;;  %v6094_v45 = vld [vmem:[%s8740_s3 + $0x820] ss:$24 sps:$4 sm:$0xff]  }
 0x100   :  { %2175 = vmatprep.subr.bf16.mxu0 %v6030_v46  ;;  %v6102_v46 = vld [vmem:[%s8740_s3 + $0x7f4] ss:$24 sps:$4 sm:$0xff]  }
 0x101   :  { %2165 = vmatpush2.bf16.msra.mxu1 %v6025_v47  ;;  %v6109_v47 = vld [vmem:[%s8742_s5 + $0x210] ss:$24 sps:$4 sm:$0xff]  }
 0x102   :  { %v7486_v54 = vpop.f32.mrf.mxu0  ;;  %2126 = vmatmul.mubr.bf16.vlgmr.msra.gmra.mxu0 %v6860_v16  ;;  %4023 = vmatprep.subr.bf16.mxu1 %v6039_v48  ;;  %v6051_v16 = vld [vmem:[%s8742_s5 + $0xf4] ss:$24 sps:$4 sm:$0xff]   ;;  %v7638_v48 = vld [vmem:[%s8741_s4] sm:$0x3f] }
 0x103   :  { %2176 = vmatpush1.bf16.msra.mxu0 %v6028_v50  ;;  %2207 = vmatprep.mubr.bf16.mxu0 %v6961_v52  ;;  %v7498_v58 = vpop.f32.mrf.mxu1  ;;  %v6042_v52 = vld [vmem:[%s8740_s3 + $0x6d4] ss:$24 sps:$4 sm:$0xff]   ;;  %v6117_v50 = vld [vmem:[%s8742_s5 + $0x1e4] ss:$24 sps:$4 sm:$0xff]  }
 0x104   :  { %v7496_v57 = vpop.f32.mrf.mxu0  ;;  %2167 = vmatmul.mubr.bf16.vlgmr.msra.gmra.mxu1 %v6868_v19  ;;  %2177 = vmatprep.subr.bf16.mxu0 %v6033_v63  ;;  %v6049_v19 = vld [vmem:[%s8742_s5 + $0xf0] ss:$24 sps:$4 sm:$0xff]   ;;  %v368_v63 = vsub.s32 0, %v6766_v44 }
 0x105   :  { %4024 = vmatpush1.bf16.msra.mxu1 %v6037_v51  ;;  %v7507_v61 = vpop.f32.mrf.mxu1  ;;  %v6100_v51 = vld [vmem:[%s8740_s3 + $0x7f0] ss:$24 sps:$4 sm:$0xff]  }
 0x106   :  { %v1885_v60 = vpop.f32.mrf.mxu0  ;;  %4025 = vmatprep.subr.bf16.mxu1 %v6045_v3  ;;  %v372_v3 = vsub.s32 1, %v6766_v44 }
 0x107   :  { %2178 = vmatpush1.bf16.msra.mxu0 %v6031_v53  ;;  %v1926_v1 = vpop.f32.mrf.mxu1  ;;  %v6108_v53 = vld [vmem:[%s8740_s3 + $0x7c4] ss:$24 sps:$4 sm:$0xff]   ;;  %v7663_v60 = vpop.permute.xlu0 %398 }
 0x108   :  { %v1886_v62 = vpop.f32.mrf.mxu0  ;;  %2179 = vmatprep.subr.bf16.mxu0 %v6036_v55  ;;  %v6115_v55 = vld [vmem:[%s8742_s5 + $0x1e0] ss:$24 sps:$4 sm:$0xff]  }
 0x109   :  { %4026 = vmatpush1.bf16.msra.mxu1 %v6043_v56  ;;  %v1927_v5 = vpop.f32.mrf.mxu1  ;;  %v6120_v56 = vld [vmem:[%s8742_s5 + $0x1b4] ss:$24 sps:$4 sm:$0xff]   ;;  %v6118_v62 = vld [vmem:[%s8742_s5 + $0x1b0] ss:$24 sps:$4 sm:$0xff]  }
 0x10a   :  { %4027 = vmatprep.subr.bf16.mxu1 %v6051_v16  ;;  %v369_v16 = vrot.slane %v7638_v48, %v368_v63 }
 0x10b   :  { %2180 = vmatpush1.bf16.msra.mxu0 %v6034_v59  ;;  %v6106_v59 = vld [vmem:[%s8740_s3 + $0x7c0] ss:$24 sps:$4 sm:$0xff]  }
 0x10c   :  { %2181 = vmatprep.subr.bf16.mxu0 %v6042_v52  ;;  %v373_v52 = vrot.slane %v7638_v48, %v372_v3  ;;  %v401_v1 = vmul.f32 %v7663_v60, %v369_v16  ;;  %v6245_v16 = vld [vmem:[%s8742_s5 + $0x690] ss:$24 sps:$4 sm:$0xff]  }
 0x10d   :  { %4028 = vmatpush1.bf16.msra.mxu1 %v6049_v19  ;;  %v6114_v19 = vld [vmem:[%s8740_s3 + $0x794] ss:$24 sps:$4 sm:$0xff]  }
 0x10e   :  { %4029 = vmatprep.subr.bf16.mxu1 %v6057_v0  ;;  %v6123_v0 = vld [vmem:[%s8742_s5 + $0x184] ss:$24 sps:$4 sm:$0xff]   ;;  %v402_v5 = vmul.f32 %v7663_v60, %v373_v52  ;;  %v6148_v52 = vld [vmem:[%s8742_s5 + $0x5d0] ss:$24 sps:$4 sm:$0xff]  }
 0x10f   :  { %2182 = vmatpush1.bf16.msra.mxu0 %v6040_v2  ;;  %v6112_v2 = vld [vmem:[%s8740_s3 + $0x790] ss:$24 sps:$4 sm:$0xff]  }
 0x110   :  { %2183 = vmatprep.subr.bf16.mxu0 %v6048_v4  ;;  %v7684_v4 = vld [vmem:[%s8739_s2] sm:$0xff] }
 0x111   :  { %4030 = vmatpush1.bf16.msra.mxu1 %v6055_v6  ;;  %v6121_v6 = vld [vmem:[%s8742_s5 + $0x180] ss:$24 sps:$4 sm:$0xff]  }
 0x112   :  { %4031 = vmatprep.subr.bf16.mxu1 %v6063_v7  ;;  %v6126_v7 = vld [vmem:[%s8742_s5 + $0x454] ss:$24 sps:$4 sm:$0xff]  }
 0x113   :  { %2184 = vmatpush1.bf16.msra.mxu0 %v6046_v8  ;;  %v1882_v8 = vadd.f32 %v7486_v54, %v401_v1  ;;  %v6127_v54 = vld [vmem:[%s8742_s5 + $0x420] ss:$24 sps:$4 sm:$0xff]  }
 0x114   :  { %2185 = vmatprep.subr.bf16.mxu0 %v6054_v9  ;;  %v1884_v9 = vadd.f32 %v7496_v57, %v402_v5  ;;  %v6151_v1 = vld [vmem:[%s8742_s5 + $0x5a0] ss:$24 sps:$4 sm:$0xff]   ;;  %v6257_v5 = vld [vmem:[%s8742_s5 + $0x630] ss:$24 sps:$4 sm:$0xff]  }
 0x115   :  { %4032 = vmatpush1.bf16.msra.mxu1 %v6061_v10  ;;  %v2227_v10 = vrot.slane %v7684_v4, %v6781_v49 }
 0x116   :  { %4033 = vmatprep.subr.bf16.mxu1 %v6069_v11  ;;  %v6124_v11 = vld [vmem:[%s8742_s5 + $0x450] ss:$24 sps:$4 sm:$0xff]  }
 0x117   :  { %2186 = vmatpush1.bf16.msra.mxu0 %v6052_v12  ;;  %v6129_v12 = vld [vmem:[%s8742_s5 + $0x424] ss:$24 sps:$4 sm:$0xff]  }
 0x118   :  { %2187 = vmatprep.subr.bf16.mxu0 %v6060_v13  ;;  %v1923_v13 = vadd.f32 %v7498_v58, %v1882_v8  ;;  %v6159_v8 = vld [vmem:[%s8742_s5 + $0x544] ss:$24 sps:$4 sm:$0xff]  }
 0x119   :  { %4034 = vmatpush1.bf16.msra.mxu1 %v6067_v14  ;;  %v1925_v14 = vadd.f32 %v7507_v61, %v1884_v9  ;;  %v6263_v9 = vld [vmem:[%s8742_s5 + $0x600] ss:$24 sps:$4 sm:$0xff]  }
 0x11a   :  { %4035 = vmatprep.subr.bf16.mxu1 %v6075_v15 }
 0x11b   :  { %2188 = vmatpush1.bf16.msra.mxu0 %v6058_v17  ;;  %v2235_v17 = vcombine.high %v2227_v10, %v2227_v10 }
 0x11c   :  { %2189 = vmatprep.subr.bf16.mxu0 %v6066_v18 }
 0x11d   :  { %4036 = vmatpush1.bf16.msra.mxu1 %v6073_v20  ;;  %v6132_v20 = vld [vmem:[%s8742_s5 + $0x3f4] ss:$24 sps:$4 sm:$0xff]  }
 0x11e   :  { %4037 = vmatprep.subr.bf16.mxu1 %v6081_v21 }
 0x11f   :  { %2190 = vmatpush1.bf16.msra.mxu0 %v6064_v22  ;;  %v6130_v22 = vld [vmem:[%s8742_s5 + $0x3f0] ss:$24 sps:$4 sm:$0xff]  }
 0x120   :  { %2191 = vmatprep.subr.bf16.mxu0 %v6072_v23 }
 0x121   :  { %4038 = vmatpush1.bf16.msra.mxu1 %v6079_v24 }
 0x122   :  { %4039 = vmatprep.subr.bf16.mxu1 %v6087_v25 }
 0x123   :  { %2192 = vmatpush2.bf16.msra.mxu0 %v6070_v26  ;;  %v6135_v26 = vld [vmem:[%s8742_s5 + $0x3c4] ss:$24 sps:$4 sm:$0xff]  }
 0x124   :  { %2193 = vmatprep.subr.bf16.mxu0 %v6078_v27 }
 0x125   :  { %4040 = vmatpush2.bf16.msra.mxu1 %v6085_v28 }
 0x126   :  { %4041 = vmatprep.subr.bf16.mxu1 %v6093_v30  ;;  %v6133_v30 = vld [vmem:[%s8742_s5 + $0x3c0] ss:$24 sps:$4 sm:$0xff]  }
 0x127   :  { %2194 = vmatpush2.bf16.msra.mxu0 %v6076_v31 }
 0x128   :  { %2195 = vmatprep.subr.bf16.mxu0 %v6084_v32 }
 0x129   :  { %4042 = vmatpush2.bf16.msra.mxu1 %v6091_v33  ;;  %v6223_v33 = vld [vmem:[%s8742_s5 + $0x754] ss:$24 sps:$4 sm:$0xff]  }
 0x12a   :  { %4043 = vmatprep.subr.bf16.mxu1 %v6099_v34  ;;  %v6221_v34 = vld [vmem:[%s8742_s5 + $0x750] ss:$24 sps:$4 sm:$0xff]  }
 0x12b   :  { %2196 = vmatpush2.bf16.msra.mxu0 %v6082_v35  ;;  %v6138_v35 = vld [vmem:[%s8742_s5 + $0x394] ss:$24 sps:$4 sm:$0xff]  }
 0x12c   :  { %2197 = vmatprep.subr.bf16.mxu0 %v6090_v36  ;;  %v6229_v36 = vld [vmem:[%s8742_s5 + $0x724] ss:$24 sps:$4 sm:$0xff]  }
 0x12d   :  { %4044 = vmatpush2.bf16.msra.mxu1 %v6097_v37  ;;  %v6136_v37 = vld [vmem:[%s8742_s5 + $0x390] ss:$24 sps:$4 sm:$0xff]  }
 0x12e   :  { %4045 = vmatprep.subr.bf16.mxu1 %v6105_v39  ;;  %v6141_v39 = vld [vmem:[%s8742_s5 + $0x364] ss:$24 sps:$4 sm:$0xff]  }
 0x12f   :  { %2198 = vmatpush2.bf16.msra.mxu0 %v6088_v40  ;;  %v6227_v40 = vld [vmem:[%s8742_s5 + $0x720] ss:$24 sps:$4 sm:$0xff]  }
 0x130   :  { %2199 = vmatprep.subr.bf16.mxu0 %v6096_v41  ;;  %v6235_v41 = vld [vmem:[%s8742_s5 + $0x6f4] ss:$24 sps:$4 sm:$0xff]  }
 0x131   :  { %4046 = vmatpush2.bf16.msra.mxu1 %v6103_v42  ;;  %v6139_v42 = vld [vmem:[%s8742_s5 + $0x360] ss:$24 sps:$4 sm:$0xff]  }
 0x132   :  { %4047 = vmatprep.subr.bf16.mxu1 %v6111_v43  ;;  %v6144_v43 = vld [vmem:[%s8742_s5 + $0x334] ss:$24 sps:$4 sm:$0xff]  }
 0x133   :  { %2200 = vmatpush2.bf16.msra.mxu0 %v6094_v45  ;;  %v6233_v45 = vld [vmem:[%s8742_s5 + $0x6f0] ss:$24 sps:$4 sm:$0xff]  }
 0x134   :  { %2201 = vmatprep.subr.bf16.mxu0 %v6102_v46  ;;  %v6241_v46 = vld [vmem:[%s8742_s5 + $0x6c4] ss:$24 sps:$4 sm:$0xff]  }
 0x135   :  { %4048 = vmatpush2.bf16.msra.mxu1 %v6109_v47  ;;  %v6142_v47 = vld [vmem:[%s8742_s5 + $0x330] ss:$24 sps:$4 sm:$0xff]  }
 0x136   :  { %4049 = vmatprep.subr.bf16.mxu1 %v6117_v50  ;;  %v6147_v50 = vld [vmem:[%s8742_s5 + $0x304] ss:$24 sps:$4 sm:$0xff]  }
 0x137   :  { %2202 = vmatpush2.bf16.msra.mxu0 %v6100_v51  ;;  %v6239_v51 = vld [vmem:[%s8742_s5 + $0x6c0] ss:$24 sps:$4 sm:$0xff]  }
 0x138   :  { %2203 = vmatprep.subr.bf16.mxu0 %v6108_v53  ;;  %v6247_v53 = vld [vmem:[%s8742_s5 + $0x694] ss:$24 sps:$4 sm:$0xff]  }
 0x139   :  { %4050 = vmatpush2.bf16.msra.mxu1 %v6115_v55  ;;  %v6145_v55 = vld [vmem:[%s8742_s5 + $0x300] ss:$24 sps:$4 sm:$0xff]  }
 0x13a   :  { %4051 = vmatprep.subr.bf16.mxu1 %v6120_v56  ;;  %v6150_v56 = vld [vmem:[%s8742_s5 + $0x5d4] ss:$24 sps:$4 sm:$0xff]  }
 0x13b   :  { %2204 = vmatpush2.bf16.msra.mxu0 %v6106_v59  ;;  %v6253_v59 = vld [vmem:[%s8742_s5 + $0x664] ss:$24 sps:$4 sm:$0xff]  }
 0x13c   :  { %2205 = vmatprep.subr.bf16.mxu0 %v6114_v19  ;;  %v6153_v19 = vld [vmem:[%s8742_s5 + $0x5a4] ss:$24 sps:$4 sm:$0xff]  }
 0x13d   :  { %4052 = vmatpush2.bf16.msra.mxu1 %v6118_v62  ;;  %v6251_v62 = vld [vmem:[%s8742_s5 + $0x660] ss:$24 sps:$4 sm:$0xff]  }
 0x13e   :  { %4053 = vmatprep.subr.bf16.mxu1 %v6123_v0  ;;  %v6259_v0 = vld [vmem:[%s8742_s5 + $0x634] ss:$24 sps:$4 sm:$0xff]  }
 0x13f   :  { %2206 = vmatpush2.bf16.msra.mxu0 %v6112_v2  ;;  %v6156_v2 = vld [vmem:[%s8742_s5 + $0x574] ss:$24 sps:$4 sm:$0xff]  }
 0x140   :  { %4064 = vmatprep.subr.bf16.mxu0 %v6126_v7  ;;  %v6154_v7 = vld [vmem:[%s8742_s5 + $0x570] ss:$24 sps:$4 sm:$0xff]  }
 0x141   :  { %4054 = vmatpush2.bf16.msra.mxu1 %v6121_v6  ;;  %v6265_v6 = vld [vmem:[%s8742_s5 + $0x604] ss:$24 sps:$4 sm:$0xff]  }
 0x142   :  { %v1963_v57 = vpop.f32.mrf.mxu0  ;;  %2208 = vmatmul.mubr.bf16.vlgmr.msra.gmra.mxu0 %v7074_v29  ;;  %4105 = vmatprep.subr.bf16.mxu1 %v6223_v33 }
 0x143   :  { %v1964_v15 = vadd.f32 %v1963_v57, %v1923_v13  ;;  %4065 = vmatpush1.bf16.msra.mxu0 %v6124_v11  ;;  %v6157_v11 = vld [vmem:[%s8742_s5 + $0x540] ss:$24 sps:$4 sm:$0xff]   ;;  %v6269_v13 = vld [vmem:[%s8742_s5 + $0x8d0] ss:$24 sps:$4 sm:$0xff]  }
 0x144   :  { %v1965_v18 = vpop.f32.mrf.mxu0  ;;  %4066 = vmatprep.subr.bf16.mxu0 %v6129_v12  ;;  %v7712_v58 = vpop.f32.mrf.mxu1  ;;  %v6162_v12 = vld [vmem:[%s8742_s5 + $0x514] ss:$24 sps:$4 sm:$0xff]  }
 0x145   :  { %v1966_v21 = vadd.f32 %v1965_v18, %v1925_v14  ;;  %v2251_v23 = vadd.f32 %v2227_v10, %v1964_v15  ;;  %v6271_v10 = vld [vmem:[%s8742_s5 + $0x8d4] ss:$24 sps:$4 sm:$0xff]  }
 0x146   :  { %v1967_v29 = vpop.f32.mrf.mxu0  ;;  %v7717_v24 = vpop.f32.mrf.mxu1 }
 0x147   :  { %v2252_v61 = vadd.f32 %v2235_v17, %v1966_v21  ;;  %4067 = vmatpush1.bf16.msra.mxu0 %v6127_v54  ;;  %v7727_v31 = vpack.c.bf16 %v2251_v23, %v2251_v23  ;;  %v6277_v54 = vld [vmem:[%s8742_s5 + $0x8a4] ss:$24 sps:$4 sm:$0xff]  }
 0x148   :  { %v1968_v25 = vpop.f32.mrf.mxu0  ;;  %4068 = vmatprep.subr.bf16.mxu0 %v6132_v20  ;;  %v2008_v27 = vpop.f32.mrf.mxu1 }
 0x149   :  { %v7722_v28 = vpack.c.bf16 %v2252_v61, %v2252_v61 }
 0x14a   :  { %v2009_v32 = vpop.f32.mrf.mxu1 }
 0x14b   :  { %4055 = vmatprep.mubr.bf16.mxu1 %v7722_v28  ;;  %4069 = vmatpush1.bf16.msra.mxu0 %v6130_v22 }
 0x14c   :  { %4056 = vmatmul.mubr.bf16.vlgmr.msra.gmra.mxu1 %v7727_v31  ;;  %4070 = vmatprep.subr.bf16.mxu0 %v6135_v26 }
 0x14d   :  { %4106 = vmatpush1.bf16.msra.mxu1 %v6221_v34 }
 0x14e   :  { %4107 = vmatprep.subr.bf16.mxu1 %v6229_v36 }
 0x14f   :  { %4071 = vmatpush1.bf16.msra.mxu0 %v6133_v30 }
 0x150   :  { %4072 = vmatprep.subr.bf16.mxu0 %v6138_v35 }
 0x151   :  { %4108 = vmatpush1.bf16.msra.mxu1 %v6227_v40 }
 0x152   :  { %4109 = vmatprep.subr.bf16.mxu1 %v6235_v41 }
 0x153   :  { %4073 = vmatpush1.bf16.msra.mxu0 %v6136_v37 }
 0x154   :  { %4074 = vmatprep.subr.bf16.mxu0 %v6141_v39 }
 0x155   :  { %4110 = vmatpush1.bf16.msra.mxu1 %v6233_v45 }
 0x156   :  { %4111 = vmatprep.subr.bf16.mxu1 %v6241_v46 }
 0x157   :  { %4075 = vmatpush1.bf16.msra.mxu0 %v6139_v42 }
 0x158   :  { %4076 = vmatprep.subr.bf16.mxu0 %v6144_v43 }
 0x159   :  { %4112 = vmatpush1.bf16.msra.mxu1 %v6239_v51 }
 0x15a   :  { %4113 = vmatprep.subr.bf16.mxu1 %v6247_v53 }
 0x15b   :  { %4077 = vmatpush1.bf16.msra.mxu0 %v6142_v47 }
 0x15c   :  { %4078 = vmatprep.subr.bf16.mxu0 %v6147_v50 }
 0x15d   :  { %4114 = vmatpush1.bf16.msra.mxu1 %v6245_v16 }
 0x15e   :  { %4115 = vmatprep.subr.bf16.mxu1 %v6253_v59 }
 0x15f   :  { %4079 = vmatpush1.bf16.msra.mxu0 %v6145_v55 }
 0x160   :  { %4080 = vmatprep.subr.bf16.mxu0 %v6150_v56 }
 0x161   :  { %4116 = vmatpush1.bf16.msra.mxu1 %v6251_v62 }
 0x162   :  { %4117 = vmatprep.subr.bf16.mxu1 %v6259_v0 }
 0x163   :  { %4081 = vmatpush2.bf16.msra.mxu0 %v6148_v52 }
 0x164   :  { %4082 = vmatprep.subr.bf16.mxu0 %v6153_v19 }
 0x165   :  { %4118 = vmatpush1.bf16.msra.mxu1 %v6257_v5 }
 0x166   :  { %4119 = vmatprep.subr.bf16.mxu1 %v6265_v6 }
 0x167   :  { %4083 = vmatpush2.bf16.msra.mxu0 %v6151_v1 }
 0x168   :  { %4084 = vmatprep.subr.bf16.mxu0 %v6156_v2 }
 0x169   :  { %4120 = vmatpush1.bf16.msra.mxu1 %v6263_v9 }
 0x16a   :  { %4121 = vmatprep.subr.bf16.mxu1 %v6271_v10 }
 0x16b   :  { %4085 = vmatpush2.bf16.msra.mxu0 %v6154_v7 }
 0x16c   :  { %4086 = vmatprep.subr.bf16.mxu0 %v6159_v8 }
 0x16d   :  { %4122 = vmatpush2.bf16.msra.mxu1 %v6269_v13 }
 0x16e   :  { %14 = vsyncpa [#allocation3], 0  ;;  %v6160_v57 = vld [vmem:[%s8742_s5 + $0x510] ss:$24 sps:$4 sm:$0xff]   ;;  %v6275_v14 = vld [vmem:[%s8742_s5 + $0x8a0] ss:$24 sps:$4 sm:$0xff]   ;;  %4123 = vmatprep.subr.bf16.mxu1 %v6277_v54  ;;  %v2220_v39 = vcombine.high %v7684_v4, %v7684_v4 }
 0x16f   :  { %4087 = vmatpush2.bf16.msra.mxu0 %v6157_v11  ;;  %v6165_v15 = vld [vmem:[%s8742_s5 + $0x4e4] ss:$24 sps:$4 sm:$0xff]   ;;  %v6283_v17 = vld [vmem:[%s8742_s5 + $0x874] ss:$24 sps:$4 sm:$0xff]   ;;  %v376_v18 = vsub.s32 2, %v6766_v44  ;;  %v380_v23 = vsub.s32 3, %v6766_v44 }
 0x170   :  { %4088 = vmatprep.subr.bf16.mxu0 %v6162_v12  ;;  %v6163_v20 = vld [vmem:[%s8742_s5 + $0x4e0] ss:$24 sps:$4 sm:$0xff]   ;;  %v6281_v21 = vld [vmem:[%s8742_s5 + $0x870] ss:$24 sps:$4 sm:$0xff]   ;;  %v6169_v22 = vld [vmem:[%s8742_s5 + $0x4b4] ss:$24 sps:$4 sm:$0xff]   ;;  %v2234_v45 = vrot.slane %v2220_v39, %v6781_v49 }
 0x171   :  { %4124 = vmatpush2.bf16.msra.mxu1 %v6275_v14  ;;  %v6289_v29 = vld [vmem:[%s8742_s5 + $0x844] ss:$24 sps:$4 sm:$0xff]   ;;  %v377_v61 = vrot.slane %v7638_v48, %v376_v18  ;;  %v6167_v25 = vld [vmem:[%s8742_s5 + $0x4b0] ss:$24 sps:$4 sm:$0xff]   ;;  %v6287_v26 = vld [vmem:[%s8742_s5 + $0x840] ss:$24 sps:$4 sm:$0xff]   ;;  %v381_v30 = vrot.slane %v7638_v48, %v380_v23 }
 0x172   :  { %4125 = vmatprep.subr.bf16.mxu1 %v6283_v17  ;;  %v6172_v27 = vld [vmem:[%s8742_s5 + $0x484] ss:$24 sps:$4 sm:$0xff]   ;;  %v6295_v32 = vld [vmem:[%s8742_s5 + $0x814] ss:$24 sps:$4 sm:$0xff]   ;;  %v6170_v34 = vld [vmem:[%s8742_s5 + $0x480] ss:$24 sps:$4 sm:$0xff]   ;;  %v2236_v56 = vcombine.high %v2234_v45, %v2234_v45 }
 0x173   :  { %4089 = vmatpush2.bf16.msra.mxu0 %v6160_v57  ;;  %v403_v33 = vmul.f32 %v7663_v60, %v377_v61  ;;  %v6293_v35 = vld [vmem:[%s8742_s5 + $0x810] ss:$24 sps:$4 sm:$0xff]   ;;  %v6175_v36 = vld [vmem:[%s8742_s5 + $0x15c] ss:$24 sps:$4 sm:$0xff]   ;;  %v404_v37 = vmul.f32 %v7663_v60, %v381_v30  ;;  %v6299_v42 = vld [vmem:[%s8742_s5 + $0x7e0] ss:$24 sps:$4 sm:$0xff]  }
 0x174   :  { %4090 = vmatprep.subr.bf16.mxu0 %v6165_v15  ;;  %v6301_v40 = vld [vmem:[%s8742_s5 + $0x7e4] ss:$24 sps:$4 sm:$0xff]   ;;  %v6307_v4 = vld [vmem:[%s8742_s5 + $0x7b4] ss:$24 sps:$4 sm:$0xff]   ;;  %v6311_v52 = vld [vmem:[%s8742_s5 + $0x780] ss:$24 sps:$4 sm:$0xff]  }
 0x175   :  { %4126 = vmatpush2.bf16.msra.mxu1 %v6281_v21  ;;  %v2005_v41 = vadd.f32 %v7712_v58, %v403_v33  ;;  %v2007_v43 = vadd.f32 %v7717_v24, %v404_v37  ;;  %v6305_v58 = vld [vmem:[%s8742_s5 + $0x7b0] ss:$24 sps:$4 sm:$0xff]   ;;  %v6313_v49 = vld [vmem:[%s8742_s5 + $0x784] ss:$24 sps:$4 sm:$0xff]   ;;  %vm4919_vm1 = vcmask 1041408  }
 0x176   :  { %4127 = vmatprep.subr.bf16.mxu1 %v6289_v29  ;;  %v6319_v5 = vld [vmem:[%s8742_s5 + $0x45c] ss:$24 sps:$4 sm:$0xff]   ;;  %v6173_v7 = vld [vmem:[%s8742_s5 + $0x158] ss:$24 sps:$4 sm:$0xff]   ;;  %v6178_v9 = vld [vmem:[%s8742_s5 + $0x12c] ss:$24 sps:$4 sm:$0xff]  }
 0x177   :  { %4091 = vmatpush2.bf16.msra.mxu0 %v6163_v20  ;;  %v6176_v10 = vld [vmem:[%s8742_s5 + $0x128] ss:$24 sps:$4 sm:$0xff]   ;;  %v6181_v11 = vld [vmem:[%s8742_s5 + $0xfc] ss:$24 sps:$4 sm:$0xff]   ;;  %v6179_v12 = vld [vmem:[%s8742_s5 + $0xf8] ss:$24 sps:$4 sm:$0xff]  }
 0x178   :  { %4092 = vmatprep.subr.bf16.mxu0 %v6169_v22  ;;  %v6184_v13 = vld [vmem:[%s8742_s5 + $0xcc] ss:$24 sps:$4 sm:$0xff]   ;;  %v6182_v54 = vld [vmem:[%s8742_s5 + $0xc8] ss:$24 sps:$4 sm:$0xff]   ;;  %v6187_v57 = vld [vmem:[%s8742_s5 + $0x9c] ss:$24 sps:$4 sm:$0xff]  }
 0x179   :  { %4128 = vmatpush2.bf16.msra.mxu1 %v6287_v26  ;;  %v6185_v14 = vld [vmem:[%s8742_s5 + $0x98] ss:$24 sps:$4 sm:$0xff]   ;;  %v6190_v15 = vld [vmem:[%s8742_s5 + $0x6c] ss:$24 sps:$4 sm:$0xff]   ;;  %v6188_v17 = vld [vmem:[%s8742_s5 + $0x68] ss:$24 sps:$4 sm:$0xff]  }
 0x17a   :  { %4129 = vmatprep.subr.bf16.mxu1 %v6295_v32  ;;  %v6193_v20 = vld [vmem:[%s8742_s5 + $0x3c] ss:$24 sps:$4 sm:$0xff]   ;;  %v6191_v21 = vld [vmem:[%s8742_s5 + $0x38] ss:$24 sps:$4 sm:$0xff]   ;;  %v6196_v22 = vld [vmem:[%s8742_s5 + $0xc] ss:$24 sps:$4 sm:$0xff]  }
 0x17b   :  { %4093 = vmatpush2.bf16.msra.mxu0 %v6167_v25  ;;  %v6194_v29 = vld [vmem:[%s8742_s5 + $0x8] ss:$24 sps:$4 sm:$0xff]   ;;  %v6199_v61 = vld [vmem:[%s8742_s5 + $0x2dc] ss:$24 sps:$4 sm:$0xff]   ;;  %v6197_v25 = vld [vmem:[%s8742_s5 + $0x2d8] ss:$24 sps:$4 sm:$0xff]  }
 0x17c   :  { %4094 = vmatprep.subr.bf16.mxu0 %v6172_v27  ;;  %v6202_v26 = vld [vmem:[%s8742_s5 + $0x2ac] ss:$24 sps:$4 sm:$0xff]   ;;  %v6200_v27 = vld [vmem:[%s8742_s5 + $0x2a8] ss:$24 sps:$4 sm:$0xff]   ;;  %v6205_v30 = vld [vmem:[%s8742_s5 + $0x27c] ss:$24 sps:$4 sm:$0xff]  }
 0x17d   :  { %4130 = vmatpush2.bf16.msra.mxu1 %v6293_v35  ;;  %v6203_v32 = vld [vmem:[%s8742_s5 + $0x278] ss:$24 sps:$4 sm:$0xff]   ;;  %v6208_v33 = vld [vmem:[%s8742_s5 + $0x24c] ss:$24 sps:$4 sm:$0xff]   ;;  %v6211_v35 = vld [vmem:[%s8742_s5 + $0x21c] ss:$24 sps:$4 sm:$0xff]  }
 0x17e   :  { %4131 = vmatprep.subr.bf16.mxu1 %v6301_v40  ;;  %v6214_v37 = vld [vmem:[%s8742_s5 + $0x1ec] ss:$24 sps:$4 sm:$0xff]   ;;  %v6212_v39 = vld [vmem:[%s8742_s5 + $0x1e8] ss:$24 sps:$4 sm:$0xff]   ;;  %v6217_v40 = vld [vmem:[%s8742_s5 + $0x1bc] ss:$24 sps:$4 sm:$0xff]  }
 0x17f   :  { %4095 = vmatpush2.bf16.msra.mxu0 %v6170_v34  ;;  %v6206_v34 = vld [vmem:[%s8742_s5 + $0x248] ss:$24 sps:$4 sm:$0xff]  }
 0x180   :  { %4146 = vmatprep.subr.bf16.mxu0 %v6175_v36  ;;  %v6209_v36 = vld [vmem:[%s8742_s5 + $0x218] ss:$24 sps:$4 sm:$0xff]  }
 0x181   :  { %4132 = vmatpush2.bf16.msra.mxu1 %v6299_v42  ;;  %v6215_v42 = vld [vmem:[%s8742_s5 + $0x1b8] ss:$24 sps:$4 sm:$0xff]  }
 0x182   :  { %v2045_v46 = vpop.f32.mrf.mxu0  ;;  %4133 = vmatprep.subr.bf16.mxu1 %v6307_v4 }
 0x183   :  { %v2046_v47 = vadd.f32 %v2045_v46, %v2005_v41  ;;  %v6220_v46 = vld [vmem:[%s8742_s5 + $0x18c] ss:$24 sps:$4 sm:$0xff]  }
 0x184   :  { %v2047_v50 = vpop.f32.mrf.mxu0  ;;  %v2086_v51 = vpop.f32.mrf.mxu1 }
 0x185   :  { %v2048_v53 = vadd.f32 %v2047_v50, %v2007_v43  ;;  %v2087_v55 = vadd.f32 %v2086_v51, %v2046_v47  ;;  %4134 = vmatpush2.bf16.msra.mxu1 %v6305_v58  ;;  %v6218_v58 = vld [vmem:[%s8742_s5 + $0x188] ss:$24 sps:$4 sm:$0xff]   ;;  %v6226_v51 = vld [vmem:[%s8742_s5 + $0x75c] ss:$24 sps:$4 sm:$0xff]  }
 0x186   :  { %v2049_v24 = vpop.f32.mrf.mxu0  ;;  %v2088_v16 = vpop.f32.mrf.mxu1  ;;  %4135 = vmatprep.subr.bf16.mxu1 %v6313_v49  ;;  %v6238_v49 = vld [vmem:[%s8742_s5 + $0x6fc] ss:$24 sps:$4 sm:$0xff]  }
 0x187   :  { %v2089_v59 = vadd.f32 %v2088_v16, %v2048_v53  ;;  %v2253_v19 = vadd.f32 %v2234_v45, %v2087_v55  ;;  %v6232_v24 = vld [vmem:[%s8742_s5 + $0x72c] ss:$24 sps:$4 sm:$0xff]   ;;  %v6230_v16 = vld [vmem:[%s8742_s5 + $0x728] ss:$24 sps:$4 sm:$0xff]  }
 0x188   :  { %v2050_v62 = vpop.f32.mrf.mxu0  ;;  %v2090_v0 = vpop.f32.mrf.mxu1 }
 0x189   :  { %v2254_v1 = vadd.f32 %v2236_v56, %v2089_v59  ;;  %4136 = vmatpush2.bf16.msra.mxu1 %v6311_v52  ;;  %v7925_v8 = vpack.c.bf16 %v2253_v19, %v2253_v19  ;;  %v6224_v56 = vld [vmem:[%s8742_s5 + $0x758] ss:$24 sps:$4 sm:$0xff]   ;;  %v6244_v52 = vld [vmem:[%s8742_s5 + $0x6cc] ss:$24 sps:$4 sm:$0xff]   ;;  %v6242_v19 = vld [vmem:[%s8742_s5 + $0x6c8] ss:$24 sps:$4 sm:$0xff]  }
 0x18a   :  { %v2091_v2 = vpop.f32.mrf.mxu1  ;;  %4187 = vmatprep.subr.bf16.mxu1 %v6319_v5  ;;  %v6236_v59 = vld [vmem:[%s8742_s5 + $0x6f8] ss:$24 sps:$4 sm:$0xff]   ;;  %v6250_v62 = vld [vmem:[%s8742_s5 + $0x69c] ss:$24 sps:$4 sm:$0xff]  }
 0x18b   :  { %v7920_v6 = vpack.c.bf16 %v2254_v1, %v2254_v1  ;;  %v6248_v0 = vld [vmem:[%s8742_s5 + $0x698] ss:$24 sps:$4 sm:$0xff]   ;;  %v6256_v1 = vld [vmem:[%s8742_s5 + $0x66c] ss:$24 sps:$4 sm:$0xff]   ;;  %v6254_v2 = vld [vmem:[%s8742_s5 + $0x668] ss:$24 sps:$4 sm:$0xff]  }
 0x18c   :  { %v6262_v5 = vld [vmem:[%s8742_s5 + $0x63c] ss:$24 sps:$4 sm:$0xff]  }
 0x18d   :  { %4096 = vmatprep.mubr.bf16.mxu0 %v7920_v6 }
 0x18e   :  { %4097 = vmatmul.mubr.bf16.vlgmr.msra.gmra.mxu0 %v7925_v8 }
 0x18f   :  { %4147 = vmatpush1.bf16.msra.mxu0 %v6173_v7  ;;  %4178 = vmatprep.mubr.bf16.mxu0 %v7722_v28  ;;  %v6260_v7 = vld [vmem:[%s8742_s5 + $0x638] ss:$24 sps:$4 sm:$0xff]  }
 0x190   :  { %4148 = vmatprep.subr.bf16.mxu0 %v6178_v9  ;;  %v6268_v9 = vld [vmem:[%s8742_s5 + $0x60c] ss:$24 sps:$4 sm:$0xff]  }
 0x193   :  { %4149 = vmatpush1.bf16.msra.mxu0 %v6176_v10  ;;  %v6266_v10 = vld [vmem:[%s8742_s5 + $0x608] ss:$24 sps:$4 sm:$0xff]  }
 0x194   :  { %4150 = vmatprep.subr.bf16.mxu0 %v6181_v11  ;;  %v6274_v11 = vld [vmem:[%s8742_s5 + $0x8dc] ss:$24 sps:$4 sm:$0xff]  }
 0x197   :  { %4151 = vmatpush1.bf16.msra.mxu0 %v6179_v12  ;;  %v6272_v12 = vld [vmem:[%s8742_s5 + $0x8d8] ss:$24 sps:$4 sm:$0xff]  }
 0x198   :  { %4152 = vmatprep.subr.bf16.mxu0 %v6184_v13  ;;  %v6280_v13 = vld [vmem:[%s8742_s5 + $0x8ac] ss:$24 sps:$4 sm:$0xff]  }
 0x19b   :  { %4153 = vmatpush1.bf16.msra.mxu0 %v6182_v54  ;;  %v6278_v54 = vld [vmem:[%s8742_s5 + $0x8a8] ss:$24 sps:$4 sm:$0xff]  }
 0x19c   :  { %4154 = vmatprep.subr.bf16.mxu0 %v6187_v57  ;;  %v6286_v57 = vld [vmem:[%s8742_s5 + $0x87c] ss:$24 sps:$4 sm:$0xff]  }
 0x19f   :  { %4155 = vmatpush1.bf16.msra.mxu0 %v6185_v14  ;;  %v384_v14 = vsub.s32 4, %v6766_v44 }
 0x1a0   :  { %4156 = vmatprep.subr.bf16.mxu0 %v6190_v15  ;;  %v6284_v15 = vld [vmem:[%s8742_s5 + $0x878] ss:$24 sps:$4 sm:$0xff]  }
 0x1a3   :  { %4157 = vmatpush1.bf16.msra.mxu0 %v6188_v17  ;;  %v6292_v17 = vld [vmem:[%s8742_s5 + $0x84c] ss:$24 sps:$4 sm:$0xff]  }
 0x1a4   :  { %4158 = vmatprep.subr.bf16.mxu0 %v6193_v20  ;;  %v388_v20 = vsub.s32 5, %v6766_v44 }
 0x1a7   :  { %4159 = vmatpush1.bf16.msra.mxu0 %v6191_v21  ;;  %v385_v21 = vrot.slane %v7638_v48, %v384_v14 }
 0x1a8   :  { %4160 = vmatprep.subr.bf16.mxu0 %v6196_v22  ;;  %v6290_v22 = vld [vmem:[%s8742_s5 + $0x848] ss:$24 sps:$4 sm:$0xff]  }
 0x1ab   :  { %4161 = vmatpush1.bf16.msra.mxu0 %v6194_v29  ;;  %v6298_v29 = vld [vmem:[%s8742_s5 + $0x81c] ss:$24 sps:$4 sm:$0xff]  }
 0x1ac   :  { %4162 = vmatprep.subr.bf16.mxu0 %v6199_v61  ;;  %v389_v61 = vrot.slane %v7638_v48, %v388_v20  ;;  %v6302_v48 = vld [vmem:[%s8742_s5 + $0x7e8] ss:$24 sps:$4 sm:$0xff]  }
 0x1af   :  { %4163 = vmatpush2.bf16.msra.mxu0 %v6197_v25  ;;  %v405_v25 = vmul.f32 %v7663_v60, %v385_v21  ;;  %v6352_v21 = vld [vmem:[%s8742_s5 + $0x374] ss:$24 sps:$4 sm:$0xff]  }
 0x1b0   :  { %4164 = vmatprep.subr.bf16.mxu0 %v6202_v26  ;;  %v6296_v26 = vld [vmem:[%s8742_s5 + $0x818] ss:$24 sps:$4 sm:$0xff]  }
 0x1b3   :  { %4165 = vmatpush2.bf16.msra.mxu0 %v6200_v27  ;;  %v6304_v27 = vld [vmem:[%s8742_s5 + $0x7ec] ss:$24 sps:$4 sm:$0xff]  }
 0x1b4   :  { %4166 = vmatprep.subr.bf16.mxu0 %v6205_v30 }
 0x1b7   :  { %4167 = vmatpush2.bf16.msra.mxu0 %v6203_v32  ;;  %v406_v32 = vmul.f32 %v7663_v60, %v389_v61  ;;  %v6350_v61 = vld [vmem:[%s8742_s5 + $0x370] ss:$24 sps:$4 sm:$0xff]  }
 0x1b8   :  { %4168 = vmatprep.subr.bf16.mxu0 %v6208_v33 }
 0x1bb   :  { %4169 = vmatpush2.bf16.msra.mxu0 %v6206_v34  ;;  %v5235_v34 = vld.sshfl [vmem:[%s8739_s2 + $0x8] sm:$0x33 pattern:$0x76325410] }
 0x1bc   :  { %4170 = vmatprep.subr.bf16.mxu0 %v6211_v35  ;;  %v6310_v35 = vld [vmem:[%s8742_s5 + $0x7bc] ss:$24 sps:$4 sm:$0xff]  }
 0x1bf   :  { %4171 = vmatpush2.bf16.msra.mxu0 %v6209_v36 }
 0x1c0   :  { %4172 = vmatprep.subr.bf16.mxu0 %v6214_v37 }
 0x1c2   :  { %v8011_v41 = vpop.f32.mrf.mxu0 }
 0x1c3   :  { %4173 = vmatpush2.bf16.msra.mxu0 %v6212_v39  ;;  %v2128_v30 = vadd.f32 %v8011_v41, %v405_v25  ;;  %v6308_v41 = vld [vmem:[%s8742_s5 + $0x7b8] ss:$24 sps:$4 sm:$0xff]   ;;  %v6358_v25 = vld [vmem:[%s8742_s5 + $0x344] ss:$24 sps:$4 sm:$0xff]  }
 0x1c4   :  { %v8016_v43 = vpop.f32.mrf.mxu0  ;;  %v8018_v45 = vpop.f32.mrf.mxu1  ;;  %4174 = vmatprep.subr.bf16.mxu0 %v6217_v40  ;;  %v2244_v40 = vcombine.high %v5235_v34, %v5235_v34 }
 0x1c5   :  { %v2130_v33 = vadd.f32 %v8016_v43, %v406_v32  ;;  %v2169_v36 = vadd.f32 %v8018_v45, %v2128_v30  ;;  %v6316_v43 = vld [vmem:[%s8742_s5 + $0x78c] ss:$24 sps:$4 sm:$0xff]   ;;  %v6356_v30 = vld [vmem:[%s8742_s5 + $0x340] ss:$24 sps:$4 sm:$0xff]  }
 0x1c6   :  { %v2131_v4 = vpop.f32.mrf.mxu0  ;;  %v8023_v47 = vpop.f32.mrf.mxu1  ;;  %v6364_v32 = vld [vmem:[%s8742_s5 + $0x314] ss:$24 sps:$4 sm:$0xff]  }
 0x1c7   :  { %4175 = vmatpush2.bf16.msra.mxu0 %v6215_v42  ;;  %v2171_v60 = vadd.f32 %v8023_v47, %v2130_v33  ;;  %v6314_v47 = vld [vmem:[%s8742_s5 + $0x788] ss:$24 sps:$4 sm:$0xff]  }
 0x1c8   :  { %v2132_v50 = vpop.f32.mrf.mxu0  ;;  %4176 = vmatprep.subr.bf16.mxu0 %v6220_v46  ;;  %v2172_v53 = vpop.f32.mrf.mxu1  ;;  %v6359_v33 = vld [vmem:[%s8742_s5 + $0x308] ss:$24 sps:$4 sm:$0xff]  }
 0x1c9   :  { %v6317_v53 = vld [vmem:[%s8742_s5 + $0x458] ss:$24 sps:$4 sm:$0xff]  }
 0x1ca   :  { %v2173_v55 = vpop.f32.mrf.mxu1 }
 0x1cb   :  { %4177 = vmatpush2.bf16.msra.mxu0 %v6218_v58 }
 0x1cc   :  { %4228 = vmatprep.subr.bf16.mxu0 %v6226_v51 }
 0x1ce   :  { %4179 = vmatmul.mubr.bf16.vlgmr.msra.gmra.mxu0 %v7727_v31 }
 0x1cf   :  { %4229 = vmatpush1.bf16.msra.mxu0 %v6224_v56  ;;  %v6322_v56 = vld [vmem:[%s8742_s5 + $0x464] ss:$24 sps:$4 sm:$0xff]  }
 0x1d0   :  { %4230 = vmatprep.subr.bf16.mxu0 %v6232_v24  ;;  %v6320_v24 = vld [vmem:[%s8742_s5 + $0x460] ss:$24 sps:$4 sm:$0xff]  }
 0x1d3   :  { %4231 = vmatpush1.bf16.msra.mxu0 %v6230_v16 }
 0x1d4   :  { %4232 = vmatprep.subr.bf16.mxu0 %v6238_v49  ;;  %v6325_v49 = vld [vmem:[%s8742_s5 + $0x42c] ss:$24 sps:$4 sm:$0xff]  }
 0x1d7   :  { %4233 = vmatpush1.bf16.msra.mxu0 %v6236_v59  ;;  %v6328_v59 = vld [vmem:[%s8742_s5 + $0x434] ss:$24 sps:$4 sm:$0xff]  }
 0x1d8   :  { %4234 = vmatprep.subr.bf16.mxu0 %v6244_v52  ;;  %v6323_v52 = vld [vmem:[%s8742_s5 + $0x428] ss:$24 sps:$4 sm:$0xff]  }
 0x1db   :  { %4235 = vmatpush1.bf16.msra.mxu0 %v6242_v19 }
 0x1dc   :  { %4236 = vmatprep.subr.bf16.mxu0 %v6250_v62  ;;  %v6331_v62 = vld [vmem:[%s8742_s5 + $0x3fc] ss:$24 sps:$4 sm:$0xff]  }
 0x1df   :  { %4237 = vmatpush1.bf16.msra.mxu0 %v6248_v0  ;;  %v6326_v0 = vld [vmem:[%s8742_s5 + $0x430] ss:$24 sps:$4 sm:$0xff]  }
 0x1e0   :  { %4238 = vmatprep.subr.bf16.mxu0 %v6256_v1 }
 0x1e3   :  { %4239 = vmatpush1.bf16.msra.mxu0 %v6254_v2  ;;  %v6334_v2 = vld [vmem:[%s8742_s5 + $0x404] ss:$24 sps:$4 sm:$0xff]  }
 0x1e4   :  { %4240 = vmatprep.subr.bf16.mxu0 %v6262_v5  ;;  %v6329_v5 = vld [vmem:[%s8742_s5 + $0x3f8] ss:$24 sps:$4 sm:$0xff]  }
 0x1e7   :  { %4241 = vmatpush1.bf16.msra.mxu0 %v6260_v7 }
 0x1e8   :  { %4242 = vmatprep.subr.bf16.mxu0 %v6268_v9  ;;  %v6332_v9 = vld [vmem:[%s8742_s5 + $0x400] ss:$24 sps:$4 sm:$0xff]  }
 0x1eb   :  { %4243 = vmatpush1.bf16.msra.mxu0 %v6266_v10  ;;  %v6340_v10 = vld [vmem:[%s8742_s5 + $0x3d4] ss:$24 sps:$4 sm:$0xff]  }
 0x1ec   :  { %4244 = vmatprep.subr.bf16.mxu0 %v6274_v11  ;;  %v6335_v11 = vld [vmem:[%s8742_s5 + $0x3c8] ss:$24 sps:$4 sm:$0xff]  }
 0x1ef   :  { %4245 = vmatpush2.bf16.msra.mxu0 %v6272_v12  ;;  %v6343_v12 = vld [vmem:[%s8742_s5 + $0x39c] ss:$24 sps:$4 sm:$0xff]  }
 0x1f0   :  { %4246 = vmatprep.subr.bf16.mxu0 %v6280_v13  ;;  %v6338_v13 = vld [vmem:[%s8742_s5 + $0x3d0] ss:$24 sps:$4 sm:$0xff]  }
 0x1f3   :  { %4247 = vmatpush2.bf16.msra.mxu0 %v6278_v54  ;;  %v6346_v54 = vld [vmem:[%s8742_s5 + $0x3a4] ss:$24 sps:$4 sm:$0xff]  }
 0x1f4   :  { %4248 = vmatprep.subr.bf16.mxu0 %v6286_v57  ;;  %v6341_v57 = vld [vmem:[%s8742_s5 + $0x398] ss:$24 sps:$4 sm:$0xff]  }
 0x1f7   :  { %4249 = vmatpush2.bf16.msra.mxu0 %v6284_v15  ;;  %v6349_v15 = vld [vmem:[%s8742_s5 + $0x36c] ss:$24 sps:$4 sm:$0xff]  }
 0x1f8   :  { %4250 = vmatprep.subr.bf16.mxu0 %v6292_v17  ;;  %v6344_v17 = vld [vmem:[%s8742_s5 + $0x3a0] ss:$24 sps:$4 sm:$0xff]  }
 0x1fb   :  { %4251 = vmatpush2.bf16.msra.mxu0 %v6290_v22  ;;  %v6347_v22 = vld [vmem:[%s8742_s5 + $0x368] ss:$24 sps:$4 sm:$0xff]  }
 0x1fc   :  { %4252 = vmatprep.subr.bf16.mxu0 %v6298_v29  ;;  %v6355_v29 = vld [vmem:[%s8742_s5 + $0x33c] ss:$24 sps:$4 sm:$0xff]  }
 0x1ff   :  { %4253 = vmatpush2.bf16.msra.mxu0 %v6296_v26  ;;  %v6353_v26 = vld [vmem:[%s8742_s5 + $0x338] ss:$24 sps:$4 sm:$0xff]  }
 0x200   :  { %4254 = vmatprep.subr.bf16.mxu0 %v6304_v27  ;;  %v6361_v27 = vld [vmem:[%s8742_s5 + $0x30c] ss:$24 sps:$4 sm:$0xff]  }
 0x202   :  { %v2209_v37 = vpop.f32.mrf.mxu0 }
 0x203   :  { %v2210_v39 = vadd.f32 %v2209_v37, %v2169_v36  ;;  %4255 = vmatpush2.bf16.msra.mxu0 %v6302_v48  ;;  %v6367_v48 = vld [vmem:[%s8742_s5 + $0x5dc] ss:$24 sps:$4 sm:$0xff]   ;;  %v6365_v36 = vld [vmem:[%s8742_s5 + $0x5d8] ss:$24 sps:$4 sm:$0xff]   ;;  %v6373_v37 = vld [vmem:[%s8742_s5 + $0x5ac] ss:$24 sps:$4 sm:$0xff]  }
 0x204   :  { %v2211_v42 = vpop.f32.mrf.mxu0  ;;  %4256 = vmatprep.subr.bf16.mxu0 %v6310_v35  ;;  %v6370_v35 = vld [vmem:[%s8742_s5 + $0x5e4] ss:$24 sps:$4 sm:$0xff]  }
 0x205   :  { %v2212_v46 = vadd.f32 %v2211_v42, %v2171_v60  ;;  %v2255_v4 = vadd.f32 %v5235_v34, %v2210_v39  ;;  %v6362_v34 = vld [vmem:[%s8742_s5 + $0x310] ss:$24 sps:$4 sm:$0xff]   ;;  %v6368_v60 = vld [vmem:[%s8742_s5 + $0x5e0] ss:$24 sps:$4 sm:$0xff]   ;;  %v6376_v39 = vld [vmem:[%s8742_s5 + $0x5b4] ss:$24 sps:$4 sm:$0xff]  }
 0x206   :  { %v2213_v58 = vpop.f32.mrf.mxu0  ;;  %v6374_v42 = vld [vmem:[%s8742_s5 + $0x5b0] ss:$24 sps:$4 sm:$0xff]  }
 0x207   :  { %v2256_v45 = vadd.f32 %v2244_v40, %v2212_v46  ;;  %4257 = vmatpush2.bf16.msra.mxu0 %v6308_v41  ;;  %v8147_v55 = vpack.c.bf16 %v2255_v4, %v2255_v4  ;;  %v6371_v40 = vld [vmem:[%s8742_s5 + $0x5a8] ss:$24 sps:$4 sm:$0xff]   ;;  %v6379_v41 = vld [vmem:[%s8742_s5 + $0x57c] ss:$24 sps:$4 sm:$0xff]   ;;  %v6377_v46 = vld [vmem:[%s8742_s5 + $0x578] ss:$24 sps:$4 sm:$0xff]  }
 0x208   :  { %v2214_v50 = vpop.f32.mrf.mxu0  ;;  %4258 = vmatprep.subr.bf16.mxu0 %v6316_v43  ;;  %v6382_v43 = vld [vmem:[%s8742_s5 + $0x584] ss:$24 sps:$4 sm:$0xff]   ;;  %v6380_v58 = vld [vmem:[%s8742_s5 + $0x580] ss:$24 sps:$4 sm:$0xff]  }
 0x209   :  { %v8142_v51 = vpack.c.bf16 %v2256_v45, %v2256_v45  ;;  %v6385_v4 = vld [vmem:[%s8742_s5 + $0x54c] ss:$24 sps:$4 sm:$0xff]   ;;  %v6391_v50 = vld [vmem:[%s8742_s5 + $0x51c] ss:$24 sps:$4 sm:$0xff]  }
 0x20a   :  { %v6388_v45 = vld [vmem:[%s8742_s5 + $0x554] ss:$24 sps:$4 sm:$0xff]  }
 0x20b   :  { %4259 = vmatpush2.bf16.msra.mxu0 %v6314_v47  ;;  %4137 = vmatprep.mubr.bf16.mxu1 %v8142_v51  ;;  %v6383_v47 = vld [vmem:[%s8742_s5 + $0x548] ss:$24 sps:$4 sm:$0xff]  }
 0x20c   :  { %4260 = vmatprep.mubr.bf16.mxu0 %v8142_v51  ;;  %v8157_v16 = vpop.f32.mrf.mxu1  ;;  %4138 = vmatmul.mubr.bf16.vlgmr.msra.gmra.mxu1 %v8147_v55 }
 0x20d   :  { %4188 = vmatpush1.bf16.msra.mxu1 %v6317_v53  ;;  %4219 = vmatprep.mubr.bf16.mxu1 %v7920_v6  ;;  %v6386_v53 = vld [vmem:[%s8742_s5 + $0x550] ss:$24 sps:$4 sm:$0xff]  }
 0x20e   :  { %4261 = vmatmul.mubr.bf16.vlgmr.msra.gmra.mxu0 %v8147_v55  ;;  %4310 = vmatprep.subr.bf16.mxu0 %v6322_v56  ;;  %v8171_v19 = vpop.f32.mrf.mxu1  ;;  %v6394_v56 = vld [vmem:[%s8742_s5 + $0x524] ss:$24 sps:$4 sm:$0xff]  }
 0x20f   :  { %4311 = vmatpush1.bf16.msra.mxu0 %v6320_v24  ;;  %4342 = vmatprep.mubr.bf16.mxu0 %v7920_v6  ;;  %v6337_v6 = vld [vmem:[%s8742_s5 + $0x3cc] ss:$24 sps:$4 sm:$0xff]   ;;  %v6389_v24 = vld [vmem:[%s8742_s5 + $0x518] ss:$24 sps:$4 sm:$0xff]  }
 0x210   :  { %4189 = vmatprep.subr.bf16.mxu1 %v6325_v49  ;;  %v4061_v1 = vpop.f32.mrf.mxu1  ;;  %4312 = vmatprep.subr.bf16.mxu0 %v6328_v59  ;;  %v6397_v49 = vld [vmem:[%s8742_s5 + $0x4ec] ss:$24 sps:$4 sm:$0xff]   ;;  %v6392_v59 = vld [vmem:[%s8742_s5 + $0x520] ss:$24 sps:$4 sm:$0xff]  }
 0x211   :  { %4190 = vmatpush1.bf16.msra.mxu1 %v6323_v52  ;;  %v6400_v52 = vld [vmem:[%s8742_s5 + $0x4f4] ss:$24 sps:$4 sm:$0xff]   ;;  %v6398_v1 = vld [vmem:[%s8742_s5 + $0x4f0] ss:$24 sps:$4 sm:$0xff]  }
 0x212   :  { %v4062_v7 = vpop.f32.mrf.mxu1  ;;  %4191 = vmatprep.subr.bf16.mxu1 %v6331_v62  ;;  %v6395_v62 = vld [vmem:[%s8742_s5 + $0x4e8] ss:$24 sps:$4 sm:$0xff]  }
 0x213   :  { %4313 = vmatpush1.bf16.msra.mxu0 %v6326_v0  ;;  %v6403_v0 = vld [vmem:[%s8742_s5 + $0x4bc] ss:$24 sps:$4 sm:$0xff]   ;;  %v6409_v7 = vld [vmem:[%s8742_s5 + $0x48c] ss:$24 sps:$4 sm:$0xff]  }
 0x214   :  { %4314 = vmatprep.subr.bf16.mxu0 %v6334_v2  ;;  %v6406_v2 = vld [vmem:[%s8742_s5 + $0x4c4] ss:$24 sps:$4 sm:$0xff]  }
 0x215   :  { %4192 = vmatpush1.bf16.msra.mxu1 %v6329_v5  ;;  %v6401_v5 = vld [vmem:[%s8742_s5 + $0x4b8] ss:$24 sps:$4 sm:$0xff]  }
 0x216   :  { %4193 = vmatprep.subr.bf16.mxu1 %v6337_v6  ;;  %v6404_v6 = vld [vmem:[%s8742_s5 + $0x4c0] ss:$24 sps:$4 sm:$0xff]  }
 0x217   :  { %4315 = vmatpush1.bf16.msra.mxu0 %v6332_v9  ;;  %v6412_v9 = vld [vmem:[%s8742_s5 + $0x494] ss:$24 sps:$4 sm:$0xff]  }
 0x218   :  { %4316 = vmatprep.subr.bf16.mxu0 %v6340_v10  ;;  %v6407_v10 = vld [vmem:[%s8742_s5 + $0x488] ss:$24 sps:$4 sm:$0xff]  }
 0x219   :  { %4194 = vmatpush1.bf16.msra.mxu1 %v6335_v11  ;;  %v8345_v11 = vld [vmem:[%s8743_s6] sm:$0x3f] }
 0x21a   :  { %4195 = vmatprep.subr.bf16.mxu1 %v6343_v12  ;;  %v6415_v12 = vld [vmem:[%s8742_s5 + $0x164] ss:$24 sps:$4 sm:$0xff]  }
 0x21b   :  { %4317 = vmatpush1.bf16.msra.mxu0 %v6338_v13  ;;  %v6410_v13 = vld [vmem:[%s8742_s5 + $0x490] ss:$24 sps:$4 sm:$0xff]  }
 0x21c   :  { %4318 = vmatprep.subr.bf16.mxu0 %v6346_v54  ;;  %v6503_v54 = vld [vmem:[%s8744_s7 + $0x78] sm:$0xff]  }
 0x21d   :  { %4196 = vmatpush1.bf16.msra.mxu1 %v6341_v57  ;;  %v2556_v57 = vrot.slane %v8345_v11, %v368_v63  ;;  %v6508_v63 = vld [vmem:[%s8744_s7 + $0x70] sm:$0xff]  }
 0x21e   :  { %4197 = vmatprep.subr.bf16.mxu1 %v6349_v15  ;;  %v6413_v15 = vld [vmem:[%s8742_s5 + $0x160] ss:$24 sps:$4 sm:$0xff]  }
 0x21f   :  { %4319 = vmatpush1.bf16.msra.mxu0 %v6344_v17  ;;  %v6418_v17 = vld [vmem:[%s8742_s5 + $0x134] ss:$24 sps:$4 sm:$0xff]  }
 0x220   :  { %4320 = vmatprep.subr.bf16.mxu0 %v6352_v21  ;;  %v2560_v21 = vrot.slane %v8345_v11, %v372_v3  ;;  %v6416_v3 = vld [vmem:[%s8742_s5 + $0x130] ss:$24 sps:$4 sm:$0xff]  }
 0x221   :  { %4198 = vmatpush1.bf16.msra.mxu1 %v6347_v22  ;;  %v6507_v22 = vld [vmem:[%s8744_s7 + $0x38] sm:$0xff]  }
 0x222   :  { %4199 = vmatprep.subr.bf16.mxu1 %v6355_v29  ;;  %v4058_v29 = vadd.f32 %v8157_v16, %v2556_v57  ;;  %v6460_v57 = vld [vmem:[%s8742_s5 + $0x194] ss:$24 sps:$4 sm:$0xff]  }
 0x223   :  { %4321 = vmatpush1.bf16.msra.mxu0 %v6350_v61 }
 0x224   :  { %4322 = vmatprep.subr.bf16.mxu0 %v6358_v25  ;;  %v6421_v25 = vld [vmem:[%s8742_s5 + $0x104] ss:$24 sps:$4 sm:$0xff]  }
 0x225   :  { %4200 = vmatpush1.bf16.msra.mxu1 %v6353_v26  ;;  %v4060_v26 = vadd.f32 %v8171_v19, %v2560_v21  ;;  %v6419_v19 = vld [vmem:[%s8742_s5 + $0x100] ss:$24 sps:$4 sm:$0xff]  }
 0x226   :  { %4201 = vmatprep.subr.bf16.mxu1 %v6361_v27  ;;  %v6461_v21 = vld [vmem:[%s8742_s5 + $0x760] ss:$24 sps:$4 sm:$0xff]  }
 0x227   :  { %4323 = vmatpush1.bf16.msra.mxu0 %v6356_v30 }
 0x228   :  { %4324 = vmatprep.subr.bf16.mxu0 %v6364_v32 }
 0x229   :  { %4202 = vmatpush1.bf16.msra.mxu1 %v6359_v33  ;;  %v6424_v33 = vld [vmem:[%s8742_s5 + $0xd4] ss:$24 sps:$4 sm:$0xff]  }
 0x22a   :  { %4203 = vmatprep.subr.bf16.mxu1 %v6367_v48  ;;  %v6514_v48 = vld [vmem:[%s8744_s7 + $0x28] sm:$0xff]  }
 0x22b   :  { %4325 = vmatpush1.bf16.msra.mxu0 %v6362_v34 }
 0x22c   :  { %4326 = vmatprep.subr.bf16.mxu0 %v6370_v35  ;;  %v6515_v35 = vld [vmem:[%s8744_s7 + $0x60] sm:$0xff]  }
 0x22d   :  { %4204 = vmatpush2.bf16.msra.mxu1 %v6365_v36  ;;  %v6422_v36 = vld [vmem:[%s8742_s5 + $0xd0] ss:$24 sps:$4 sm:$0xff]  }
 0x22e   :  { %4205 = vmatprep.subr.bf16.mxu1 %v6373_v37  ;;  %v6427_v37 = vld [vmem:[%s8742_s5 + $0xa4] ss:$24 sps:$4 sm:$0xff]  }
 0x22f   :  { %4327 = vmatpush2.bf16.msra.mxu0 %v6368_v60  ;;  %v6516_v60 = vld [vmem:[%s8744_s7 + $0x20] sm:$0xff]  }
 0x230   :  { %4328 = vmatprep.subr.bf16.mxu0 %v6376_v39  ;;  %v6517_v39 = vld [vmem:[%s8744_s7 + $0x58] sm:$0xff]  }
 0x231   :  { %4206 = vmatpush2.bf16.msra.mxu1 %v6371_v40  ;;  %v6425_v40 = vld [vmem:[%s8742_s5 + $0xa0] ss:$24 sps:$4 sm:$0xff]  }
 0x232   :  { %4207 = vmatprep.subr.bf16.mxu1 %v6379_v41  ;;  %v6430_v41 = vld [vmem:[%s8742_s5 + $0x74] ss:$24 sps:$4 sm:$0xff]  }
 0x233   :  { %4329 = vmatpush2.bf16.msra.mxu0 %v6374_v42  ;;  %v6518_v42 = vld [vmem:[%s8744_s7 + $0x18] sm:$0xff]  }
 0x234   :  { %4330 = vmatprep.subr.bf16.mxu0 %v6382_v43  ;;  %v6519_v43 = vld [vmem:[%s8744_s7 + $0x50] sm:$0xff]  }
 0x235   :  { %4208 = vmatpush2.bf16.msra.mxu1 %v6377_v46  ;;  %v6428_v46 = vld [vmem:[%s8742_s5 + $0x70] ss:$24 sps:$4 sm:$0xff]  }
 0x236   :  { %4209 = vmatprep.subr.bf16.mxu1 %v6385_v4  ;;  %v6433_v4 = vld [vmem:[%s8742_s5 + $0x44] ss:$24 sps:$4 sm:$0xff]  }
 0x237   :  { %4331 = vmatpush2.bf16.msra.mxu0 %v6380_v58  ;;  %v6520_v58 = vld [vmem:[%s8744_s7 + $0x10] sm:$0xff]  }
 0x238   :  { %4332 = vmatprep.subr.bf16.mxu0 %v6388_v45  ;;  %v6521_v45 = vld [vmem:[%s8744_s7 + $0x48] sm:$0xff]  }
 0x239   :  { %4210 = vmatpush2.bf16.msra.mxu1 %v6383_v47  ;;  %v6431_v47 = vld [vmem:[%s8742_s5 + $0x40] ss:$24 sps:$4 sm:$0xff]  }
 0x23a   :  { %4211 = vmatprep.subr.bf16.mxu1 %v6391_v50  ;;  %v6436_v50 = vld [vmem:[%s8742_s5 + $0x14] ss:$24 sps:$4 sm:$0xff]  }
 0x23b   :  { %4333 = vmatpush2.bf16.msra.mxu0 %v6386_v53  ;;  %v6522_v53 = vld [vmem:[%s8744_s7 + $0x8] sm:$0xff]  }
 0x23c   :  { %4334 = vmatprep.subr.bf16.mxu0 %v6394_v56  ;;  %v6523_v56 = vld [vmem:[%s8744_s7 + $0x40] sm:$0xff]  }
 0x23d   :  { %4212 = vmatpush2.bf16.msra.mxu1 %v6389_v24  ;;  %v6434_v24 = vld [vmem:[%s8742_s5 + $0x10] ss:$24 sps:$4 sm:$0xff]  }
 0x23e   :  { %4213 = vmatprep.subr.bf16.mxu1 %v6397_v49  ;;  %v6439_v49 = vld [vmem:[%s8742_s5 + $0x2e4] ss:$24 sps:$4 sm:$0xff]  }
 0x23f   :  { %4335 = vmatpush2.bf16.msra.mxu0 %v6392_v59  ;;  %v6524_v59 = vld [vmem:[%s8744_s7] sm:$0xff]  }
 0x240   :  { %4336 = vmatprep.subr.bf16.mxu0 %v6400_v52  ;;  %v6437_v52 = vld [vmem:[%s8742_s5 + $0x2e0] ss:$24 sps:$4 sm:$0xff]  }
 0x241   :  { %4214 = vmatpush2.bf16.msra.mxu1 %v6395_v62  ;;  %v6442_v62 = vld [vmem:[%s8742_s5 + $0x2b4] ss:$24 sps:$4 sm:$0xff]  }
 0x242   :  { %4215 = vmatprep.subr.bf16.mxu1 %v6403_v0  ;;  %v6440_v0 = vld [vmem:[%s8742_s5 + $0x2b0] ss:$24 sps:$4 sm:$0xff]  }
 0x243   :  { %4337 = vmatpush2.bf16.msra.mxu0 %v6398_v1  ;;  %v6445_v1 = vld [vmem:[%s8742_s5 + $0x284] ss:$24 sps:$4 sm:$0xff]  }
 0x244   :  { %4338 = vmatprep.subr.bf16.mxu0 %v6406_v2  ;;  %v6443_v2 = vld [vmem:[%s8742_s5 + $0x280] ss:$24 sps:$4 sm:$0xff]  }
 0x245   :  { %4216 = vmatpush2.bf16.msra.mxu1 %v6401_v5  ;;  %v6448_v5 = vld [vmem:[%s8742_s5 + $0x254] ss:$24 sps:$4 sm:$0xff]  }
 0x246   :  { %4217 = vmatprep.subr.bf16.mxu1 %v6409_v7  ;;  %v6446_v7 = vld [vmem:[%s8742_s5 + $0x250] ss:$24 sps:$4 sm:$0xff]  }
 0x247   :  { %4339 = vmatpush2.bf16.msra.mxu0 %v6404_v6  ;;  %v6451_v6 = vld [vmem:[%s8742_s5 + $0x224] ss:$24 sps:$4 sm:$0xff]  }
 0x248   :  { %4340 = vmatprep.subr.bf16.mxu0 %v6412_v9  ;;  %v6449_v9 = vld [vmem:[%s8742_s5 + $0x220] ss:$24 sps:$4 sm:$0xff]  }
 0x249   :  { %4218 = vmatpush2.bf16.msra.mxu1 %v6407_v10  ;;  %v6454_v10 = vld [vmem:[%s8742_s5 + $0x1f4] ss:$24 sps:$4 sm:$0xff]  }
 0x24a   :  { %4269 = vmatprep.subr.bf16.mxu1 %v6415_v12  ;;  %v6452_v12 = vld [vmem:[%s8742_s5 + $0x1f0] ss:$24 sps:$4 sm:$0xff]  }
 0x24b   :  { %4341 = vmatpush2.bf16.msra.mxu0 %v6410_v13  ;;  %v6457_v13 = vld [vmem:[%s8742_s5 + $0x1c4] ss:$24 sps:$4 sm:$0xff]  }
 0x24c   :  { %4220 = vmatmul.mubr.bf16.vlgmr.msra.gmra.mxu1 %v7925_v8  ;;  %5573 = vmatprep.subr.bf16.mxu0 %v6503_v54  ;;  %v6455_v54 = vld [vmem:[%s8742_s5 + $0x1c0] ss:$24 sps:$4 sm:$0xff]  }
 0x24d   :  { %4270 = vmatpush1.bf16.msra.mxu1 %v6413_v15  ;;  %4301 = vmatprep.mubr.bf16.mxu1 %v7722_v28  ;;  %v6512_v28 = vld [vmem:[%s8744_s7 + $0x30] sm:$0xff]  }
 0x24e   :  { %4343 = vmatmul.mubr.bf16.vlgmr.msra.gmra.mxu0 %v7925_v8  ;;  %v4098_v61 = vpop.f32.mrf.mxu0  ;;  %4271 = vmatprep.subr.bf16.mxu1 %v6418_v17  ;;  %v6513_v8 = vld [vmem:[%s8744_s7 + $0x68] sm:$0xff]   ;;  %v6463_v17 = vld [vmem:[%s8742_s5 + $0x764] ss:$24 sps:$4 sm:$0xff]  }
 0x24f   :  { %v8385_v27 = vadd.f32 %v4098_v61, %v4058_v29  ;;  %5574 = vmatpush3.bf16.msra.mxu0 %v6507_v22  ;;  %v6458_v15 = vld [vmem:[%s8742_s5 + $0x190] ss:$24 sps:$4 sm:$0xff]   ;;  %v6466_v22 = vld [vmem:[%s8742_s5 + $0x734] ss:$24 sps:$4 sm:$0xff]  }
 0x250   :  { %v4100_v16 = vpop.f32.mrf.mxu0  ;;  %5575 = vmatprep.subr.bf16.mxu0 %v6508_v63  ;;  %v6464_v63 = vld [vmem:[%s8742_s5 + $0x730] ss:$24 sps:$4 sm:$0xff]  }
 0x251   :  { %v8393_v30 = vadd.f32 %v4100_v16, %v4060_v26  ;;  %4272 = vmatpush1.bf16.msra.mxu1 %v6416_v3  ;;  %v6469_v3 = vld [vmem:[%s8742_s5 + $0x704] ss:$24 sps:$4 sm:$0xff]  }
 0x252   :  { %v4102_v32 = vpop.f32.mrf.mxu0  ;;  %4273 = vmatprep.subr.bf16.mxu1 %v6421_v25  ;;  %v6475_v16 = vld [vmem:[%s8742_s5 + $0x6a4] ss:$24 sps:$4 sm:$0xff]  }
 0x253   :  { %5576 = vmatpush3.bf16.msra.mxu0 %v6512_v28  ;;  %v6470_v28 = vld [vmem:[%s8742_s5 + $0x6d0] ss:$24 sps:$4 sm:$0xff]  }
 0x254   :  { %v4103_v34 = vpop.f32.mrf.mxu0  ;;  %5577 = vmatprep.subr.bf16.mxu0 %v6513_v8  ;;  %v6473_v8 = vld [vmem:[%s8742_s5 + $0x6a0] ss:$24 sps:$4 sm:$0xff]   ;;  %v6476_v32 = vld [vmem:[%s8742_s5 + $0x670] ss:$24 sps:$4 sm:$0xff]  }
 0x255   :  { %4274 = vmatpush1.bf16.msra.mxu1 %v6419_v19  ;;  %v6478_v19 = vld [vmem:[%s8742_s5 + $0x674] ss:$24 sps:$4 sm:$0xff]  }
 0x256   :  { %4275 = vmatprep.subr.bf16.mxu1 %v6424_v33  ;;  %v6481_v33 = vld [vmem:[%s8742_s5 + $0x644] ss:$24 sps:$4 sm:$0xff]   ;;  %v6484_v34 = vld [vmem:[%s8742_s5 + $0x614] ss:$24 sps:$4 sm:$0xff]  }
 0x257   :  { %5578 = vmatpush3.bf16.msra.mxu0 %v6514_v48  ;;  %v6479_v48 = vld [vmem:[%s8742_s5 + $0x640] ss:$24 sps:$4 sm:$0xff]  }
 0x258   :  { %5579 = vmatprep.subr.bf16.mxu0 %v6515_v35  ;;  %v6482_v35 = vld [vmem:[%s8742_s5 + $0x610] ss:$24 sps:$4 sm:$0xff]  }
 0x259   :  { %4276 = vmatpush1.bf16.msra.mxu1 %v6422_v36  ;;  %v6487_v36 = vld [vmem:[%s8742_s5 + $0x8e4] ss:$24 sps:$4 sm:$0xff]  }
 0x25a   :  { %4277 = vmatprep.subr.bf16.mxu1 %v6427_v37  ;;  %v6485_v37 = vld [vmem:[%s8742_s5 + $0x8e0] ss:$24 sps:$4 sm:$0xff]  }
 0x25b   :  { %5580 = vmatpush3.bf16.msra.mxu0 %v6516_v60  ;;  %v6490_v60 = vld [vmem:[%s8742_s5 + $0x8b4] ss:$24 sps:$4 sm:$0xff]  }
 0x25c   :  { %5581 = vmatprep.subr.bf16.mxu0 %v6517_v39  ;;  %v6488_v39 = vld [vmem:[%s8742_s5 + $0x8b0] ss:$24 sps:$4 sm:$0xff]  }
 0x25d   :  { %4278 = vmatpush1.bf16.msra.mxu1 %v6425_v40  ;;  %v6493_v40 = vld [vmem:[%s8742_s5 + $0x884] ss:$24 sps:$4 sm:$0xff]  }
 0x25e   :  { %4279 = vmatprep.subr.bf16.mxu1 %v6430_v41  ;;  %v6491_v41 = vld [vmem:[%s8742_s5 + $0x880] ss:$24 sps:$4 sm:$0xff]  }
 0x25f   :  { %5582 = vmatpush3.bf16.msra.mxu0 %v6518_v42  ;;  %v6496_v42 = vld [vmem:[%s8742_s5 + $0x854] ss:$24 sps:$4 sm:$0xff]  }
 0x260   :  { %5583 = vmatprep.subr.bf16.mxu0 %v6519_v43  ;;  %v6494_v43 = vld [vmem:[%s8742_s5 + $0x850] ss:$24 sps:$4 sm:$0xff]  }
 0x261   :  { %4280 = vmatpush1.bf16.msra.mxu1 %v6428_v46  ;;  %v6499_v46 = vld [vmem:[%s8742_s5 + $0x824] ss:$24 sps:$4 sm:$0xff]  }
 0x262   :  { %4281 = vmatprep.subr.bf16.mxu1 %v6433_v4  ;;  %v6497_v4 = vld [vmem:[%s8742_s5 + $0x820] ss:$24 sps:$4 sm:$0xff]  }
 0x263   :  { %5584 = vmatpush3.bf16.msra.mxu0 %v6520_v58  ;;  %v6502_v58 = vld [vmem:[%s8742_s5 + $0x7f4] ss:$24 sps:$4 sm:$0xff]  }
 0x264   :  { %5585 = vmatprep.subr.bf16.mxu0 %v6521_v45  ;;  %v6500_v45 = vld [vmem:[%s8742_s5 + $0x7f0] ss:$24 sps:$4 sm:$0xff]  }
 0x265   :  { %4282 = vmatpush1.bf16.msra.mxu1 %v6431_v47  ;;  %v6506_v47 = vld [vmem:[%s8742_s5 + $0x7c4] ss:$24 sps:$4 sm:$0xff]  }
 0x266   :  { %4283 = vmatprep.subr.bf16.mxu1 %v6436_v50  ;;  %v6504_v50 = vld [vmem:[%s8742_s5 + $0x7c0] ss:$24 sps:$4 sm:$0xff]  }
 0x267   :  { %5586 = vmatpush3.bf16.msra.mxu0 %v6522_v53  ;;  %v6511_v53 = vld [vmem:[%s8742_s5 + $0x794] ss:$24 sps:$4 sm:$0xff]  }
 0x268   :  { %5587 = vmatprep.subr.bf16.mxu0 %v6523_v56  ;;  %v6509_v56 = vld [vmem:[%s8742_s5 + $0x790] ss:$24 sps:$4 sm:$0xff]  }
 0x269   :  { %4284 = vmatpush1.bf16.msra.mxu1 %v6434_v24  ;;  %v6525_v24 = vld [vmem:[%s8744_s7 + $0xf8] sm:$0xff]  }
 0x26a   :  { %4285 = vmatprep.subr.bf16.mxu1 %v6439_v49  ;;  %v6526_v49 = vld [vmem:[%s8744_s7 + $0xb8] sm:$0xff]  }
 0x26b   :  { %5588 = vmatpush3.bf16.msra.mxu0 %v6524_v59  ;;  %v6527_v59 = vld [vmem:[%s8744_s7 + $0xf0] sm:$0xff]  }
 0x26d   :  { %4286 = vmatpush2.bf16.msra.mxu1 %v6437_v52 }
 0x26e   :  { %4287 = vmatprep.subr.bf16.mxu1 %v6442_v62 }
 0x271   :  { %4288 = vmatpush2.bf16.msra.mxu1 %v6440_v0  ;;  %v6528_v0 = vld [vmem:[%s8744_s7 + $0xb0] sm:$0xff]  }
 0x272   :  { %4289 = vmatprep.subr.bf16.mxu1 %v6445_v1 }
 0x275   :  { %4290 = vmatpush2.bf16.msra.mxu1 %v6443_v2 }
 0x276   :  { %4291 = vmatprep.subr.bf16.mxu1 %v6448_v5  ;;  %v6529_v5 = vld [vmem:[%s8744_s7 + $0xe8] sm:$0xff]  }
 0x279   :  { %4292 = vmatpush2.bf16.msra.mxu1 %v6446_v7 }
 0x27a   :  { %4293 = vmatprep.subr.bf16.mxu1 %v6451_v6 }
 0x27d   :  { %4294 = vmatpush2.bf16.msra.mxu1 %v6449_v9 }
 0x27e   :  { %4295 = vmatprep.subr.bf16.mxu1 %v6454_v10 }
 0x281   :  { %4296 = vmatpush2.bf16.msra.mxu1 %v6452_v12  ;;  %v6531_v12 = vld [vmem:[%s8744_s7 + $0xe0] sm:$0xff]  }
 0x282   :  { %4297 = vmatprep.subr.bf16.mxu1 %v6457_v13 }
 0x285   :  { %4298 = vmatpush2.bf16.msra.mxu1 %v6455_v54  ;;  %v6532_v54 = vld [vmem:[%s8744_s7 + $0xa0] sm:$0xff]  }
 0x286   :  { %4299 = vmatprep.subr.bf16.mxu1 %v6460_v57  ;;  %v6533_v57 = vld [vmem:[%s8744_s7 + $0xd8] sm:$0xff]  }
 0x289   :  { %4300 = vmatpush2.bf16.msra.mxu1 %v6458_v15  ;;  %v6534_v15 = vld [vmem:[%s8744_s7 + $0x98] sm:$0xff]  }
 0x28a   :  { %4351 = vmatprep.subr.bf16.mxu1 %v6463_v17  ;;  %v6535_v17 = vld [vmem:[%s8744_s7 + $0xd0] sm:$0xff]  }
 0x28c   :  { %4302 = vmatmul.mubr.bf16.vlgmr.msra.gmra.mxu1 %v7727_v31  ;;  %v6467_v31 = vld [vmem:[%s8742_s5 + $0x700] ss:$24 sps:$4 sm:$0xff]  }
 0x28d   :  { %4352 = vmatpush1.bf16.msra.mxu1 %v6461_v21  ;;  %4383 = vmatprep.mubr.bf16.mxu1 %v8142_v51  ;;  %v6472_v51 = vld [vmem:[%s8742_s5 + $0x6d4] ss:$24 sps:$4 sm:$0xff]  }
 0x28e   :  { %v8523_v29 = vpop.f32.mrf.mxu0  ;;  %4353 = vmatprep.subr.bf16.mxu1 %v6466_v22  ;;  %v6536_v22 = vld [vmem:[%s8744_s7 + $0x90] sm:$0xff]  }
 0x290   :  { %v8528_v61 = vpop.f32.mrf.mxu0 }
 0x291   :  { %4354 = vmatpush1.bf16.msra.mxu1 %v6464_v63 }
 0x292   :  { %v4184_v25 = vpop.f32.mrf.mxu0  ;;  %4355 = vmatprep.subr.bf16.mxu1 %v6469_v3  ;;  %v6537_v3 = vld [vmem:[%s8744_s7 + $0xc8] sm:$0xff]  }
 0x293   :  { %v6542_v25 = vld [vmem:[%s8744_s7 + $0x138] sm:$0xff]  }
 0x294   :  { %v4185_v26 = vpop.f32.mrf.mxu0 }
 0x295   :  { %4356 = vmatpush1.bf16.msra.mxu1 %v6467_v31  ;;  %v6543_v26 = vld [vmem:[%s8744_s7 + $0x170] sm:$0xff]  }
 0x296   :  { %4357 = vmatprep.subr.bf16.mxu1 %v6472_v51 }
 0x299   :  { %4358 = vmatpush1.bf16.msra.mxu1 %v6470_v28  ;;  %v6538_v28 = vld [vmem:[%s8744_s7 + $0x88] sm:$0xff]  }
 0x29a   :  { %4359 = vmatprep.subr.bf16.mxu1 %v6475_v16  ;;  %v6539_v16 = vld [vmem:[%s8744_s7 + $0xc0] sm:$0xff]  }
 0x29d   :  { %4360 = vmatpush1.bf16.msra.mxu1 %v6473_v8  ;;  %v6544_v8 = vld [vmem:[%s8744_s7 + $0x130] sm:$0xff]  }
 0x29e   :  { %4361 = vmatprep.subr.bf16.mxu1 %v6478_v19  ;;  %v6545_v19 = vld [vmem:[%s8744_s7 + $0x168] sm:$0xff]  }
 0x2a1   :  { %4362 = vmatpush1.bf16.msra.mxu1 %v6476_v32  ;;  %v6540_v32 = vld [vmem:[%s8744_s7 + $0x80] sm:$0xff]  }
 0x2a2   :  { %4363 = vmatprep.subr.bf16.mxu1 %v6481_v33  ;;  %v6546_v33 = vld [vmem:[%s8744_s7 + $0x128] sm:$0xff]  }
 0x2a5   :  { %4364 = vmatpush1.bf16.msra.mxu1 %v6479_v48  ;;  %v2564_v48 = vrot.slane %v8345_v11, %v376_v18 }
 0x2a6   :  { %4365 = vmatprep.subr.bf16.mxu1 %v6484_v34  ;;  %v2568_v34 = vrot.slane %v8345_v11, %v380_v23 }
 0x2a9   :  { %4366 = vmatpush1.bf16.msra.mxu1 %v6482_v35  ;;  %v4181_v35 = vadd.f32 %v8523_v29, %v2564_v48 }
 0x2aa   :  { %4367 = vmatprep.subr.bf16.mxu1 %v6487_v36 }
 0x2ad   :  { %4368 = vmatpush2.bf16.msra.mxu1 %v6485_v37  ;;  %v6547_v37 = vld [vmem:[%s8744_s7 + $0x160] sm:$0xff]  }
 0x2ae   :  { %4369 = vmatprep.subr.bf16.mxu1 %v6490_v60  ;;  %v4183_v60 = vadd.f32 %v8528_v61, %v2568_v34  ;;  %v4916_v34 = vand.u32 127, %v42_v38 }
 0x2b0   :  { %vm4917_vm0 = vcmp.lt.s32.totalorder %v4916_v34, 2 }
 0x2b1   :  { %4370 = vmatpush2.bf16.msra.mxu1 %v6488_v39 }
 0x2b2   :  { %4371 = vmatprep.subr.bf16.mxu1 %v6493_v40  ;;  %v6548_v40 = vld [vmem:[%s8744_s7 + $0x120] sm:$0xff]  }
 0x2b5   :  { %4372 = vmatpush2.bf16.msra.mxu1 %v6491_v41 }
 0x2b6   :  { %4373 = vmatprep.subr.bf16.mxu1 %v6496_v42 }
 0x2b9   :  { %4374 = vmatpush2.bf16.msra.mxu1 %v6494_v43 }
 0x2ba   :  { %4375 = vmatprep.subr.bf16.mxu1 %v6499_v46  ;;  %v6549_v46 = vld [vmem:[%s8744_s7 + $0x158] sm:$0xff]  }
 0x2bd   :  { %4376 = vmatpush2.bf16.msra.mxu1 %v6497_v4  ;;  %v6550_v4 = vld [vmem:[%s8744_s7 + $0x118] sm:$0xff]  }
 0x2be   :  { %4377 = vmatprep.subr.bf16.mxu1 %v6502_v58 }
 0x2c1   :  { %4378 = vmatpush2.bf16.msra.mxu1 %v6500_v45 }
 0x2c2   :  { %4379 = vmatprep.subr.bf16.mxu1 %v6506_v47 }
 0x2c5   :  { %4380 = vmatpush2.bf16.msra.mxu1 %v6504_v50  ;;  %v6551_v50 = vld [vmem:[%s8744_s7 + $0x150] sm:$0xff]  }
 0x2c6   :  { %4381 = vmatprep.subr.bf16.mxu1 %v6511_v53  ;;  %v6552_v53 = vld [vmem:[%s8744_s7 + $0x110] sm:$0xff]  }
 0x2c9   :  { %4382 = vmatpush2.bf16.msra.mxu1 %v6509_v56  ;;  %v6553_v56 = vld [vmem:[%s8744_s7 + $0x148] sm:$0xff]  }
 0x2ca   :  { %5595 = vmatprep.subr.bf16.mxu1 %v6525_v24  ;;  %v6554_v24 = vld [vmem:[%s8744_s7 + $0x108] sm:$0xff]  }
 0x2cc   :  { %4384 = vmatmul.mubr.bf16.vlgmr.msra.gmra.mxu1 %v8147_v55  ;;  %v4139_v52 = vpop.f32.mrf.mxu1 }
 0x2cd   :  { %v4140_v62 = vadd.f32 %v4139_v52, %v8385_v27  ;;  %5596 = vmatpush3.bf16.msra.mxu1 %v6526_v49  ;;  %v6530_v27 = vld [vmem:[%s8744_s7 + $0xa8] sm:$0xff]   ;;  %v6555_v49 = vld [vmem:[%s8744_s7 + $0x140] sm:$0xff]  }
 0x2ce   :  { %v8625_v1 = vpop.f32.mrf.mxu0  ;;  %v4141_v2 = vpop.f32.mrf.mxu1  ;;  %5597 = vmatprep.subr.bf16.mxu1 %v6527_v59  ;;  %v6556_v59 = vld [vmem:[%s8744_s7 + $0x100] sm:$0xff]  }
 0x2cf   :  { %v4142_v7 = vadd.f32 %v4141_v2, %v8393_v30  ;;  %6557 = vtanh.f32 %v4140_v62  ;;  %v6541_v30 = vld [vmem:[%s8744_s7 + $0x178] sm:$0xff]  }
 0x2d0   :  { %v8631_v55 = vpop.f32.mrf.mxu0  ;;  %v4143_v6 = vpop.f32.mrf.mxu1  ;;  %5617 = vmatprep.subr.bf16.mxu0 %v6541_v30 }
 0x2d1   :  { %6559 = vtanh.f32 %v4142_v7  ;;  %5598 = vmatpush3.bf16.msra.mxu1 %v6528_v0  ;;  %v2572_v6 = vrot.slane %v8345_v11, %v384_v14 }
 0x2d2   :  { %v4266_v9 = vpop.f32.mrf.mxu0  ;;  %v4144_v10 = vpop.f32.mrf.mxu1  ;;  %5599 = vmatprep.subr.bf16.mxu1 %v6529_v5 }
 0x2d4   :  { %v4267_v13 = vpop.f32.mrf.mxu0 }
 0x2d5   :  { %5600 = vmatpush3.bf16.msra.mxu1 %v6530_v27  ;;  %v2576_v27 = vrot.slane %v8345_v11, %v388_v20 }
 0x2d6   :  { %5601 = vmatprep.subr.bf16.mxu1 %v6531_v12 }
 0x2d9   :  { %5602 = vmatpush3.bf16.msra.mxu1 %v6532_v54 }
 0x2da   :  { %5603 = vmatprep.subr.bf16.mxu1 %v6533_v57 }
 0x2dc   :  { %v6558_v21 = vpop.eup %6557 }
 0x2dd   :  { %5604 = vmatpush3.bf16.msra.mxu1 %v6534_v15  ;;  %v4398_v51 = vpack.c.bf16 %v6558_v21, %v6558_v21 }
 0x2de   :  { %v6560_v63 = vpop.eup %6559  ;;  %5605 = vmatprep.subr.bf16.mxu1 %v6535_v17 }
 0x2df   :  { %v4399_v31 = vpack.c.bf16 %v6560_v63, %v6560_v63 }
 0x2e1   :  { %4827 = vmatprep.mubr.bf16.mxu0 %v4399_v31  ;;  %5606 = vmatpush3.bf16.msra.mxu1 %v6536_v22 }
 0x2e2   :  { %4828 = vmatmul.mubr.bf16.vlgmr.msra.gmra.mxu0 %v4398_v51  ;;  %5607 = vmatprep.subr.bf16.mxu1 %v6537_v3  ;;  %v5524_v51 = vld [vmem:[%s8745_s8] ss:$0 sm:$0xff]  ;;  %s6597_s8 = smov [#allocation2]  }
 0x2e3   :  { %5618 = vmatpush3.bf16.msra.mxu0 %v6542_v25  ;;  %s4938_s17 = sshll.u32 %s6597_s8, 4  ;;  %s4939_s17 = int_to_ptr.vmem [resolvable:$true] %s4938_s17 }
 0x2e4   :  { %5619 = vmatprep.subr.bf16.mxu0 %v6543_v26  ;;  %s6573_s18 = scalar_lea.vmem %s4939_s17, 32  ;;  %p6578_p1 = scmp.lt.s32.totalorder %s4939_s17, %s4939_s17 }
 0x2e5   :  { %5608 = vmatpush3.bf16.msra.mxu1 %v6538_v28  ;;  %p6574_p0 = scmp.ne.s32.totalorder %s4939_s17, %s6573_s18  ;;  %p6579_p2 = scmp.lt.s32.totalorder %s6573_s18, %s6573_s18 }
 0x2e6   :  { %5609 = vmatprep.subr.bf16.mxu1 %v6539_v16 }
 0x2e7   :  { %5620 = vmatpush3.bf16.msra.mxu0 %v6544_v8  ;;  %p6580_p3 = por %p6579_p2, %p6578_p1 }
 0x2e8   :  { %5621 = vmatprep.subr.bf16.mxu0 %v6545_v19 }
 0x2e9   :  { %5610 = vmatpush3.bf16.msra.mxu1 %v6540_v32  ;;  %p6581_p4 = pnand %p6580_p3, %p6574_p0 }
 0x2eb   :  { %5622 = vmatpush3.bf16.msra.mxu0 %v6546_v33 }
 0x2ec   :  { %5623 = vmatprep.subr.bf16.mxu0 %v6547_v37 }
 0x2ef   :  { %5624 = vmatpush3.bf16.msra.mxu0 %v6548_v40 }
 0x2f0   :  { %5625 = vmatprep.subr.bf16.mxu0 %v6549_v46 }
 0x2f3   :  { %5626 = vmatpush3.bf16.msra.mxu0 %v6550_v4 }
 0x2f4   :  { %5627 = vmatprep.subr.bf16.mxu0 %v6551_v50 }
 0x2f7   :  { %5628 = vmatpush3.bf16.msra.mxu0 %v6552_v53 }
 0x2f8   :  { %5629 = vmatprep.subr.bf16.mxu0 %v6553_v56 }
 0x2fb   :  { %5630 = vmatpush3.bf16.msra.mxu0 %v6554_v24 }
 0x2fc   :  { %5631 = vmatprep.subr.bf16.mxu0 %v6555_v49 }
 0x2ff   :  { %5632 = vmatpush3.bf16.msra.mxu0 %v6556_v59 }
 0x30c   :  { %v4221_v36 = vpop.f32.mrf.mxu1 }
 0x30d   :  { %v4222_v39 = vadd.f32 %v4221_v36, %v4181_v35 }
 0x30e   :  { %v4223_v41 = vpop.f32.mrf.mxu1  ;;  %v4344_v18 = vpop.f32.mrf.mxu0 }
 0x30f   :  { %v4263_v42 = vadd.f32 %v8625_v1, %v4222_v39  ;;  %v4224_v23 = vadd.f32 %v4223_v41, %v4183_v60 }
 0x310   :  { %v4225_v29 = vpop.f32.mrf.mxu1  ;;  %v4346_v43 = vpop.f32.mrf.mxu0 }
 0x311   :  { %v4265_v61 = vadd.f32 %v8631_v55, %v4224_v23  ;;  %6561 = vtanh.f32 %v4263_v42 }
 0x312   :  { %v4226_v58 = vpop.f32.mrf.mxu1  ;;  %v4348_v45 = vpop.f32.mrf.mxu0 }
 0x313   :  { %6563 = vtanh.f32 %v4265_v61 }
 0x314   :  { %v4349_v47 = vpop.f32.mrf.mxu0 }
 0x31e   :  { %v6562_v52 = vpop.eup %6561 }
 0x31f   :  { %v4400_v1 = vpack.c.bf16 %v6562_v52, %v6562_v52 }
 0x320   :  { %v6564_v62 = vpop.eup %6563 }
 0x321   :  { %v4401_v0 = vpack.c.bf16 %v6564_v62, %v6564_v62 }
 0x323   :  { %4867 = vmatprep.mubr.bf16.mxu1 %v4401_v0 }
 0x324   :  { %4868 = vmatmul.mubr.bf16.vlgmr.msra.gmra.mxu1 %v4400_v1 }
 0x34c   :  { %v4303_v2 = vpop.f32.mrf.mxu1 }
 0x34d   :  { %v4304_v9 = vadd.f32 %v4303_v2, %v2572_v6 }
 0x34e   :  { %v4305_v5 = vpop.f32.mrf.mxu1 }
 0x34f   :  { %v4306_v10 = vadd.f32 %v4305_v5, %v2576_v27  ;;  %v4345_v12 = vadd.f32 %v4344_v18, %v4304_v9 }
 0x350   :  { %v4307_v7 = vpop.f32.mrf.mxu1 }
 0x351   :  { %v4347_v54 = vadd.f32 %v4346_v43, %v4306_v10 }
 0x352   :  { %v4308_v55 = vpop.f32.mrf.mxu1 }
 0x38c   :  { %v4385_v30 = vpop.f32.mrf.mxu1 }
 0x38d   :  { %v4386_v13 = vadd.f32 %v4385_v30, %v4345_v12 }
 0x38e   :  { %v4387_v57 = vpop.f32.mrf.mxu1 }
 0x38f   :  { %v4388_v15 = vadd.f32 %v4387_v57, %v4347_v54  ;;  %6565 = vtanh.f32 %v4386_v13 }
 0x390   :  { %v4389_v17 = vpop.f32.mrf.mxu1 }
 0x391   :  { %6567 = vtanh.f32 %v4388_v15 }
 0x392   :  { %v4390_v21 = vpop.f32.mrf.mxu1 }
 0x39c   :  { %v6566_v22 = vpop.eup %6565 }
 0x39d   :  { %v4402_v14 = vpack.c.bf16 %v6566_v22, %v6566_v22 }
 0x39e   :  { %v6568_v63 = vpop.eup %6567 }
 0x39f   :  { %v4403_v3 = vpack.c.bf16 %v6568_v63, %v6568_v63 }
 0x3a1   :  { %4907 = vmatprep.mubr.bf16.mxu0 %v4403_v3 }
 0x3a2   :  { %4908 = vmatmul.mubr.bf16.vlgmr.msra.gmra.mxu0 %v4402_v14  ;;  %v5589_v44 = vpop.f32.mrf.mxu0 }
 0x3a4   :  { %v5590_v20 = vpop.f32.mrf.mxu0 }
 0x3a5   :  { %v5591_v11 = vadd.f32 %v5590_v20, %v5589_v44 }
 0x3a6   :  { %v5592_v31 = vpop.f32.mrf.mxu0 }
 0x3a7   :  { %v4830_v16 = vadd.f32 %v5591_v11, %v5524_v51 }
 0x3a8   :  { %v5593_v25 = vpop.f32.mrf.mxu0 }
 0x3e4   :  { %v5611_v26 = vpop.f32.mrf.mxu1 }
 0x3e6   :  { %v5612_v28 = vpop.f32.mrf.mxu1 }
 0x3e7   :  { %v5613_v8 = vadd.f32 %v5612_v28, %v5611_v26 }
 0x3e8   :  { %v5614_v19 = vpop.f32.mrf.mxu1 }
 0x3e9   :  { %v4870_v32 = vadd.f32 %v5613_v8, %v4830_v16 }
 0x3ea   :  { %v5615_v33 = vpop.f32.mrf.mxu1 }
 0x462   :  { %v5633_v48 = vpop.f32.mrf.mxu0 }
 0x464   :  { %v5634_v35 = vpop.f32.mrf.mxu0 }
 0x465   :  { %v5635_v36 = vadd.f32 %v5634_v35, %v5633_v48 }
 0x466   :  { %v5636_v37 = vpop.f32.mrf.mxu0 }
 0x467   :  { %v4910_v60 = vadd.f32 %v5635_v36, %v4870_v32 }
 0x468   :  { %v5637_v39 = vpop.f32.mrf.mxu0 }
 0x469   :  { %v4918_v40 = vsel %vm4917_vm0, %v4910_v60, -1e+30 }
 0x46a   :  { %v4920_v41 = vsel %vm4919_vm1, %v4918_v40, -inf }
 0x46b   :  { %4921 = vmax.xlane.f32.xlu0 %v4920_v41 }
 0x4f4   :  { %v4922_v18 = vpop.xlane.xlu0 %4921 }
 0x4f5   :  { %v4923_v42 = vsub.f32 %v4918_v40, %v4922_v18 }
 0x4f7   :  { %v4924_v23 = vmul.f32 1.442695, %v4923_v42 }
 0x4f9   :  { %6569 = vpow2.f32 %v4924_v23 }
 0x506   :  { %v6570_v29 = vpop.eup %6569 }
 0x507   :  { %v4926_v43 = vsel %vm4919_vm1, %v6570_v29, 0.0 }
 0x508   :  { %4927 = vadd.xlane.f32.xlu1 %v4926_v43 }
 0x591   :  { %v4928_v46 = vpop.xlane.xlu1 %4927 }
 0x592   :  { %6571 = vrcp.f32 %v4928_v46 }
 0x59f   :  { %v6572_v38 = vpop.eup %6571 }
 0x5a0   :  { %v4930_v61 = vmul.f32 %v6572_v38, %v6570_v29 }
 0x5a2   :  { %4931 = vst [vmem:[#allocation2] sm:$0x3] %v4930_v61 }
 0x5a3   :  { %6584 = shalt.err (!%p6581_p4)
}
 0x5a4   :  { %4941 = dma.vmem_to_hbm [thread:$0]  %s4939_s17, 32, %s8746_s9, [#allocation3]  }
 0x5a5   :  { %6593 = dma.done.wait [#allocation3], 32  }
 0x5a6   :  { %6594 = vsyncadd [#allocation3], 4294967264 }
 0x5a7   :  { %4945 = vsyncpa [#allocation3], 1 }

</bundles_post_ra>
